<compile_context>
chip_gen: v6e
topology: v6e:2x2x1
jax: 0.10.0
libtpu: 0.0.40
codegen_flags: <defaults>
</compile_context>

<pallas_src>
import functools

import jax
import jax.numpy as jnp
from jax import lax
from jax.experimental import pallas as pl
from jax.experimental.pallas import tpu as pltpu

LN_EPS = 1e-5
BF16 = jnp.bfloat16


def _round_up(n, m):
    return ((n + m - 1) // m) * m


def _row_tile(rows, din, H, budget=16 << 20):
    """Row tile for the rows-parallel matmul kernel, budgeted for scoped VMEM."""
    per_row = 4 * (din + 8 * H) * 2          # input + 2x(4H) outputs, double-buffered, f32
    rt = min(1024, max(8, budget // max(per_row, 1)))
    rt = max(8, (rt // 8) * 8)
    return min(rows, rt)


def _time_chunk(T, Bp, H, budget=8 << 20):
    """Largest divisor of T (<= cap) whose streamed chunks fit the VMEM budget."""
    per_t = Bp * 4 * H * 4                    # one timestep of one direction's xp (f32)
    cap = min(64, max(1, budget // max(per_t * 8, 1)))
    tc = min(T, cap)
    while T % tc:
        tc -= 1
    return tc


# ---------------------------------------------------------------------------
# Kernel 1: fused MLP front-end + layer-0 LSTM input projection (both dirs).
# Rows (= time*batch) are independent -> row-tiled "parallel" grid.
# ---------------------------------------------------------------------------
def mlp_proj_kernel(x_ref, w1_ref, b1_ref, w2_ref, b2_ref, w3_ref, b3_ref,
                    g_ref, bt_ref, wif_ref, bif_ref, wib_ref, bib_ref,
                    pf_ref, pb_ref):
    g = g_ref[...]
    beta = bt_ref[...]

    def ln(v):                                            # f32 LayerNorm
        mu = jnp.mean(v, axis=-1, keepdims=True)
        var = jnp.mean((v - mu) ** 2, axis=-1, keepdims=True)
        return (v - mu) * lax.rsqrt(var + LN_EPS) * g + beta

    x = x_ref[...].astype(BF16)
    h1 = jnp.maximum(
        jnp.dot(x, w1_ref[...], preferred_element_type=jnp.float32) + b1_ref[...], 0.0)
    x1 = ln(h1)
    h2 = jnp.maximum(
        jnp.dot(x1.astype(BF16), w2_ref[...], preferred_element_type=jnp.float32)
        + b2_ref[...], 0.0)
    x2 = ln(h2)
    h3 = jnp.maximum(
        jnp.dot((x1 + x2).astype(BF16), w3_ref[...], preferred_element_type=jnp.float32)
        + b3_ref[...], 0.0)
    x3 = ln(h3)
    s = (x2 + x3).astype(BF16)                            # LSTM layer-0 input
    # hoisted layer-0 input projection, both directions, bias folded in
    pf_ref[...] = jnp.dot(s, wif_ref[...], preferred_element_type=jnp.float32) + bif_ref[...]
    pb_ref[...] = jnp.dot(s, wib_ref[...], preferred_element_type=jnp.float32) + bib_ref[...]


def mlp_proj(x_tm, wp, H):
    rows, din = x_tm.shape
    rt = _row_tile(rows, din, H)
    grid = (pl.cdiv(rows, rt),)
    weights = [wp["w1"], wp["b1"], wp["w2"], wp["b2"], wp["w3"], wp["b3"],
               wp["ln_g"], wp["ln_b"], wp["wi0f"], wp["bi0f"], wp["wi0b"], wp["bi0b"]]
    in_specs = [pl.BlockSpec((rt, din), lambda i: (i, 0))]
    in_specs += [pl.BlockSpec(w.shape, lambda i: (0, 0)) for w in weights]
    out_spec = pl.BlockSpec((rt, 4 * H), lambda i: (i, 0))
    return pl.pallas_call(
        mlp_proj_kernel,
        grid=grid,
        in_specs=in_specs,
        out_specs=(out_spec, out_spec),
        out_shape=(jax.ShapeDtypeStruct((rows, 4 * H), jnp.float32),
                   jax.ShapeDtypeStruct((rows, 4 * H), jnp.float32)),
        compiler_params=pltpu.CompilerParams(dimension_semantics=("parallel",)),
    )(x_tm, *weights)


# ---------------------------------------------------------------------------
# Kernel 2: layer-0 bidirectional LSTM recurrence.
# xpf/xpb already contain x @ W_ih + b per direction.  Grid streams over time
# chunks ("arbitrary"); (h, c) for both directions live in the fori_loop carry
# (vreg-resident) and are spilled to scratch only at chunk boundaries.  Time
# reversal of the backward direction is done purely by the BlockSpec index_map.
# Gate column order is (i, f, o, g): one contiguous sigmoid + one tanh.
# ---------------------------------------------------------------------------
def bilstm0_kernel(xpf_ref, xpb_ref, whhf_ref, whhb_ref, outf_ref, outb_ref,
                   st_scr, *, tc, Bp, H):
    @pl.when(pl.program_id(0) == 0)
    def _():
        st_scr[...] = jnp.zeros_like(st_scr)

    whhf = whhf_ref[...]                                  # bf16 (H, 4H), hoisted
    whhb = whhb_ref[...]

    def cell(gates, c):
        sg = jax.nn.sigmoid(gates[:, :3 * H])             # i | f | o
        g = jnp.tanh(gates[:, 3 * H:])
        c_new = sg[:, H:2 * H] * c + sg[:, 0:H] * g
        h_new = sg[:, 2 * H:3 * H] * jnp.tanh(c_new)
        return h_new, c_new

    def step(s, carry):
        h_f, c_f, h_b, c_b = carry
        rf = pl.multiple_of(s * Bp, 8)                    # fwd: local time s
        rb = pl.multiple_of((tc - 1 - s) * Bp, 8)         # bwd: reversed local time
        gates_f = xpf_ref[pl.ds(rf, Bp), :] + jnp.dot(
            h_f.astype(BF16), whhf, preferred_element_type=jnp.float32)
        gates_b = xpb_ref[pl.ds(rb, Bp), :] + jnp.dot(
            h_b.astype(BF16), whhb, preferred_element_type=jnp.float32)
        h_f, c_f = cell(gates_f, c_f)
        h_b, c_b = cell(gates_b, c_b)
        outf_ref[pl.ds(rf, Bp), :] = h_f
        outb_ref[pl.ds(rb, Bp), :] = h_b
        return (h_f, c_f, h_b, c_b)

    init = (st_scr[0], st_scr[1], st_scr[2], st_scr[3])
    h_f, c_f, h_b, c_b = lax.fori_loop(0, tc, step, init, unroll=min(tc, 8))
    st_scr[0] = h_f
    st_scr[1] = c_f
    st_scr[2] = h_b
    st_scr[3] = c_b


def bilstm0(xpf, xpb, whhf, whhb, *, T, Bp, H):
    rows = T * Bp
    tc = _time_chunk(T, Bp, H)
    nT = T // tc
    blk = tc * Bp
    return pl.pallas_call(
        functools.partial(bilstm0_kernel, tc=tc, Bp=Bp, H=H),
        grid=(nT,),
        in_specs=[pl.BlockSpec((blk, 4 * H), lambda j: (j, 0)),
                  pl.BlockSpec((blk, 4 * H), lambda j: (nT - 1 - j, 0)),   # time reversal
                  pl.BlockSpec(whhf.shape, lambda j: (0, 0)),
                  pl.BlockSpec(whhb.shape, lambda j: (0, 0))],
        out_specs=(pl.BlockSpec((blk, H), lambda j: (j, 0)),
                   pl.BlockSpec((blk, H), lambda j: (nT - 1 - j, 0))),
        out_shape=(jax.ShapeDtypeStruct((rows, H), jnp.float32),
                   jax.ShapeDtypeStruct((rows, H), jnp.float32)),
        scratch_shapes=[pltpu.VMEM((4, Bp, H), jnp.float32)],   # h_f, c_f, h_b, c_b
        compiler_params=pltpu.CompilerParams(dimension_semantics=("arbitrary",)),
    )(xpf, xpb, whhf, whhb)


# ---------------------------------------------------------------------------
# Kernel 3: layer-1 LSTM + head, fully fused.
#   * Prologue per chunk: layer-1 forward input projection of the chunk
#     (of0 @ Wf[:H] + ob0 @ Wf[H:] + b) -> VMEM scratch (no HBM round trip,
#     and no (T,B,2H) concat ever materializes).
#   * Forward recurrence streams over the chunk; (h, c) in loop carry.
#   * The module only consumes lstm_out[:, -1]; the backward direction's
#     output at t = T-1 is a SINGLE gate evaluation with zero initial state,
#     so it + fc1/relu/fc2/sigmoid run once under pl.when(last chunk).
#     fc2 is padded to 128 lanes -> lane-dense output store.
# ---------------------------------------------------------------------------
def bilstm1_head_kernel(of_ref, ob_ref, wfa_ref, wfb_ref, bfi_ref, whh_ref,
                        wba_ref, wbb_ref, bbi_ref,
                        f1a_ref, f1b_ref, b1_ref, w2_ref, b2_ref,
                        out_ref, xp_scr, h_scr, c_scr, *, tc, Bp, H, nT):
    j = pl.program_id(0)

    @pl.when(j == 0)
    def _():
        h_scr[...] = jnp.zeros_like(h_scr)
        c_scr[...] = jnp.zeros_like(c_scr)

    of_c = of_ref[...].astype(BF16)                       # (blk, H)
    ob_c = ob_ref[...].astype(BF16)
    # chunk-level layer-1 fwd input projection (off the serial per-step path)
    xp_scr[...] = (jnp.dot(of_c, wfa_ref[...], preferred_element_type=jnp.float32)
                   + jnp.dot(ob_c, wfb_ref[...], preferred_element_type=jnp.float32)
                   + bfi_ref[...])

    whh = whh_ref[...]                                    # bf16 (H, 4H)

    def step(s, carry):
        h, c = carry
        r = pl.multiple_of(s * Bp, 8)
        gates = xp_scr[pl.ds(r, Bp), :] + jnp.dot(
            h.astype(BF16), whh, preferred_element_type=jnp.float32)
        sg = jax.nn.sigmoid(gates[:, :3 * H])
        g = jnp.tanh(gates[:, 3 * H:])
        c = sg[:, H:2 * H] * c + sg[:, 0:H] * g
        h = sg[:, 2 * H:3 * H] * jnp.tanh(c)
        return (h, c)

    h_f, c_f = lax.fori_loop(0, tc, step, (h_scr[...], c_scr[...]),
                             unroll=min(tc, 8))
    h_scr[...] = h_f
    c_scr[...] = c_f

    @pl.when(j == nT - 1)
    def _():
        # backward direction at the last timestep (zero initial state) + head
        of_l = of_c[(tc - 1) * Bp:, :]                    # last-timestep rows
        ob_l = ob_c[(tc - 1) * Bp:, :]
        gb = (jnp.dot(of_l, wba_ref[...], preferred_element_type=jnp.float32)
              + jnp.dot(ob_l, wbb_ref[...], preferred_element_type=jnp.float32)
              + bbi_ref[...])
        sgb = jax.nn.sigmoid(gb[:, :3 * H])
        gg = jnp.tanh(gb[:, 3 * H:])
        c_b = sgb[:, 0:H] * gg
        h_b = sgb[:, 2 * H:3 * H] * jnp.tanh(c_b)
        hh = jnp.maximum(
            jnp.dot(h_f.astype(BF16), f1a_ref[...], preferred_element_type=jnp.float32)
            + jnp.dot(h_b.astype(BF16), f1b_ref[...], preferred_element_type=jnp.float32)
            + b1_ref[...], 0.0)
        z = jnp.dot(hh.astype(BF16), w2_ref[...],
                    preferred_element_type=jnp.float32) + b2_ref[...]
        out_ref[...] = jax.nn.sigmoid(z)


def bilstm1_head(of0, ob0, wp, *, T, Bp, H):
    tc = _time_chunk(T, Bp, H)
    nT = T // tc
    blk = tc * Bp
    ws = [wp["wi1fA"], wp["wi1fB"], wp["bi1f"], wp["whh1f"],
          wp["wi1bA"], wp["wi1bB"], wp["bi1b"],
          wp["f1a"], wp["f1b"], wp["bf1"], wp["wf2p"], wp["bf2p"]]
    in_specs = [pl.BlockSpec((blk, H), lambda j: (j, 0)),
                pl.BlockSpec((blk, H), lambda j: (j, 0))]
    in_specs += [pl.BlockSpec(w.shape, lambda j: (0, 0)) for w in ws]
    return pl.pallas_call(
        functools.partial(bilstm1_head_kernel, tc=tc, Bp=Bp, H=H, nT=nT),
        grid=(nT,),
        in_specs=in_specs,
        out_specs=pl.BlockSpec((Bp, 128), lambda j: (0, 0)),
        out_shape=jax.ShapeDtypeStruct((Bp, 128), jnp.float32),
        scratch_shapes=[pltpu.VMEM((blk, 4 * H), jnp.float32),   # projected chunk
                        pltpu.VMEM((Bp, H), jnp.float32),        # fwd h
                        pltpu.VMEM((Bp, H), jnp.float32)],       # fwd c
        compiler_params=pltpu.CompilerParams(dimension_semantics=("arbitrary",)),
    )(of0, ob0, *ws)


# ---------------------------------------------------------------------------
# Weight preparation (one-time bf16 casts / splits / lane padding) + forward.
# ---------------------------------------------------------------------------
def _prep(p):
    H = p["w1"].shape[1]
    w = {
        "w1": p["w1"].astype(BF16), "b1": p["b1"],
        "w2": p["w2"].astype(BF16), "b2": p["b2"],
        "w3": p["w3"].astype(BF16), "b3": p["b3"],
        "ln_g": p["ln_g"], "ln_b": p["ln_b"],
    }
    wi0f, whh0f, bi0f = p["l0_fwd"]
    wi0b, whh0b, bi0b = p["l0_bwd"]
    w["wi0f"] = wi0f.astype(BF16); w["bi0f"] = bi0f; w["whh0f"] = whh0f.astype(BF16)
    w["wi0b"] = wi0b.astype(BF16); w["bi0b"] = bi0b; w["whh0b"] = whh0b.astype(BF16)
    wi1f, whh1f, bi1f = p["l1_fwd"]
    wi1b, _, bi1b = p["l1_bwd"]
    w["wi1fA"] = wi1f[:H].astype(BF16); w["wi1fB"] = wi1f[H:].astype(BF16)
    w["bi1f"] = bi1f; w["whh1f"] = whh1f.astype(BF16)
    w["wi1bA"] = wi1b[:H].astype(BF16); w["wi1bB"] = wi1b[H:].astype(BF16)
    w["bi1b"] = bi1b
    w["f1a"] = p["wf1"][:H].astype(BF16); w["f1b"] = p["wf1"][H:].astype(BF16)
    w["bf1"] = p["bf1"]
    w["wf2p"] = jnp.pad(p["wf2"], ((0, 0), (0, 127))).astype(BF16)   # (H, 128)
    w["bf2p"] = jnp.pad(p["bf2"], ((0, 0), (0, 127)))                # (1, 128)
    return w


def aron_forward(x, p):
    B, T, Din = x.shape
    H = p["w1"].shape[1]
    Bp = max(8, _round_up(B, 8))
    wp = _prep(p)
    # one-time layout plumbing: pad batch to a sublane multiple, time-major
    # flattened rows (row = t*Bp + b); everything downstream stays 2-D.
    xpad = jnp.pad(x, ((0, Bp - B), (0, 0), (0, 0)))      # (Bp, T, Din)
    x_tm = xpad.transpose(1, 0, 2).reshape(T * Bp, Din)   # (T*Bp, Din)

    xp0f, xp0b = mlp_proj(x_tm, wp, H)                                   # (T*Bp, 4H) x2
    of0, ob0 = bilstm0(xp0f, xp0b, wp["whh0f"], wp["whh0b"],
                       T=T, Bp=Bp, H=H)                                  # (T*Bp, H) x2
    out = bilstm1_head(of0, ob0, wp, T=T, Bp=Bp, H=H)                    # (Bp, 128)
    return out[:B, 0]                                                    # (B,)


# ---------------------------------------------------------------------------
# deterministic parameter init (pre-transposed weights; gate order i,f,o,g)
# ---------------------------------------------------------------------------
def init_params(key, input_size, H):
    ks = jax.random.split(key, 14)

    def u(k, shape, scale):
        return jax.random.uniform(k, shape, jnp.float32, -scale, scale)

    p = {}
    p["w1"] = u(ks[0], (input_size, H), input_size ** -0.5)
    p["b1"] = u(ks[1], (1, H), input_size ** -0.5)
    p["w2"] = u(ks[2], (H, H), H ** -0.5)
    p["b2"] = u(ks[3], (1, H), H ** -0.5)
    p["w3"] = u(ks[4], (H, H), H ** -0.5)
    p["b3"] = u(ks[5], (1, H), H ** -0.5)
    p["ln_g"] = jnp.ones((1, H), jnp.float32)
    p["ln_b"] = jnp.zeros((1, H), jnp.float32)

    def lstm_dir(k, din):
        k1, k2, k3 = jax.random.split(k, 3)
        s = H ** -0.5
        return (u(k1, (din, 4 * H), s),   # W_ih^T, gate cols (i, f, o, g)
                u(k2, (H, 4 * H), s),     # W_hh^T
                u(k3, (1, 4 * H), s))     # b_ih + b_hh combined

    p["l0_fwd"] = lstm_dir(ks[6], H)
    p["l0_bwd"] = lstm_dir(ks[7], H)
    p["l1_fwd"] = lstm_dir(ks[8], 2 * H)
    p["l1_bwd"] = lstm_dir(ks[9], 2 * H)

    p["wf1"] = u(ks[10], (2 * H, H), (2 * H) ** -0.5)
    p["bf1"] = u(ks[11], (1, H), (2 * H) ** -0.5)
    p["wf2"] = u(ks[12], (H, 1), H ** -0.5)
    p["bf2"] = u(ks[13], (1, 1), H ** -0.5)
    return p


# ---------------------------------------------------------------------------
# pure-JAX f32 reference (correctness check; gate order i, f, o, g)
# ---------------------------------------------------------------------------
def reference_forward(x, p):
    def ln(v):
        mu = v.mean(-1, keepdims=True)
        var = ((v - mu) ** 2).mean(-1, keepdims=True)
        return (v - mu) / jnp.sqrt(var + LN_EPS) * p["ln_g"] + p["ln_b"]

    x1 = ln(jax.nn.relu(x @ p["w1"] + p["b1"]))
    x2 = ln(jax.nn.relu(x1 @ p["w2"] + p["b2"]))
    x3 = ln(jax.nn.relu((x1 + x2) @ p["w3"] + p["b3"]))
    seq = (x2 + x3).transpose(1, 0, 2)                    # (T, B, H)

    def run_dir(xs, wih, whh, b):
        H = whh.shape[0]
        B = xs.shape[1]

        def step(carry, x_t):
            h, c = carry
            gates = x_t @ wih + h @ whh + b
            i = jax.nn.sigmoid(gates[:, :H])
            f = jax.nn.sigmoid(gates[:, H:2 * H])
            o = jax.nn.sigmoid(gates[:, 2 * H:3 * H])
            g = jnp.tanh(gates[:, 3 * H:])
            c = f * c + i * g
            h = o * jnp.tanh(c)
            return (h, c), h

        _, hs = lax.scan(step, (jnp.zeros((B, H)), jnp.zeros((B, H))), xs)
        return hs

    def bilayer(xs, pf, pb):
        hf = run_dir(xs, *pf)
        hb = jnp.flip(run_dir(jnp.flip(xs, 0), *pb), 0)
        return jnp.concatenate([hf, hb], -1)

    l0 = bilayer(seq, p["l0_fwd"], p["l0_bwd"])
    l1 = bilayer(l0, p["l1_fwd"], p["l1_bwd"])
    last = l1[-1]
    h = jax.nn.relu(last @ p["wf1"] + p["bf1"])
    return jax.nn.sigmoid(h @ p["wf2"] + p["bf2"])[:, 0]


if __name__ == "__main__":
    # TODO(synk): dropout layers are identity here (eval-mode semantics).
    key = jax.random.PRNGKey(0)
    kx, kp = jax.random.split(key)
    B, T, D_IN, H = 2, 8, 16, 32
    x = jax.random.normal(kx, (B, T, D_IN), jnp.float32)
    params = init_params(kp, D_IN, H)

    fwd = jax.jit(aron_forward)
    out = jax.block_until_ready(fwd(x, params))
    ref = reference_forward(x, params)

    assert out.shape == (B,), out.shape
    # bf16 matmul operands vs. f32 reference -> loosened tolerance
    assert jnp.allclose(out, ref, atol=2e-2, rtol=2e-2), (out, ref)
    print("KERNEL_OK")
</pallas_src>

<mosaic_0001>
module attributes {stable_mosaic.version = 11 : i64} {
  func.func @mlp_proj_kernel(%arg0: i32, %arg1: memref<64x16xf32, #tpu.memory_space<vmem>>, %arg2: memref<16x32xbf16, #tpu.memory_space<vmem>>, %arg3: memref<1x32xf32, #tpu.memory_space<vmem>>, %arg4: memref<32x32xbf16, #tpu.memory_space<vmem>>, %arg5: memref<1x32xf32, #tpu.memory_space<vmem>>, %arg6: memref<32x32xbf16, #tpu.memory_space<vmem>>, %arg7: memref<1x32xf32, #tpu.memory_space<vmem>>, %arg8: memref<1x32xf32, #tpu.memory_space<vmem>>, %arg9: memref<1x32xf32, #tpu.memory_space<vmem>>, %arg10: memref<32x128xbf16, #tpu.memory_space<vmem>>, %arg11: memref<1x128xf32, #tpu.memory_space<vmem>>, %arg12: memref<32x128xbf16, #tpu.memory_space<vmem>>, %arg13: memref<1x128xf32, #tpu.memory_space<vmem>>, %arg14: memref<64x128xf32, #tpu.memory_space<vmem>>, %arg15: memref<64x128xf32, #tpu.memory_space<vmem>>) attributes {dimension_semantics = [#tpu.dimension_semantics<parallel>], iteration_bounds = array<i64: 1>, scalar_prefetch = 0 : i64, scratch_operands = 0 : i64, tpu.core_type = #tpu.core_type<tc>, window_params = [{transform_indices = @transform_0, window_bounds = array<i64: 64, 16>}, {pipeline_mode = #tpu.pipeline_mode<synchronous>, transform_indices = @transform_1, window_bounds = array<i64: 16, 32>}, {pipeline_mode = #tpu.pipeline_mode<synchronous>, transform_indices = @transform_2, window_bounds = array<i64: 1, 32>}, {pipeline_mode = #tpu.pipeline_mode<synchronous>, transform_indices = @transform_3, window_bounds = array<i64: 32, 32>}, {pipeline_mode = #tpu.pipeline_mode<synchronous>, transform_indices = @transform_4, window_bounds = array<i64: 1, 32>}, {pipeline_mode = #tpu.pipeline_mode<synchronous>, transform_indices = @transform_5, window_bounds = array<i64: 32, 32>}, {pipeline_mode = #tpu.pipeline_mode<synchronous>, transform_indices = @transform_6, window_bounds = array<i64: 1, 32>}, {pipeline_mode = #tpu.pipeline_mode<synchronous>, transform_indices = @transform_7, window_bounds = array<i64: 1, 32>}, {pipeline_mode = #tpu.pipeline_mode<synchronous>, transform_indices = @transform_8, window_bounds = array<i64: 1, 32>}, {pipeline_mode = #tpu.pipeline_mode<synchronous>, transform_indices = @transform_9, window_bounds = array<i64: 32, 128>}, {pipeline_mode = #tpu.pipeline_mode<synchronous>, transform_indices = @transform_10, window_bounds = array<i64: 1, 128>}, {pipeline_mode = #tpu.pipeline_mode<synchronous>, transform_indices = @transform_11, window_bounds = array<i64: 32, 128>}, {pipeline_mode = #tpu.pipeline_mode<synchronous>, transform_indices = @transform_12, window_bounds = array<i64: 1, 128>}, {transform_indices = @transform_13, window_bounds = array<i64: 64, 128>}, {transform_indices = @transform_14, window_bounds = array<i64: 64, 128>}]} {
    %c0 = arith.constant 0 : index
    %c0_0 = arith.constant 0 : index
    %0 = vector.load %arg8[%c0, %c0_0] : memref<1x32xf32, #tpu.memory_space<vmem>>, vector<1x32xf32>
    %c0_1 = arith.constant 0 : index
    %c0_2 = arith.constant 0 : index
    %1 = vector.load %arg9[%c0_1, %c0_2] : memref<1x32xf32, #tpu.memory_space<vmem>>, vector<1x32xf32>
    %c0_3 = arith.constant 0 : index
    %c0_4 = arith.constant 0 : index
    %2 = vector.load %arg1[%c0_3, %c0_4] : memref<64x16xf32, #tpu.memory_space<vmem>>, vector<64x16xf32>
    %3 = arith.truncf %2 : vector<64x16xf32> to vector<64x16xbf16>
    %c0_5 = arith.constant 0 : index
    %c0_6 = arith.constant 0 : index
    %4 = vector.load %arg2[%c0_5, %c0_6] : memref<16x32xbf16, #tpu.memory_space<vmem>>, vector<16x32xbf16>
    %cst = arith.constant dense<0.000000e+00> : vector<64x32xf32>
    %5 = tpu.matmul %3, %4, %cst {dimension_numbers = #tpu.dot_dimension_numbers<[1], [0], [0], [1], [0, 0, 1, 1], [], []>} : vector<64x16xbf16>, vector<16x32xbf16>, vector<64x32xf32> -> vector<64x32xf32>
    %c0_7 = arith.constant 0 : index
    %c0_8 = arith.constant 0 : index
    %6 = vector.load %arg3[%c0_7, %c0_8] : memref<1x32xf32, #tpu.memory_space<vmem>>, vector<1x32xf32>
    %7 = vector.broadcast %6 : vector<1x32xf32> to vector<64x32xf32>
    %8 = arith.addf %5, %7 : vector<64x32xf32>
    %cst_9 = arith.constant 0.000000e+00 : f32
    %9 = vector.broadcast %cst_9 : f32 to vector<64x32xf32>
    %10 = arith.maximumf %8, %9 : vector<64x32xf32>
    %cst_10 = arith.constant dense<0.000000e+00> : vector<64xf32>
    %11 = vector.multi_reduction <add>, %10, %cst_10 [1] : vector<64x32xf32> to vector<64xf32>
    %12 = vector.shape_cast %11 : vector<64xf32> to vector<64x1xf32>
    %cst_11 = arith.constant 3.200000e+01 : f32
    %13 = vector.broadcast %cst_11 : f32 to vector<64x1xf32>
    %14 = arith.divf %12, %13 : vector<64x1xf32>
    %15 = vector.broadcast %14 : vector<64x1xf32> to vector<64x32xf32>
    %16 = arith.subf %10, %15 : vector<64x32xf32>
    %17 = arith.mulf %16, %16 : vector<64x32xf32>
    %cst_12 = arith.constant dense<0.000000e+00> : vector<64xf32>
    %18 = vector.multi_reduction <add>, %17, %cst_12 [1] : vector<64x32xf32> to vector<64xf32>
    %19 = vector.shape_cast %18 : vector<64xf32> to vector<64x1xf32>
    %cst_13 = arith.constant 3.200000e+01 : f32
    %20 = vector.broadcast %cst_13 : f32 to vector<64x1xf32>
    %21 = arith.divf %19, %20 : vector<64x1xf32>
    %22 = vector.broadcast %14 : vector<64x1xf32> to vector<64x32xf32>
    %23 = arith.subf %10, %22 : vector<64x32xf32>
    %cst_14 = arith.constant 9.99999974E-6 : f32
    %24 = vector.broadcast %cst_14 : f32 to vector<64x1xf32>
    %25 = arith.addf %21, %24 : vector<64x1xf32>
    %26 = math.rsqrt %25 : vector<64x1xf32>
    %27 = vector.broadcast %26 : vector<64x1xf32> to vector<64x32xf32>
    %28 = arith.mulf %23, %27 : vector<64x32xf32>
    %29 = vector.broadcast %0 : vector<1x32xf32> to vector<64x32xf32>
    %30 = arith.mulf %28, %29 : vector<64x32xf32>
    %31 = vector.broadcast %1 : vector<1x32xf32> to vector<64x32xf32>
    %32 = arith.addf %30, %31 : vector<64x32xf32>
    %33 = arith.truncf %32 : vector<64x32xf32> to vector<64x32xbf16>
    %c0_15 = arith.constant 0 : index
    %c0_16 = arith.constant 0 : index
    %34 = vector.load %arg4[%c0_15, %c0_16] : memref<32x32xbf16, #tpu.memory_space<vmem>>, vector<32x32xbf16>
    %cst_17 = arith.constant dense<0.000000e+00> : vector<64x32xf32>
    %35 = tpu.matmul %33, %34, %cst_17 {dimension_numbers = #tpu.dot_dimension_numbers<[1], [0], [0], [1], [0, 0, 1, 1], [], []>} : vector<64x32xbf16>, vector<32x32xbf16>, vector<64x32xf32> -> vector<64x32xf32>
    %c0_18 = arith.constant 0 : index
    %c0_19 = arith.constant 0 : index
    %36 = vector.load %arg5[%c0_18, %c0_19] : memref<1x32xf32, #tpu.memory_space<vmem>>, vector<1x32xf32>
    %37 = vector.broadcast %36 : vector<1x32xf32> to vector<64x32xf32>
    %38 = arith.addf %35, %37 : vector<64x32xf32>
    %cst_20 = arith.constant 0.000000e+00 : f32
    %39 = vector.broadcast %cst_20 : f32 to vector<64x32xf32>
    %40 = arith.maximumf %38, %39 : vector<64x32xf32>
    %cst_21 = arith.constant dense<0.000000e+00> : vector<64xf32>
    %41 = vector.multi_reduction <add>, %40, %cst_21 [1] : vector<64x32xf32> to vector<64xf32>
    %42 = vector.shape_cast %41 : vector<64xf32> to vector<64x1xf32>
    %cst_22 = arith.constant 3.200000e+01 : f32
    %43 = vector.broadcast %cst_22 : f32 to vector<64x1xf32>
    %44 = arith.divf %42, %43 : vector<64x1xf32>
    %45 = vector.broadcast %44 : vector<64x1xf32> to vector<64x32xf32>
    %46 = arith.subf %40, %45 : vector<64x32xf32>
    %47 = arith.mulf %46, %46 : vector<64x32xf32>
    %cst_23 = arith.constant dense<0.000000e+00> : vector<64xf32>
    %48 = vector.multi_reduction <add>, %47, %cst_23 [1] : vector<64x32xf32> to vector<64xf32>
    %49 = vector.shape_cast %48 : vector<64xf32> to vector<64x1xf32>
    %cst_24 = arith.constant 3.200000e+01 : f32
    %50 = vector.broadcast %cst_24 : f32 to vector<64x1xf32>
    %51 = arith.divf %49, %50 : vector<64x1xf32>
    %52 = vector.broadcast %44 : vector<64x1xf32> to vector<64x32xf32>
    %53 = arith.subf %40, %52 : vector<64x32xf32>
    %cst_25 = arith.constant 9.99999974E-6 : f32
    %54 = vector.broadcast %cst_25 : f32 to vector<64x1xf32>
    %55 = arith.addf %51, %54 : vector<64x1xf32>
    %56 = math.rsqrt %55 : vector<64x1xf32>
    %57 = vector.broadcast %56 : vector<64x1xf32> to vector<64x32xf32>
    %58 = arith.mulf %53, %57 : vector<64x32xf32>
    %59 = vector.broadcast %0 : vector<1x32xf32> to vector<64x32xf32>
    %60 = arith.mulf %58, %59 : vector<64x32xf32>
    %61 = vector.broadcast %1 : vector<1x32xf32> to vector<64x32xf32>
    %62 = arith.addf %60, %61 : vector<64x32xf32>
    %63 = arith.addf %32, %62 : vector<64x32xf32>
    %64 = arith.truncf %63 : vector<64x32xf32> to vector<64x32xbf16>
    %c0_26 = arith.constant 0 : index
    %c0_27 = arith.constant 0 : index
    %65 = vector.load %arg6[%c0_26, %c0_27] : memref<32x32xbf16, #tpu.memory_space<vmem>>, vector<32x32xbf16>
    %cst_28 = arith.constant dense<0.000000e+00> : vector<64x32xf32>
    %66 = tpu.matmul %64, %65, %cst_28 {dimension_numbers = #tpu.dot_dimension_numbers<[1], [0], [0], [1], [0, 0, 1, 1], [], []>} : vector<64x32xbf16>, vector<32x32xbf16>, vector<64x32xf32> -> vector<64x32xf32>
    %c0_29 = arith.constant 0 : index
    %c0_30 = arith.constant 0 : index
    %67 = vector.load %arg7[%c0_29, %c0_30] : memref<1x32xf32, #tpu.memory_space<vmem>>, vector<1x32xf32>
    %68 = vector.broadcast %67 : vector<1x32xf32> to vector<64x32xf32>
    %69 = arith.addf %66, %68 : vector<64x32xf32>
    %cst_31 = arith.constant 0.000000e+00 : f32
    %70 = vector.broadcast %cst_31 : f32 to vector<64x32xf32>
    %71 = arith.maximumf %69, %70 : vector<64x32xf32>
    %cst_32 = arith.constant dense<0.000000e+00> : vector<64xf32>
    %72 = vector.multi_reduction <add>, %71, %cst_32 [1] : vector<64x32xf32> to vector<64xf32>
    %73 = vector.shape_cast %72 : vector<64xf32> to vector<64x1xf32>
    %cst_33 = arith.constant 3.200000e+01 : f32
    %74 = vector.broadcast %cst_33 : f32 to vector<64x1xf32>
    %75 = arith.divf %73, %74 : vector<64x1xf32>
    %76 = vector.broadcast %75 : vector<64x1xf32> to vector<64x32xf32>
    %77 = arith.subf %71, %76 : vector<64x32xf32>
    %78 = arith.mulf %77, %77 : vector<64x32xf32>
    %cst_34 = arith.constant dense<0.000000e+00> : vector<64xf32>
    %79 = vector.multi_reduction <add>, %78, %cst_34 [1] : vector<64x32xf32> to vector<64xf32>
    %80 = vector.shape_cast %79 : vector<64xf32> to vector<64x1xf32>
    %cst_35 = arith.constant 3.200000e+01 : f32
    %81 = vector.broadcast %cst_35 : f32 to vector<64x1xf32>
    %82 = arith.divf %80, %81 : vector<64x1xf32>
    %83 = vector.broadcast %75 : vector<64x1xf32> to vector<64x32xf32>
    %84 = arith.subf %71, %83 : vector<64x32xf32>
    %cst_36 = arith.constant 9.99999974E-6 : f32
    %85 = vector.broadcast %cst_36 : f32 to vector<64x1xf32>
    %86 = arith.addf %82, %85 : vector<64x1xf32>
    %87 = math.rsqrt %86 : vector<64x1xf32>
    %88 = vector.broadcast %87 : vector<64x1xf32> to vector<64x32xf32>
    %89 = arith.mulf %84, %88 : vector<64x32xf32>
    %90 = vector.broadcast %0 : vector<1x32xf32> to vector<64x32xf32>
    %91 = arith.mulf %89, %90 : vector<64x32xf32>
    %92 = vector.broadcast %1 : vector<1x32xf32> to vector<64x32xf32>
    %93 = arith.addf %91, %92 : vector<64x32xf32>
    %94 = arith.addf %62, %93 : vector<64x32xf32>
    %95 = arith.truncf %94 : vector<64x32xf32> to vector<64x32xbf16>
    %c0_37 = arith.constant 0 : index
    %c0_38 = arith.constant 0 : index
    %96 = vector.load %arg10[%c0_37, %c0_38] : memref<32x128xbf16, #tpu.memory_space<vmem>>, vector<32x128xbf16>
    %cst_39 = arith.constant dense<0.000000e+00> : vector<64x128xf32>
    %97 = tpu.matmul %95, %96, %cst_39 {dimension_numbers = #tpu.dot_dimension_numbers<[1], [0], [0], [1], [0, 0, 1, 1], [], []>} : vector<64x32xbf16>, vector<32x128xbf16>, vector<64x128xf32> -> vector<64x128xf32>
    %c0_40 = arith.constant 0 : index
    %c0_41 = arith.constant 0 : index
    %98 = vector.load %arg11[%c0_40, %c0_41] : memref<1x128xf32, #tpu.memory_space<vmem>>, vector<1x128xf32>
    %99 = vector.broadcast %98 : vector<1x128xf32> to vector<64x128xf32>
    %100 = arith.addf %97, %99 : vector<64x128xf32>
    %c0_42 = arith.constant 0 : index
    %c0_43 = arith.constant 0 : index
    %101 = vector.load %arg14[%c0_42, %c0_43] : memref<64x128xf32, #tpu.memory_space<vmem>>, vector<64x128xf32>
    tpu.vector_store %arg14[%c0_42, %c0_43], %100 {strides = array<i32>} : memref<64x128xf32, #tpu.memory_space<vmem>>, vector<64x128xf32>,
    %c0_44 = arith.constant 0 : index
    %c0_45 = arith.constant 0 : index
    %102 = vector.load %arg12[%c0_44, %c0_45] : memref<32x128xbf16, #tpu.memory_space<vmem>>, vector<32x128xbf16>
    %cst_46 = arith.constant dense<0.000000e+00> : vector<64x128xf32>
    %103 = tpu.matmul %95, %102, %cst_46 {dimension_numbers = #tpu.dot_dimension_numbers<[1], [0], [0], [1], [0, 0, 1, 1], [], []>} : vector<64x32xbf16>, vector<32x128xbf16>, vector<64x128xf32> -> vector<64x128xf32>
    %c0_47 = arith.constant 0 : index
    %c0_48 = arith.constant 0 : index
    %104 = vector.load %arg13[%c0_47, %c0_48] : memref<1x128xf32, #tpu.memory_space<vmem>>, vector<1x128xf32>
    %105 = vector.broadcast %104 : vector<1x128xf32> to vector<64x128xf32>
    %106 = arith.addf %103, %105 : vector<64x128xf32>
    %c0_49 = arith.constant 0 : index
    %c0_50 = arith.constant 0 : index
    %107 = vector.load %arg15[%c0_49, %c0_50] : memref<64x128xf32, #tpu.memory_space<vmem>>, vector<64x128xf32>
    tpu.vector_store %arg15[%c0_49, %c0_50], %106 {strides = array<i32>} : memref<64x128xf32, #tpu.memory_space<vmem>>, vector<64x128xf32>,
    return
  }
  func.func @transform_0(%arg0: i32) -> (i32, i32) {
    %c0_i32 = arith.constant 0 : i32
    %c0_i32_0 = arith.constant 0 : i32
    return %arg0, %c0_i32 : i32, i32
  }
  func.func @transform_1(%arg0: i32) -> (i32, i32) {
    %c0_i32 = arith.constant 0 : i32
    %c0_i32_0 = arith.constant 0 : i32
    %c0_i32_1 = arith.constant 0 : i32
    return %c0_i32, %c0_i32_0 : i32, i32
  }
  func.func @transform_2(%arg0: i32) -> (i32, i32) {
    %c0_i32 = arith.constant 0 : i32
    %c0_i32_0 = arith.constant 0 : i32
    %c0_i32_1 = arith.constant 0 : i32
    return %c0_i32, %c0_i32_0 : i32, i32
  }
  func.func @transform_3(%arg0: i32) -> (i32, i32) {
    %c0_i32 = arith.constant 0 : i32
    %c0_i32_0 = arith.constant 0 : i32
    %c0_i32_1 = arith.constant 0 : i32
    return %c0_i32, %c0_i32_0 : i32, i32
  }
  func.func @transform_4(%arg0: i32) -> (i32, i32) {
    %c0_i32 = arith.constant 0 : i32
    %c0_i32_0 = arith.constant 0 : i32
    %c0_i32_1 = arith.constant 0 : i32
    return %c0_i32, %c0_i32_0 : i32, i32
  }
  func.func @transform_5(%arg0: i32) -> (i32, i32) {
    %c0_i32 = arith.constant 0 : i32
    %c0_i32_0 = arith.constant 0 : i32
    %c0_i32_1 = arith.constant 0 : i32
    return %c0_i32, %c0_i32_0 : i32, i32
  }
  func.func @transform_6(%arg0: i32) -> (i32, i32) {
    %c0_i32 = arith.constant 0 : i32
    %c0_i32_0 = arith.constant 0 : i32
    %c0_i32_1 = arith.constant 0 : i32
    return %c0_i32, %c0_i32_0 : i32, i32
  }
  func.func @transform_7(%arg0: i32) -> (i32, i32) {
    %c0_i32 = arith.constant 0 : i32
    %c0_i32_0 = arith.constant 0 : i32
    %c0_i32_1 = arith.constant 0 : i32
    return %c0_i32, %c0_i32_0 : i32, i32
  }
  func.func @transform_8(%arg0: i32) -> (i32, i32) {
    %c0_i32 = arith.constant 0 : i32
    %c0_i32_0 = arith.constant 0 : i32
    %c0_i32_1 = arith.constant 0 : i32
    return %c0_i32, %c0_i32_0 : i32, i32
  }
  func.func @transform_9(%arg0: i32) -> (i32, i32) {
    %c0_i32 = arith.constant 0 : i32
    %c0_i32_0 = arith.constant 0 : i32
    %c0_i32_1 = arith.constant 0 : i32
    return %c0_i32, %c0_i32_0 : i32, i32
  }
  func.func @transform_10(%arg0: i32) -> (i32, i32) {
    %c0_i32 = arith.constant 0 : i32
    %c0_i32_0 = arith.constant 0 : i32
    %c0_i32_1 = arith.constant 0 : i32
    return %c0_i32, %c0_i32_0 : i32, i32
  }
  func.func @transform_11(%arg0: i32) -> (i32, i32) {
    %c0_i32 = arith.constant 0 : i32
    %c0_i32_0 = arith.constant 0 : i32
    %c0_i32_1 = arith.constant 0 : i32
    return %c0_i32, %c0_i32_0 : i32, i32
  }
  func.func @transform_12(%arg0: i32) -> (i32, i32) {
    %c0_i32 = arith.constant 0 : i32
    %c0_i32_0 = arith.constant 0 : i32
    %c0_i32_1 = arith.constant 0 : i32
    return %c0_i32, %c0_i32_0 : i32, i32
  }
  func.func @transform_13(%arg0: i32) -> (i32, i32) {
    %c0_i32 = arith.constant 0 : i32
    %c0_i32_0 = arith.constant 0 : i32
    return %arg0, %c0_i32 : i32, i32
  }
  func.func @transform_14(%arg0: i32) -> (i32, i32) {
    %c0_i32 = arith.constant 0 : i32
    %c0_i32_0 = arith.constant 0 : i32
    return %arg0, %c0_i32 : i32, i32
  }
}

module attributes {stable_mosaic.version = 11 : i64} {
  func.func @bilstm0_kernel(%arg0: i32, %arg1: memref<64x128xf32, #tpu.memory_space<vmem>>, %arg2: memref<64x128xf32, #tpu.memory_space<vmem>>, %arg3: memref<32x128xbf16, #tpu.memory_space<vmem>>, %arg4: memref<32x128xbf16, #tpu.memory_space<vmem>>, %arg5: memref<64x32xf32, #tpu.memory_space<vmem>>, %arg6: memref<64x32xf32, #tpu.memory_space<vmem>>, %arg7: memref<4x8x32xf32, #tpu.memory_space<vmem>>) attributes {dimension_semantics = [#tpu.dimension_semantics<arbitrary>], iteration_bounds = array<i64: 1>, scalar_prefetch = 0 : i64, scratch_operands = 1 : i64, tpu.core_type = #tpu.core_type<tc>, window_params = [{transform_indices = @transform_0, window_bounds = array<i64: 64, 128>}, {transform_indices = @transform_1, window_bounds = array<i64: 64, 128>}, {pipeline_mode = #tpu.pipeline_mode<synchronous>, transform_indices = @transform_2, window_bounds = array<i64: 32, 128>}, {pipeline_mode = #tpu.pipeline_mode<synchronous>, transform_indices = @transform_3, window_bounds = array<i64: 32, 128>}, {transform_indices = @transform_4, window_bounds = array<i64: 64, 32>}, {transform_indices = @transform_5, window_bounds = array<i64: 64, 32>}]} {
    %c0_i32 = arith.constant 0 : i32
    %0 = arith.cmpi eq, %arg0, %c0_i32 : i32
    %1 = arith.extui %0 : i1 to i32
    %c0_i32_0 = arith.constant 0 : i32
    %2 = arith.cmpi ne, %1, %c0_i32_0 : i32
    scf.if %2 {
      %cst_113 = arith.constant 0.000000e+00 : f32
      %433 = vector.broadcast %cst_113 : f32 to vector<4x8x32xf32>
      %c0_114 = arith.constant 0 : index
      %c0_115 = arith.constant 0 : index
      %c0_116 = arith.constant 0 : index
      %434 = vector.load %arg7[%c0_114, %c0_115, %c0_116] : memref<4x8x32xf32, #tpu.memory_space<vmem>>, vector<4x8x32xf32>
      tpu.vector_store %arg7[%c0_114, %c0_115, %c0_116], %433 {strides = array<i32>} : memref<4x8x32xf32, #tpu.memory_space<vmem>>, vector<4x8x32xf32>,
    } else {
    }
    %c0 = arith.constant 0 : index
    %c0_1 = arith.constant 0 : index
    %3 = vector.load %arg3[%c0, %c0_1] : memref<32x128xbf16, #tpu.memory_space<vmem>>, vector<32x128xbf16>
    %c0_2 = arith.constant 0 : index
    %c0_3 = arith.constant 0 : index
    %4 = vector.load %arg4[%c0_2, %c0_3] : memref<32x128xbf16, #tpu.memory_space<vmem>>, vector<32x128xbf16>
    %c0_4 = arith.constant 0 : index
    %c0_5 = arith.constant 0 : index
    %c0_6 = arith.constant 0 : index
    %5 = vector.load %arg7[%c0_4, %c0_5, %c0_6] : memref<4x8x32xf32, #tpu.memory_space<vmem>>, vector<1x8x32xf32>
    %6 = vector.shape_cast %5 : vector<1x8x32xf32> to vector<8x32xf32>
    %c1 = arith.constant 1 : index
    %c0_7 = arith.constant 0 : index
    %c0_8 = arith.constant 0 : index
    %7 = vector.load %arg7[%c1, %c0_7, %c0_8] : memref<4x8x32xf32, #tpu.memory_space<vmem>>, vector<1x8x32xf32>
    %8 = vector.shape_cast %7 : vector<1x8x32xf32> to vector<8x32xf32>
    %c2 = arith.constant 2 : index
    %c0_9 = arith.constant 0 : index
    %c0_10 = arith.constant 0 : index
    %9 = vector.load %arg7[%c2, %c0_9, %c0_10] : memref<4x8x32xf32, #tpu.memory_space<vmem>>, vector<1x8x32xf32>
    %10 = vector.shape_cast %9 : vector<1x8x32xf32> to vector<8x32xf32>
    %c3 = arith.constant 3 : index
    %c0_11 = arith.constant 0 : index
    %c0_12 = arith.constant 0 : index
    %11 = vector.load %arg7[%c3, %c0_11, %c0_12] : memref<4x8x32xf32, #tpu.memory_space<vmem>>, vector<1x8x32xf32>
    %12 = vector.shape_cast %11 : vector<1x8x32xf32> to vector<8x32xf32>
    %c0_i32_13 = arith.constant 0 : i32
    %c8_i32 = arith.constant 8 : i32
    %13 = arith.muli %c0_i32_13, %c8_i32 : i32
    %14 = tpu.assume_multiple %13, 8 : i32
    %c7_i32 = arith.constant 7 : i32
    %15 = arith.subi %c7_i32, %c0_i32_13 : i32
    %c8_i32_14 = arith.constant 8 : i32
    %16 = arith.muli %15, %c8_i32_14 : i32
    %17 = tpu.assume_multiple %16, 8 : i32
    %18 = arith.index_cast %14 : i32 to index
    %c0_15 = arith.constant 0 : index
    %19 = vector.load %arg1[%18, %c0_15] : memref<64x128xf32, #tpu.memory_space<vmem>>, vector<8x128xf32>
    %20 = arith.truncf %6 : vector<8x32xf32> to vector<8x32xbf16>
    %cst = arith.constant dense<0.000000e+00> : vector<8x128xf32>
    %21 = tpu.matmul %20, %3, %cst {dimension_numbers = #tpu.dot_dimension_numbers<[1], [0], [0], [1], [0, 0, 1, 1], [], []>} : vector<8x32xbf16>, vector<32x128xbf16>, vector<8x128xf32> -> vector<8x128xf32>
    %22 = arith.addf %19, %21 : vector<8x128xf32>
    %23 = arith.index_cast %17 : i32 to index
    %c0_16 = arith.constant 0 : index
    %24 = vector.load %arg2[%23, %c0_16] : memref<64x128xf32, #tpu.memory_space<vmem>>, vector<8x128xf32>
    %25 = arith.truncf %10 : vector<8x32xf32> to vector<8x32xbf16>
    %cst_17 = arith.constant dense<0.000000e+00> : vector<8x128xf32>
    %26 = tpu.matmul %25, %4, %cst_17 {dimension_numbers = #tpu.dot_dimension_numbers<[1], [0], [0], [1], [0, 0, 1, 1], [], []>} : vector<8x32xbf16>, vector<32x128xbf16>, vector<8x128xf32> -> vector<8x128xf32>
    %27 = arith.addf %24, %26 : vector<8x128xf32>
    %28 = vector.extract_strided_slice %22 {offsets = [0, 0], sizes = [8, 96], strides = [1, 1]} : vector<8x128xf32> to vector<8x96xf32>
    %29 = arith.negf %28 : vector<8x96xf32>
    %30 = math.exp %29 : vector<8x96xf32>
    %cst_18 = arith.constant 1.000000e+00 : f32
    %31 = vector.broadcast %cst_18 : f32 to vector<8x96xf32>
    %32 = arith.addf %31, %30 : vector<8x96xf32>
    %33 = arith.divf %31, %32 : vector<8x96xf32>
    %34 = vector.extract_strided_slice %22 {offsets = [0, 96], sizes = [8, 32], strides = [1, 1]} : vector<8x128xf32> to vector<8x32xf32>
    %35 = math.tanh %34 : vector<8x32xf32>
    %36 = vector.extract_strided_slice %33 {offsets = [0, 32], sizes = [8, 32], strides = [1, 1]} : vector<8x96xf32> to vector<8x32xf32>
    %37 = arith.mulf %36, %8 : vector<8x32xf32>
    %38 = vector.extract_strided_slice %33 {offsets = [0, 0], sizes = [8, 32], strides = [1, 1]} : vector<8x96xf32> to vector<8x32xf32>
    %39 = arith.mulf %38, %35 : vector<8x32xf32>
    %40 = arith.addf %37, %39 : vector<8x32xf32>
    %41 = vector.extract_strided_slice %33 {offsets = [0, 64], sizes = [8, 32], strides = [1, 1]} : vector<8x96xf32> to vector<8x32xf32>
    %42 = math.tanh %40 : vector<8x32xf32>
    %43 = arith.mulf %41, %42 : vector<8x32xf32>
    %44 = vector.extract_strided_slice %27 {offsets = [0, 0], sizes = [8, 96], strides = [1, 1]} : vector<8x128xf32> to vector<8x96xf32>
    %45 = arith.negf %44 : vector<8x96xf32>
    %46 = math.exp %45 : vector<8x96xf32>
    %cst_19 = arith.constant 1.000000e+00 : f32
    %47 = vector.broadcast %cst_19 : f32 to vector<8x96xf32>
    %48 = arith.addf %47, %46 : vector<8x96xf32>
    %49 = arith.divf %47, %48 : vector<8x96xf32>
    %50 = vector.extract_strided_slice %27 {offsets = [0, 96], sizes = [8, 32], strides = [1, 1]} : vector<8x128xf32> to vector<8x32xf32>
    %51 = math.tanh %50 : vector<8x32xf32>
    %52 = vector.extract_strided_slice %49 {offsets = [0, 32], sizes = [8, 32], strides = [1, 1]} : vector<8x96xf32> to vector<8x32xf32>
    %53 = arith.mulf %52, %12 : vector<8x32xf32>
    %54 = vector.extract_strided_slice %49 {offsets = [0, 0], sizes = [8, 32], strides = [1, 1]} : vector<8x96xf32> to vector<8x32xf32>
    %55 = arith.mulf %54, %51 : vector<8x32xf32>
    %56 = arith.addf %53, %55 : vector<8x32xf32>
    %57 = vector.extract_strided_slice %49 {offsets = [0, 64], sizes = [8, 32], strides = [1, 1]} : vector<8x96xf32> to vector<8x32xf32>
    %58 = math.tanh %56 : vector<8x32xf32>
    %59 = arith.mulf %57, %58 : vector<8x32xf32>
    %60 = arith.index_cast %14 : i32 to index
    %c0_20 = arith.constant 0 : index
    %61 = vector.load %arg5[%60, %c0_20] : memref<64x32xf32, #tpu.memory_space<vmem>>, vector<8x32xf32>
    tpu.vector_store %arg5[%60, %c0_20], %43 {strides = array<i32>} : memref<64x32xf32, #tpu.memory_space<vmem>>, vector<8x32xf32>,
    %62 = arith.index_cast %17 : i32 to index
    %c0_21 = arith.constant 0 : index
    %63 = vector.load %arg6[%62, %c0_21] : memref<64x32xf32, #tpu.memory_space<vmem>>, vector<8x32xf32>
    tpu.vector_store %arg6[%62, %c0_21], %59 {strides = array<i32>} : memref<64x32xf32, #tpu.memory_space<vmem>>, vector<8x32xf32>,
    %c1_i32 = arith.constant 1 : i32
    %c8_i32_22 = arith.constant 8 : i32
    %64 = arith.muli %c1_i32, %c8_i32_22 : i32
    %65 = tpu.assume_multiple %64, 8 : i32
    %c7_i32_23 = arith.constant 7 : i32
    %66 = arith.subi %c7_i32_23, %c1_i32 : i32
    %c8_i32_24 = arith.constant 8 : i32
    %67 = arith.muli %66, %c8_i32_24 : i32
    %68 = tpu.assume_multiple %67, 8 : i32
    %69 = arith.index_cast %65 : i32 to index
    %c0_25 = arith.constant 0 : index
    %70 = vector.load %arg1[%69, %c0_25] : memref<64x128xf32, #tpu.memory_space<vmem>>, vector<8x128xf32>
    %71 = arith.truncf %43 : vector<8x32xf32> to vector<8x32xbf16>
    %cst_26 = arith.constant dense<0.000000e+00> : vector<8x128xf32>
    %72 = tpu.matmul %71, %3, %cst_26 {dimension_numbers = #tpu.dot_dimension_numbers<[1], [0], [0], [1], [0, 0, 1, 1], [], []>} : vector<8x32xbf16>, vector<32x128xbf16>, vector<8x128xf32> -> vector<8x128xf32>
    %73 = arith.addf %70, %72 : vector<8x128xf32>
    %74 = arith.index_cast %68 : i32 to index
    %c0_27 = arith.constant 0 : index
    %75 = vector.load %arg2[%74, %c0_27] : memref<64x128xf32, #tpu.memory_space<vmem>>, vector<8x128xf32>
    %76 = arith.truncf %59 : vector<8x32xf32> to vector<8x32xbf16>
    %cst_28 = arith.constant dense<0.000000e+00> : vector<8x128xf32>
    %77 = tpu.matmul %76, %4, %cst_28 {dimension_numbers = #tpu.dot_dimension_numbers<[1], [0], [0], [1], [0, 0, 1, 1], [], []>} : vector<8x32xbf16>, vector<32x128xbf16>, vector<8x128xf32> -> vector<8x128xf32>
    %78 = arith.addf %75, %77 : vector<8x128xf32>
    %79 = vector.extract_strided_slice %73 {offsets = [0, 0], sizes = [8, 96], strides = [1, 1]} : vector<8x128xf32> to vector<8x96xf32>
    %80 = arith.negf %79 : vector<8x96xf32>
    %81 = math.exp %80 : vector<8x96xf32>
    %cst_29 = arith.constant 1.000000e+00 : f32
    %82 = vector.broadcast %cst_29 : f32 to vector<8x96xf32>
    %83 = arith.addf %82, %81 : vector<8x96xf32>
    %84 = arith.divf %82, %83 : vector<8x96xf32>
    %85 = vector.extract_strided_slice %73 {offsets = [0, 96], sizes = [8, 32], strides = [1, 1]} : vector<8x128xf32> to vector<8x32xf32>
    %86 = math.tanh %85 : vector<8x32xf32>
    %87 = vector.extract_strided_slice %84 {offsets = [0, 32], sizes = [8, 32], strides = [1, 1]} : vector<8x96xf32> to vector<8x32xf32>
    %88 = arith.mulf %87, %40 : vector<8x32xf32>
    %89 = vector.extract_strided_slice %84 {offsets = [0, 0], sizes = [8, 32], strides = [1, 1]} : vector<8x96xf32> to vector<8x32xf32>
    %90 = arith.mulf %89, %86 : vector<8x32xf32>
    %91 = arith.addf %88, %90 : vector<8x32xf32>
    %92 = vector.extract_strided_slice %84 {offsets = [0, 64], sizes = [8, 32], strides = [1, 1]} : vector<8x96xf32> to vector<8x32xf32>
    %93 = math.tanh %91 : vector<8x32xf32>
    %94 = arith.mulf %92, %93 : vector<8x32xf32>
    %95 = vector.extract_strided_slice %78 {offsets = [0, 0], sizes = [8, 96], strides = [1, 1]} : vector<8x128xf32> to vector<8x96xf32>
    %96 = arith.negf %95 : vector<8x96xf32>
    %97 = math.exp %96 : vector<8x96xf32>
    %cst_30 = arith.constant 1.000000e+00 : f32
    %98 = vector.broadcast %cst_30 : f32 to vector<8x96xf32>
    %99 = arith.addf %98, %97 : vector<8x96xf32>
    %100 = arith.divf %98, %99 : vector<8x96xf32>
    %101 = vector.extract_strided_slice %78 {offsets = [0, 96], sizes = [8, 32], strides = [1, 1]} : vector<8x128xf32> to vector<8x32xf32>
    %102 = math.tanh %101 : vector<8x32xf32>
    %103 = vector.extract_strided_slice %100 {offsets = [0, 32], sizes = [8, 32], strides = [1, 1]} : vector<8x96xf32> to vector<8x32xf32>
    %104 = arith.mulf %103, %56 : vector<8x32xf32>
    %105 = vector.extract_strided_slice %100 {offsets = [0, 0], sizes = [8, 32], strides = [1, 1]} : vector<8x96xf32> to vector<8x32xf32>
    %106 = arith.mulf %105, %102 : vector<8x32xf32>
    %107 = arith.addf %104, %106 : vector<8x32xf32>
    %108 = vector.extract_strided_slice %100 {offsets = [0, 64], sizes = [8, 32], strides = [1, 1]} : vector<8x96xf32> to vector<8x32xf32>
    %109 = math.tanh %107 : vector<8x32xf32>
    %110 = arith.mulf %108, %109 : vector<8x32xf32>
    %111 = arith.index_cast %65 : i32 to index
    %c0_31 = arith.constant 0 : index
    %112 = vector.load %arg5[%111, %c0_31] : memref<64x32xf32, #tpu.memory_space<vmem>>, vector<8x32xf32>
    tpu.vector_store %arg5[%111, %c0_31], %94 {strides = array<i32>} : memref<64x32xf32, #tpu.memory_space<vmem>>, vector<8x32xf32>,
    %113 = arith.index_cast %68 : i32 to index
    %c0_32 = arith.constant 0 : index
    %114 = vector.load %arg6[%113, %c0_32] : memref<64x32xf32, #tpu.memory_space<vmem>>, vector<8x32xf32>
    tpu.vector_store %arg6[%113, %c0_32], %110 {strides = array<i32>} : memref<64x32xf32, #tpu.memory_space<vmem>>, vector<8x32xf32>,
    %c2_i32 = arith.constant 2 : i32
    %c8_i32_33 = arith.constant 8 : i32
    %115 = arith.muli %c2_i32, %c8_i32_33 : i32
    %116 = tpu.assume_multiple %115, 8 : i32
    %c7_i32_34 = arith.constant 7 : i32
    %117 = arith.subi %c7_i32_34, %c2_i32 : i32
    %c8_i32_35 = arith.constant 8 : i32
    %118 = arith.muli %117, %c8_i32_35 : i32
    %119 = tpu.assume_multiple %118, 8 : i32
    %120 = arith.index_cast %116 : i32 to index
    %c0_36 = arith.constant 0 : index
    %121 = vector.load %arg1[%120, %c0_36] : memref<64x128xf32, #tpu.memory_space<vmem>>, vector<8x128xf32>
    %122 = arith.truncf %94 : vector<8x32xf32> to vector<8x32xbf16>
    %cst_37 = arith.constant dense<0.000000e+00> : vector<8x128xf32>
    %123 = tpu.matmul %122, %3, %cst_37 {dimension_numbers = #tpu.dot_dimension_numbers<[1], [0], [0], [1], [0, 0, 1, 1], [], []>} : vector<8x32xbf16>, vector<32x128xbf16>, vector<8x128xf32> -> vector<8x128xf32>
    %124 = arith.addf %121, %123 : vector<8x128xf32>
    %125 = arith.index_cast %119 : i32 to index
    %c0_38 = arith.constant 0 : index
    %126 = vector.load %arg2[%125, %c0_38] : memref<64x128xf32, #tpu.memory_space<vmem>>, vector<8x128xf32>
    %127 = arith.truncf %110 : vector<8x32xf32> to vector<8x32xbf16>
    %cst_39 = arith.constant dense<0.000000e+00> : vector<8x128xf32>
    %128 = tpu.matmul %127, %4, %cst_39 {dimension_numbers = #tpu.dot_dimension_numbers<[1], [0], [0], [1], [0, 0, 1, 1], [], []>} : vector<8x32xbf16>, vector<32x128xbf16>, vector<8x128xf32> -> vector<8x128xf32>
    %129 = arith.addf %126, %128 : vector<8x128xf32>
    %130 = vector.extract_strided_slice %124 {offsets = [0, 0], sizes = [8, 96], strides = [1, 1]} : vector<8x128xf32> to vector<8x96xf32>
    %131 = arith.negf %130 : vector<8x96xf32>
    %132 = math.exp %131 : vector<8x96xf32>
    %cst_40 = arith.constant 1.000000e+00 : f32
    %133 = vector.broadcast %cst_40 : f32 to vector<8x96xf32>
    %134 = arith.addf %133, %132 : vector<8x96xf32>
    %135 = arith.divf %133, %134 : vector<8x96xf32>
    %136 = vector.extract_strided_slice %124 {offsets = [0, 96], sizes = [8, 32], strides = [1, 1]} : vector<8x128xf32> to vector<8x32xf32>
    %137 = math.tanh %136 : vector<8x32xf32>
    %138 = vector.extract_strided_slice %135 {offsets = [0, 32], sizes = [8, 32], strides = [1, 1]} : vector<8x96xf32> to vector<8x32xf32>
    %139 = arith.mulf %138, %91 : vector<8x32xf32>
    %140 = vector.extract_strided_slice %135 {offsets = [0, 0], sizes = [8, 32], strides = [1, 1]} : vector<8x96xf32> to vector<8x32xf32>
    %141 = arith.mulf %140, %137 : vector<8x32xf32>
    %142 = arith.addf %139, %141 : vector<8x32xf32>
    %143 = vector.extract_strided_slice %135 {offsets = [0, 64], sizes = [8, 32], strides = [1, 1]} : vector<8x96xf32> to vector<8x32xf32>
    %144 = math.tanh %142 : vector<8x32xf32>
    %145 = arith.mulf %143, %144 : vector<8x32xf32>
    %146 = vector.extract_strided_slice %129 {offsets = [0, 0], sizes = [8, 96], strides = [1, 1]} : vector<8x128xf32> to vector<8x96xf32>
    %147 = arith.negf %146 : vector<8x96xf32>
    %148 = math.exp %147 : vector<8x96xf32>
    %cst_41 = arith.constant 1.000000e+00 : f32
    %149 = vector.broadcast %cst_41 : f32 to vector<8x96xf32>
    %150 = arith.addf %149, %148 : vector<8x96xf32>
    %151 = arith.divf %149, %150 : vector<8x96xf32>
    %152 = vector.extract_strided_slice %129 {offsets = [0, 96], sizes = [8, 32], strides = [1, 1]} : vector<8x128xf32> to vector<8x32xf32>
    %153 = math.tanh %152 : vector<8x32xf32>
    %154 = vector.extract_strided_slice %151 {offsets = [0, 32], sizes = [8, 32], strides = [1, 1]} : vector<8x96xf32> to vector<8x32xf32>
    %155 = arith.mulf %154, %107 : vector<8x32xf32>
    %156 = vector.extract_strided_slice %151 {offsets = [0, 0], sizes = [8, 32], strides = [1, 1]} : vector<8x96xf32> to vector<8x32xf32>
    %157 = arith.mulf %156, %153 : vector<8x32xf32>
    %158 = arith.addf %155, %157 : vector<8x32xf32>
    %159 = vector.extract_strided_slice %151 {offsets = [0, 64], sizes = [8, 32], strides = [1, 1]} : vector<8x96xf32> to vector<8x32xf32>
    %160 = math.tanh %158 : vector<8x32xf32>
    %161 = arith.mulf %159, %160 : vector<8x32xf32>
    %162 = arith.index_cast %116 : i32 to index
    %c0_42 = arith.constant 0 : index
    %163 = vector.load %arg5[%162, %c0_42] : memref<64x32xf32, #tpu.memory_space<vmem>>, vector<8x32xf32>
    tpu.vector_store %arg5[%162, %c0_42], %145 {strides = array<i32>} : memref<64x32xf32, #tpu.memory_space<vmem>>, vector<8x32xf32>,
    %164 = arith.index_cast %119 : i32 to index
    %c0_43 = arith.constant 0 : index
    %165 = vector.load %arg6[%164, %c0_43] : memref<64x32xf32, #tpu.memory_space<vmem>>, vector<8x32xf32>
    tpu.vector_store %arg6[%164, %c0_43], %161 {strides = array<i32>} : memref<64x32xf32, #tpu.memory_space<vmem>>, vector<8x32xf32>,
    %c3_i32 = arith.constant 3 : i32
    %c8_i32_44 = arith.constant 8 : i32
    %166 = arith.muli %c3_i32, %c8_i32_44 : i32
    %167 = tpu.assume_multiple %166, 8 : i32
    %c7_i32_45 = arith.constant 7 : i32
    %168 = arith.subi %c7_i32_45, %c3_i32 : i32
    %c8_i32_46 = arith.constant 8 : i32
    %169 = arith.muli %168, %c8_i32_46 : i32
    %170 = tpu.assume_multiple %169, 8 : i32
    %171 = arith.index_cast %167 : i32 to index
    %c0_47 = arith.constant 0 : index
    %172 = vector.load %arg1[%171, %c0_47] : memref<64x128xf32, #tpu.memory_space<vmem>>, vector<8x128xf32>
    %173 = arith.truncf %145 : vector<8x32xf32> to vector<8x32xbf16>
    %cst_48 = arith.constant dense<0.000000e+00> : vector<8x128xf32>
    %174 = tpu.matmul %173, %3, %cst_48 {dimension_numbers = #tpu.dot_dimension_numbers<[1], [0], [0], [1], [0, 0, 1, 1], [], []>} : vector<8x32xbf16>, vector<32x128xbf16>, vector<8x128xf32> -> vector<8x128xf32>
    %175 = arith.addf %172, %174 : vector<8x128xf32>
    %176 = arith.index_cast %170 : i32 to index
    %c0_49 = arith.constant 0 : index
    %177 = vector.load %arg2[%176, %c0_49] : memref<64x128xf32, #tpu.memory_space<vmem>>, vector<8x128xf32>
    %178 = arith.truncf %161 : vector<8x32xf32> to vector<8x32xbf16>
    %cst_50 = arith.constant dense<0.000000e+00> : vector<8x128xf32>
    %179 = tpu.matmul %178, %4, %cst_50 {dimension_numbers = #tpu.dot_dimension_numbers<[1], [0], [0], [1], [0, 0, 1, 1], [], []>} : vector<8x32xbf16>, vector<32x128xbf16>, vector<8x128xf32> -> vector<8x128xf32>
    %180 = arith.addf %177, %179 : vector<8x128xf32>
    %181 = vector.extract_strided_slice %175 {offsets = [0, 0], sizes = [8, 96], strides = [1, 1]} : vector<8x128xf32> to vector<8x96xf32>
    %182 = arith.negf %181 : vector<8x96xf32>
    %183 = math.exp %182 : vector<8x96xf32>
    %cst_51 = arith.constant 1.000000e+00 : f32
    %184 = vector.broadcast %cst_51 : f32 to vector<8x96xf32>
    %185 = arith.addf %184, %183 : vector<8x96xf32>
    %186 = arith.divf %184, %185 : vector<8x96xf32>
    %187 = vector.extract_strided_slice %175 {offsets = [0, 96], sizes = [8, 32], strides = [1, 1]} : vector<8x128xf32> to vector<8x32xf32>
    %188 = math.tanh %187 : vector<8x32xf32>
    %189 = vector.extract_strided_slice %186 {offsets = [0, 32], sizes = [8, 32], strides = [1, 1]} : vector<8x96xf32> to vector<8x32xf32>
    %190 = arith.mulf %189, %142 : vector<8x32xf32>
    %191 = vector.extract_strided_slice %186 {offsets = [0, 0], sizes = [8, 32], strides = [1, 1]} : vector<8x96xf32> to vector<8x32xf32>
    %192 = arith.mulf %191, %188 : vector<8x32xf32>
    %193 = arith.addf %190, %192 : vector<8x32xf32>
    %194 = vector.extract_strided_slice %186 {offsets = [0, 64], sizes = [8, 32], strides = [1, 1]} : vector<8x96xf32> to vector<8x32xf32>
    %195 = math.tanh %193 : vector<8x32xf32>
    %196 = arith.mulf %194, %195 : vector<8x32xf32>
    %197 = vector.extract_strided_slice %180 {offsets = [0, 0], sizes = [8, 96], strides = [1, 1]} : vector<8x128xf32> to vector<8x96xf32>
    %198 = arith.negf %197 : vector<8x96xf32>
    %199 = math.exp %198 : vector<8x96xf32>
    %cst_52 = arith.constant 1.000000e+00 : f32
    %200 = vector.broadcast %cst_52 : f32 to vector<8x96xf32>
    %201 = arith.addf %200, %199 : vector<8x96xf32>
    %202 = arith.divf %200, %201 : vector<8x96xf32>
    %203 = vector.extract_strided_slice %180 {offsets = [0, 96], sizes = [8, 32], strides = [1, 1]} : vector<8x128xf32> to vector<8x32xf32>
    %204 = math.tanh %203 : vector<8x32xf32>
    %205 = vector.extract_strided_slice %202 {offsets = [0, 32], sizes = [8, 32], strides = [1, 1]} : vector<8x96xf32> to vector<8x32xf32>
    %206 = arith.mulf %205, %158 : vector<8x32xf32>
    %207 = vector.extract_strided_slice %202 {offsets = [0, 0], sizes = [8, 32], strides = [1, 1]} : vector<8x96xf32> to vector<8x32xf32>
    %208 = arith.mulf %207, %204 : vector<8x32xf32>
    %209 = arith.addf %206, %208 : vector<8x32xf32>
    %210 = vector.extract_strided_slice %202 {offsets = [0, 64], sizes = [8, 32], strides = [1, 1]} : vector<8x96xf32> to vector<8x32xf32>
    %211 = math.tanh %209 : vector<8x32xf32>
    %212 = arith.mulf %210, %211 : vector<8x32xf32>
    %213 = arith.index_cast %167 : i32 to index
    %c0_53 = arith.constant 0 : index
    %214 = vector.load %arg5[%213, %c0_53] : memref<64x32xf32, #tpu.memory_space<vmem>>, vector<8x32xf32>
    tpu.vector_store %arg5[%213, %c0_53], %196 {strides = array<i32>} : memref<64x32xf32, #tpu.memory_space<vmem>>, vector<8x32xf32>,
    %215 = arith.index_cast %170 : i32 to index
    %c0_54 = arith.constant 0 : index
    %216 = vector.load %arg6[%215, %c0_54] : memref<64x32xf32, #tpu.memory_space<vmem>>, vector<8x32xf32>
    tpu.vector_store %arg6[%215, %c0_54], %212 {strides = array<i32>} : memref<64x32xf32, #tpu.memory_space<vmem>>, vector<8x32xf32>,
    %c4_i32 = arith.constant 4 : i32
    %c8_i32_55 = arith.constant 8 : i32
    %217 = arith.muli %c4_i32, %c8_i32_55 : i32
    %218 = tpu.assume_multiple %217, 8 : i32
    %c7_i32_56 = arith.constant 7 : i32
    %219 = arith.subi %c7_i32_56, %c4_i32 : i32
    %c8_i32_57 = arith.constant 8 : i32
    %220 = arith.muli %219, %c8_i32_57 : i32
    %221 = tpu.assume_multiple %220, 8 : i32
    %222 = arith.index_cast %218 : i32 to index
    %c0_58 = arith.constant 0 : index
    %223 = vector.load %arg1[%222, %c0_58] : memref<64x128xf32, #tpu.memory_space<vmem>>, vector<8x128xf32>
    %224 = arith.truncf %196 : vector<8x32xf32> to vector<8x32xbf16>
    %cst_59 = arith.constant dense<0.000000e+00> : vector<8x128xf32>
    %225 = tpu.matmul %224, %3, %cst_59 {dimension_numbers = #tpu.dot_dimension_numbers<[1], [0], [0], [1], [0, 0, 1, 1], [], []>} : vector<8x32xbf16>, vector<32x128xbf16>, vector<8x128xf32> -> vector<8x128xf32>
    %226 = arith.addf %223, %225 : vector<8x128xf32>
    %227 = arith.index_cast %221 : i32 to index
    %c0_60 = arith.constant 0 : index
    %228 = vector.load %arg2[%227, %c0_60] : memref<64x128xf32, #tpu.memory_space<vmem>>, vector<8x128xf32>
    %229 = arith.truncf %212 : vector<8x32xf32> to vector<8x32xbf16>
    %cst_61 = arith.constant dense<0.000000e+00> : vector<8x128xf32>
    %230 = tpu.matmul %229, %4, %cst_61 {dimension_numbers = #tpu.dot_dimension_numbers<[1], [0], [0], [1], [0, 0, 1, 1], [], []>} : vector<8x32xbf16>, vector<32x128xbf16>, vector<8x128xf32> -> vector<8x128xf32>
    %231 = arith.addf %228, %230 : vector<8x128xf32>
    %232 = vector.extract_strided_slice %226 {offsets = [0, 0], sizes = [8, 96], strides = [1, 1]} : vector<8x128xf32> to vector<8x96xf32>
    %233 = arith.negf %232 : vector<8x96xf32>
    %234 = math.exp %233 : vector<8x96xf32>
    %cst_62 = arith.constant 1.000000e+00 : f32
    %235 = vector.broadcast %cst_62 : f32 to vector<8x96xf32>
    %236 = arith.addf %235, %234 : vector<8x96xf32>
    %237 = arith.divf %235, %236 : vector<8x96xf32>
    %238 = vector.extract_strided_slice %226 {offsets = [0, 96], sizes = [8, 32], strides = [1, 1]} : vector<8x128xf32> to vector<8x32xf32>
    %239 = math.tanh %238 : vector<8x32xf32>
    %240 = vector.extract_strided_slice %237 {offsets = [0, 32], sizes = [8, 32], strides = [1, 1]} : vector<8x96xf32> to vector<8x32xf32>
    %241 = arith.mulf %240, %193 : vector<8x32xf32>
    %242 = vector.extract_strided_slice %237 {offsets = [0, 0], sizes = [8, 32], strides = [1, 1]} : vector<8x96xf32> to vector<8x32xf32>
    %243 = arith.mulf %242, %239 : vector<8x32xf32>
    %244 = arith.addf %241, %243 : vector<8x32xf32>
    %245 = vector.extract_strided_slice %237 {offsets = [0, 64], sizes = [8, 32], strides = [1, 1]} : vector<8x96xf32> to vector<8x32xf32>
    %246 = math.tanh %244 : vector<8x32xf32>
    %247 = arith.mulf %245, %246 : vector<8x32xf32>
    %248 = vector.extract_strided_slice %231 {offsets = [0, 0], sizes = [8, 96], strides = [1, 1]} : vector<8x128xf32> to vector<8x96xf32>
    %249 = arith.negf %248 : vector<8x96xf32>
    %250 = math.exp %249 : vector<8x96xf32>
    %cst_63 = arith.constant 1.000000e+00 : f32
    %251 = vector.broadcast %cst_63 : f32 to vector<8x96xf32>
    %252 = arith.addf %251, %250 : vector<8x96xf32>
    %253 = arith.divf %251, %252 : vector<8x96xf32>
    %254 = vector.extract_strided_slice %231 {offsets = [0, 96], sizes = [8, 32], strides = [1, 1]} : vector<8x128xf32> to vector<8x32xf32>
    %255 = math.tanh %254 : vector<8x32xf32>
    %256 = vector.extract_strided_slice %253 {offsets = [0, 32], sizes = [8, 32], strides = [1, 1]} : vector<8x96xf32> to vector<8x32xf32>
    %257 = arith.mulf %256, %209 : vector<8x32xf32>
    %258 = vector.extract_strided_slice %253 {offsets = [0, 0], sizes = [8, 32], strides = [1, 1]} : vector<8x96xf32> to vector<8x32xf32>
    %259 = arith.mulf %258, %255 : vector<8x32xf32>
    %260 = arith.addf %257, %259 : vector<8x32xf32>
    %261 = vector.extract_strided_slice %253 {offsets = [0, 64], sizes = [8, 32], strides = [1, 1]} : vector<8x96xf32> to vector<8x32xf32>
    %262 = math.tanh %260 : vector<8x32xf32>
    %263 = arith.mulf %261, %262 : vector<8x32xf32>
    %264 = arith.index_cast %218 : i32 to index
    %c0_64 = arith.constant 0 : index
    %265 = vector.load %arg5[%264, %c0_64] : memref<64x32xf32, #tpu.memory_space<vmem>>, vector<8x32xf32>
    tpu.vector_store %arg5[%264, %c0_64], %247 {strides = array<i32>} : memref<64x32xf32, #tpu.memory_space<vmem>>, vector<8x32xf32>,
    %266 = arith.index_cast %221 : i32 to index
    %c0_65 = arith.constant 0 : index
    %267 = vector.load %arg6[%266, %c0_65] : memref<64x32xf32, #tpu.memory_space<vmem>>, vector<8x32xf32>
    tpu.vector_store %arg6[%266, %c0_65], %263 {strides = array<i32>} : memref<64x32xf32, #tpu.memory_space<vmem>>, vector<8x32xf32>,
    %c5_i32 = arith.constant 5 : i32
    %c8_i32_66 = arith.constant 8 : i32
    %268 = arith.muli %c5_i32, %c8_i32_66 : i32
    %269 = tpu.assume_multiple %268, 8 : i32
    %c7_i32_67 = arith.constant 7 : i32
    %270 = arith.subi %c7_i32_67, %c5_i32 : i32
    %c8_i32_68 = arith.constant 8 : i32
    %271 = arith.muli %270, %c8_i32_68 : i32
    %272 = tpu.assume_multiple %271, 8 : i32
    %273 = arith.index_cast %269 : i32 to index
    %c0_69 = arith.constant 0 : index
    %274 = vector.load %arg1[%273, %c0_69] : memref<64x128xf32, #tpu.memory_space<vmem>>, vector<8x128xf32>
    %275 = arith.truncf %247 : vector<8x32xf32> to vector<8x32xbf16>
    %cst_70 = arith.constant dense<0.000000e+00> : vector<8x128xf32>
    %276 = tpu.matmul %275, %3, %cst_70 {dimension_numbers = #tpu.dot_dimension_numbers<[1], [0], [0], [1], [0, 0, 1, 1], [], []>} : vector<8x32xbf16>, vector<32x128xbf16>, vector<8x128xf32> -> vector<8x128xf32>
    %277 = arith.addf %274, %276 : vector<8x128xf32>
    %278 = arith.index_cast %272 : i32 to index
    %c0_71 = arith.constant 0 : index
    %279 = vector.load %arg2[%278, %c0_71] : memref<64x128xf32, #tpu.memory_space<vmem>>, vector<8x128xf32>
    %280 = arith.truncf %263 : vector<8x32xf32> to vector<8x32xbf16>
    %cst_72 = arith.constant dense<0.000000e+00> : vector<8x128xf32>
    %281 = tpu.matmul %280, %4, %cst_72 {dimension_numbers = #tpu.dot_dimension_numbers<[1], [0], [0], [1], [0, 0, 1, 1], [], []>} : vector<8x32xbf16>, vector<32x128xbf16>, vector<8x128xf32> -> vector<8x128xf32>
    %282 = arith.addf %279, %281 : vector<8x128xf32>
    %283 = vector.extract_strided_slice %277 {offsets = [0, 0], sizes = [8, 96], strides = [1, 1]} : vector<8x128xf32> to vector<8x96xf32>
    %284 = arith.negf %283 : vector<8x96xf32>
    %285 = math.exp %284 : vector<8x96xf32>
    %cst_73 = arith.constant 1.000000e+00 : f32
    %286 = vector.broadcast %cst_73 : f32 to vector<8x96xf32>
    %287 = arith.addf %286, %285 : vector<8x96xf32>
    %288 = arith.divf %286, %287 : vector<8x96xf32>
    %289 = vector.extract_strided_slice %277 {offsets = [0, 96], sizes = [8, 32], strides = [1, 1]} : vector<8x128xf32> to vector<8x32xf32>
    %290 = math.tanh %289 : vector<8x32xf32>
    %291 = vector.extract_strided_slice %288 {offsets = [0, 32], sizes = [8, 32], strides = [1, 1]} : vector<8x96xf32> to vector<8x32xf32>
    %292 = arith.mulf %291, %244 : vector<8x32xf32>
    %293 = vector.extract_strided_slice %288 {offsets = [0, 0], sizes = [8, 32], strides = [1, 1]} : vector<8x96xf32> to vector<8x32xf32>
    %294 = arith.mulf %293, %290 : vector<8x32xf32>
    %295 = arith.addf %292, %294 : vector<8x32xf32>
    %296 = vector.extract_strided_slice %288 {offsets = [0, 64], sizes = [8, 32], strides = [1, 1]} : vector<8x96xf32> to vector<8x32xf32>
    %297 = math.tanh %295 : vector<8x32xf32>
    %298 = arith.mulf %296, %297 : vector<8x32xf32>
    %299 = vector.extract_strided_slice %282 {offsets = [0, 0], sizes = [8, 96], strides = [1, 1]} : vector<8x128xf32> to vector<8x96xf32>
    %300 = arith.negf %299 : vector<8x96xf32>
    %301 = math.exp %300 : vector<8x96xf32>
    %cst_74 = arith.constant 1.000000e+00 : f32
    %302 = vector.broadcast %cst_74 : f32 to vector<8x96xf32>
    %303 = arith.addf %302, %301 : vector<8x96xf32>
    %304 = arith.divf %302, %303 : vector<8x96xf32>
    %305 = vector.extract_strided_slice %282 {offsets = [0, 96], sizes = [8, 32], strides = [1, 1]} : vector<8x128xf32> to vector<8x32xf32>
    %306 = math.tanh %305 : vector<8x32xf32>
    %307 = vector.extract_strided_slice %304 {offsets = [0, 32], sizes = [8, 32], strides = [1, 1]} : vector<8x96xf32> to vector<8x32xf32>
    %308 = arith.mulf %307, %260 : vector<8x32xf32>
    %309 = vector.extract_strided_slice %304 {offsets = [0, 0], sizes = [8, 32], strides = [1, 1]} : vector<8x96xf32> to vector<8x32xf32>
    %310 = arith.mulf %309, %306 : vector<8x32xf32>
    %311 = arith.addf %308, %310 : vector<8x32xf32>
    %312 = vector.extract_strided_slice %304 {offsets = [0, 64], sizes = [8, 32], strides = [1, 1]} : vector<8x96xf32> to vector<8x32xf32>
    %313 = math.tanh %311 : vector<8x32xf32>
    %314 = arith.mulf %312, %313 : vector<8x32xf32>
    %315 = arith.index_cast %269 : i32 to index
    %c0_75 = arith.constant 0 : index
    %316 = vector.load %arg5[%315, %c0_75] : memref<64x32xf32, #tpu.memory_space<vmem>>, vector<8x32xf32>
    tpu.vector_store %arg5[%315, %c0_75], %298 {strides = array<i32>} : memref<64x32xf32, #tpu.memory_space<vmem>>, vector<8x32xf32>,
    %317 = arith.index_cast %272 : i32 to index
    %c0_76 = arith.constant 0 : index
    %318 = vector.load %arg6[%317, %c0_76] : memref<64x32xf32, #tpu.memory_space<vmem>>, vector<8x32xf32>
    tpu.vector_store %arg6[%317, %c0_76], %314 {strides = array<i32>} : memref<64x32xf32, #tpu.memory_space<vmem>>, vector<8x32xf32>,
    %c6_i32 = arith.constant 6 : i32
    %c8_i32_77 = arith.constant 8 : i32
    %319 = arith.muli %c6_i32, %c8_i32_77 : i32
    %320 = tpu.assume_multiple %319, 8 : i32
    %c7_i32_78 = arith.constant 7 : i32
    %321 = arith.subi %c7_i32_78, %c6_i32 : i32
    %c8_i32_79 = arith.constant 8 : i32
    %322 = arith.muli %321, %c8_i32_79 : i32
    %323 = tpu.assume_multiple %322, 8 : i32
    %324 = arith.index_cast %320 : i32 to index
    %c0_80 = arith.constant 0 : index
    %325 = vector.load %arg1[%324, %c0_80] : memref<64x128xf32, #tpu.memory_space<vmem>>, vector<8x128xf32>
    %326 = arith.truncf %298 : vector<8x32xf32> to vector<8x32xbf16>
    %cst_81 = arith.constant dense<0.000000e+00> : vector<8x128xf32>
    %327 = tpu.matmul %326, %3, %cst_81 {dimension_numbers = #tpu.dot_dimension_numbers<[1], [0], [0], [1], [0, 0, 1, 1], [], []>} : vector<8x32xbf16>, vector<32x128xbf16>, vector<8x128xf32> -> vector<8x128xf32>
    %328 = arith.addf %325, %327 : vector<8x128xf32>
    %329 = arith.index_cast %323 : i32 to index
    %c0_82 = arith.constant 0 : index
    %330 = vector.load %arg2[%329, %c0_82] : memref<64x128xf32, #tpu.memory_space<vmem>>, vector<8x128xf32>
    %331 = arith.truncf %314 : vector<8x32xf32> to vector<8x32xbf16>
    %cst_83 = arith.constant dense<0.000000e+00> : vector<8x128xf32>
    %332 = tpu.matmul %331, %4, %cst_83 {dimension_numbers = #tpu.dot_dimension_numbers<[1], [0], [0], [1], [0, 0, 1, 1], [], []>} : vector<8x32xbf16>, vector<32x128xbf16>, vector<8x128xf32> -> vector<8x128xf32>
    %333 = arith.addf %330, %332 : vector<8x128xf32>
    %334 = vector.extract_strided_slice %328 {offsets = [0, 0], sizes = [8, 96], strides = [1, 1]} : vector<8x128xf32> to vector<8x96xf32>
    %335 = arith.negf %334 : vector<8x96xf32>
    %336 = math.exp %335 : vector<8x96xf32>
    %cst_84 = arith.constant 1.000000e+00 : f32
    %337 = vector.broadcast %cst_84 : f32 to vector<8x96xf32>
    %338 = arith.addf %337, %336 : vector<8x96xf32>
    %339 = arith.divf %337, %338 : vector<8x96xf32>
    %340 = vector.extract_strided_slice %328 {offsets = [0, 96], sizes = [8, 32], strides = [1, 1]} : vector<8x128xf32> to vector<8x32xf32>
    %341 = math.tanh %340 : vector<8x32xf32>
    %342 = vector.extract_strided_slice %339 {offsets = [0, 32], sizes = [8, 32], strides = [1, 1]} : vector<8x96xf32> to vector<8x32xf32>
    %343 = arith.mulf %342, %295 : vector<8x32xf32>
    %344 = vector.extract_strided_slice %339 {offsets = [0, 0], sizes = [8, 32], strides = [1, 1]} : vector<8x96xf32> to vector<8x32xf32>
    %345 = arith.mulf %344, %341 : vector<8x32xf32>
    %346 = arith.addf %343, %345 : vector<8x32xf32>
    %347 = vector.extract_strided_slice %339 {offsets = [0, 64], sizes = [8, 32], strides = [1, 1]} : vector<8x96xf32> to vector<8x32xf32>
    %348 = math.tanh %346 : vector<8x32xf32>
    %349 = arith.mulf %347, %348 : vector<8x32xf32>
    %350 = vector.extract_strided_slice %333 {offsets = [0, 0], sizes = [8, 96], strides = [1, 1]} : vector<8x128xf32> to vector<8x96xf32>
    %351 = arith.negf %350 : vector<8x96xf32>
    %352 = math.exp %351 : vector<8x96xf32>
    %cst_85 = arith.constant 1.000000e+00 : f32
    %353 = vector.broadcast %cst_85 : f32 to vector<8x96xf32>
    %354 = arith.addf %353, %352 : vector<8x96xf32>
    %355 = arith.divf %353, %354 : vector<8x96xf32>
    %356 = vector.extract_strided_slice %333 {offsets = [0, 96], sizes = [8, 32], strides = [1, 1]} : vector<8x128xf32> to vector<8x32xf32>
    %357 = math.tanh %356 : vector<8x32xf32>
    %358 = vector.extract_strided_slice %355 {offsets = [0, 32], sizes = [8, 32], strides = [1, 1]} : vector<8x96xf32> to vector<8x32xf32>
    %359 = arith.mulf %358, %311 : vector<8x32xf32>
    %360 = vector.extract_strided_slice %355 {offsets = [0, 0], sizes = [8, 32], strides = [1, 1]} : vector<8x96xf32> to vector<8x32xf32>
    %361 = arith.mulf %360, %357 : vector<8x32xf32>
    %362 = arith.addf %359, %361 : vector<8x32xf32>
    %363 = vector.extract_strided_slice %355 {offsets = [0, 64], sizes = [8, 32], strides = [1, 1]} : vector<8x96xf32> to vector<8x32xf32>
    %364 = math.tanh %362 : vector<8x32xf32>
    %365 = arith.mulf %363, %364 : vector<8x32xf32>
    %366 = arith.index_cast %320 : i32 to index
    %c0_86 = arith.constant 0 : index
    %367 = vector.load %arg5[%366, %c0_86] : memref<64x32xf32, #tpu.memory_space<vmem>>, vector<8x32xf32>
    tpu.vector_store %arg5[%366, %c0_86], %349 {strides = array<i32>} : memref<64x32xf32, #tpu.memory_space<vmem>>, vector<8x32xf32>,
    %368 = arith.index_cast %323 : i32 to index
    %c0_87 = arith.constant 0 : index
    %369 = vector.load %arg6[%368, %c0_87] : memref<64x32xf32, #tpu.memory_space<vmem>>, vector<8x32xf32>
    tpu.vector_store %arg6[%368, %c0_87], %365 {strides = array<i32>} : memref<64x32xf32, #tpu.memory_space<vmem>>, vector<8x32xf32>,
    %c7_i32_88 = arith.constant 7 : i32
    %c8_i32_89 = arith.constant 8 : i32
    %370 = arith.muli %c7_i32_88, %c8_i32_89 : i32
    %371 = tpu.assume_multiple %370, 8 : i32
    %c7_i32_90 = arith.constant 7 : i32
    %372 = arith.subi %c7_i32_90, %c7_i32_88 : i32
    %c8_i32_91 = arith.constant 8 : i32
    %373 = arith.muli %372, %c8_i32_91 : i32
    %374 = tpu.assume_multiple %373, 8 : i32
    %375 = arith.index_cast %371 : i32 to index
    %c0_92 = arith.constant 0 : index
    %376 = vector.load %arg1[%375, %c0_92] : memref<64x128xf32, #tpu.memory_space<vmem>>, vector<8x128xf32>
    %377 = arith.truncf %349 : vector<8x32xf32> to vector<8x32xbf16>
    %cst_93 = arith.constant dense<0.000000e+00> : vector<8x128xf32>
    %378 = tpu.matmul %377, %3, %cst_93 {dimension_numbers = #tpu.dot_dimension_numbers<[1], [0], [0], [1], [0, 0, 1, 1], [], []>} : vector<8x32xbf16>, vector<32x128xbf16>, vector<8x128xf32> -> vector<8x128xf32>
    %379 = arith.addf %376, %378 : vector<8x128xf32>
    %380 = arith.index_cast %374 : i32 to index
    %c0_94 = arith.constant 0 : index
    %381 = vector.load %arg2[%380, %c0_94] : memref<64x128xf32, #tpu.memory_space<vmem>>, vector<8x128xf32>
    %382 = arith.truncf %365 : vector<8x32xf32> to vector<8x32xbf16>
    %cst_95 = arith.constant dense<0.000000e+00> : vector<8x128xf32>
    %383 = tpu.matmul %382, %4, %cst_95 {dimension_numbers = #tpu.dot_dimension_numbers<[1], [0], [0], [1], [0, 0, 1, 1], [], []>} : vector<8x32xbf16>, vector<32x128xbf16>, vector<8x128xf32> -> vector<8x128xf32>
    %384 = arith.addf %381, %383 : vector<8x128xf32>
    %385 = vector.extract_strided_slice %379 {offsets = [0, 0], sizes = [8, 96], strides = [1, 1]} : vector<8x128xf32> to vector<8x96xf32>
    %386 = arith.negf %385 : vector<8x96xf32>
    %387 = math.exp %386 : vector<8x96xf32>
    %cst_96 = arith.constant 1.000000e+00 : f32
    %388 = vector.broadcast %cst_96 : f32 to vector<8x96xf32>
    %389 = arith.addf %388, %387 : vector<8x96xf32>
    %390 = arith.divf %388, %389 : vector<8x96xf32>
    %391 = vector.extract_strided_slice %379 {offsets = [0, 96], sizes = [8, 32], strides = [1, 1]} : vector<8x128xf32> to vector<8x32xf32>
    %392 = math.tanh %391 : vector<8x32xf32>
    %393 = vector.extract_strided_slice %390 {offsets = [0, 32], sizes = [8, 32], strides = [1, 1]} : vector<8x96xf32> to vector<8x32xf32>
    %394 = arith.mulf %393, %346 : vector<8x32xf32>
    %395 = vector.extract_strided_slice %390 {offsets = [0, 0], sizes = [8, 32], strides = [1, 1]} : vector<8x96xf32> to vector<8x32xf32>
    %396 = arith.mulf %395, %392 : vector<8x32xf32>
    %397 = arith.addf %394, %396 : vector<8x32xf32>
    %398 = vector.extract_strided_slice %390 {offsets = [0, 64], sizes = [8, 32], strides = [1, 1]} : vector<8x96xf32> to vector<8x32xf32>
    %399 = math.tanh %397 : vector<8x32xf32>
    %400 = arith.mulf %398, %399 : vector<8x32xf32>
    %401 = vector.extract_strided_slice %384 {offsets = [0, 0], sizes = [8, 96], strides = [1, 1]} : vector<8x128xf32> to vector<8x96xf32>
    %402 = arith.negf %401 : vector<8x96xf32>
    %403 = math.exp %402 : vector<8x96xf32>
    %cst_97 = arith.constant 1.000000e+00 : f32
    %404 = vector.broadcast %cst_97 : f32 to vector<8x96xf32>
    %405 = arith.addf %404, %403 : vector<8x96xf32>
    %406 = arith.divf %404, %405 : vector<8x96xf32>
    %407 = vector.extract_strided_slice %384 {offsets = [0, 96], sizes = [8, 32], strides = [1, 1]} : vector<8x128xf32> to vector<8x32xf32>
    %408 = math.tanh %407 : vector<8x32xf32>
    %409 = vector.extract_strided_slice %406 {offsets = [0, 32], sizes = [8, 32], strides = [1, 1]} : vector<8x96xf32> to vector<8x32xf32>
    %410 = arith.mulf %409, %362 : vector<8x32xf32>
    %411 = vector.extract_strided_slice %406 {offsets = [0, 0], sizes = [8, 32], strides = [1, 1]} : vector<8x96xf32> to vector<8x32xf32>
    %412 = arith.mulf %411, %408 : vector<8x32xf32>
    %413 = arith.addf %410, %412 : vector<8x32xf32>
    %414 = vector.extract_strided_slice %406 {offsets = [0, 64], sizes = [8, 32], strides = [1, 1]} : vector<8x96xf32> to vector<8x32xf32>
    %415 = math.tanh %413 : vector<8x32xf32>
    %416 = arith.mulf %414, %415 : vector<8x32xf32>
    %417 = arith.index_cast %371 : i32 to index
    %c0_98 = arith.constant 0 : index
    %418 = vector.load %arg5[%417, %c0_98] : memref<64x32xf32, #tpu.memory_space<vmem>>, vector<8x32xf32>
    tpu.vector_store %arg5[%417, %c0_98], %400 {strides = array<i32>} : memref<64x32xf32, #tpu.memory_space<vmem>>, vector<8x32xf32>,
    %419 = arith.index_cast %374 : i32 to index
    %c0_99 = arith.constant 0 : index
    %420 = vector.load %arg6[%419, %c0_99] : memref<64x32xf32, #tpu.memory_space<vmem>>, vector<8x32xf32>
    tpu.vector_store %arg6[%419, %c0_99], %416 {strides = array<i32>} : memref<64x32xf32, #tpu.memory_space<vmem>>, vector<8x32xf32>,
    %c8_i32_100 = arith.constant 8 : i32
    %c0_101 = arith.constant 0 : index
    %c0_102 = arith.constant 0 : index
    %c0_103 = arith.constant 0 : index
    %421 = vector.load %arg7[%c0_101, %c0_102, %c0_103] : memref<4x8x32xf32, #tpu.memory_space<vmem>>, vector<1x8x32xf32>
    %422 = vector.shape_cast %421 : vector<1x8x32xf32> to vector<8x32xf32>
    %423 = vector.shape_cast %400 : vector<8x32xf32> to vector<1x8x32xf32>
    tpu.vector_store %arg7[%c0_101, %c0_102, %c0_103], %423 {strides = array<i32>} : memref<4x8x32xf32, #tpu.memory_space<vmem>>, vector<1x8x32xf32>,
    %c1_104 = arith.constant 1 : index
    %c0_105 = arith.constant 0 : index
    %c0_106 = arith.constant 0 : index
    %424 = vector.load %arg7[%c1_104, %c0_105, %c0_106] : memref<4x8x32xf32, #tpu.memory_space<vmem>>, vector<1x8x32xf32>
    %425 = vector.shape_cast %424 : vector<1x8x32xf32> to vector<8x32xf32>
    %426 = vector.shape_cast %397 : vector<8x32xf32> to vector<1x8x32xf32>
    tpu.vector_store %arg7[%c1_104, %c0_105, %c0_106], %426 {strides = array<i32>} : memref<4x8x32xf32, #tpu.memory_space<vmem>>, vector<1x8x32xf32>,
    %c2_107 = arith.constant 2 : index
    %c0_108 = arith.constant 0 : index
    %c0_109 = arith.constant 0 : index
    %427 = vector.load %arg7[%c2_107, %c0_108, %c0_109] : memref<4x8x32xf32, #tpu.memory_space<vmem>>, vector<1x8x32xf32>
    %428 = vector.shape_cast %427 : vector<1x8x32xf32> to vector<8x32xf32>
    %429 = vector.shape_cast %416 : vector<8x32xf32> to vector<1x8x32xf32>
    tpu.vector_store %arg7[%c2_107, %c0_108, %c0_109], %429 {strides = array<i32>} : memref<4x8x32xf32, #tpu.memory_space<vmem>>, vector<1x8x32xf32>,
    %c3_110 = arith.constant 3 : index
    %c0_111 = arith.constant 0 : index
    %c0_112 = arith.constant 0 : index
    %430 = vector.load %arg7[%c3_110, %c0_111, %c0_112] : memref<4x8x32xf32, #tpu.memory_space<vmem>>, vector<1x8x32xf32>
    %431 = vector.shape_cast %430 : vector<1x8x32xf32> to vector<8x32xf32>
    %432 = vector.shape_cast %413 : vector<8x32xf32> to vector<1x8x32xf32>
    tpu.vector_store %arg7[%c3_110, %c0_111, %c0_112], %432 {strides = array<i32>} : memref<4x8x32xf32, #tpu.memory_space<vmem>>, vector<1x8x32xf32>,
    return
  }
  func.func @transform_0(%arg0: i32) -> (i32, i32) {
    %c0_i32 = arith.constant 0 : i32
    %c0_i32_0 = arith.constant 0 : i32
    return %arg0, %c0_i32 : i32, i32
  }
  func.func @transform_1(%arg0: i32) -> (i32, i32) {
    %c0_i32 = arith.constant 0 : i32
    %0 = arith.subi %c0_i32, %arg0 : i32
    %c0_i32_0 = arith.constant 0 : i32
    %c0_i32_1 = arith.constant 0 : i32
    return %0, %c0_i32_0 : i32, i32
  }
  func.func @transform_2(%arg0: i32) -> (i32, i32) {
    %c0_i32 = arith.constant 0 : i32
    %c0_i32_0 = arith.constant 0 : i32
    %c0_i32_1 = arith.constant 0 : i32
    return %c0_i32, %c0_i32_0 : i32, i32
  }
  func.func @transform_3(%arg0: i32) -> (i32, i32) {
    %c0_i32 = arith.constant 0 : i32
    %c0_i32_0 = arith.constant 0 : i32
    %c0_i32_1 = arith.constant 0 : i32
    return %c0_i32, %c0_i32_0 : i32, i32
  }
  func.func @transform_4(%arg0: i32) -> (i32, i32) {
    %c0_i32 = arith.constant 0 : i32
    %c0_i32_0 = arith.constant 0 : i32
    return %arg0, %c0_i32 : i32, i32
  }
  func.func @transform_5(%arg0: i32) -> (i32, i32) {
    %c0_i32 = arith.constant 0 : i32
    %0 = arith.subi %c0_i32, %arg0 : i32
    %c0_i32_0 = arith.constant 0 : i32
    %c0_i32_1 = arith.constant 0 : i32
    return %0, %c0_i32_0 : i32, i32
  }
}

module attributes {stable_mosaic.version = 11 : i64} {
  func.func @bilstm1_head_kernel(%arg0: i32, %arg1: memref<64x32xf32, #tpu.memory_space<vmem>>, %arg2: memref<64x32xf32, #tpu.memory_space<vmem>>, %arg3: memref<32x128xbf16, #tpu.memory_space<vmem>>, %arg4: memref<32x128xbf16, #tpu.memory_space<vmem>>, %arg5: memref<1x128xf32, #tpu.memory_space<vmem>>, %arg6: memref<32x128xbf16, #tpu.memory_space<vmem>>, %arg7: memref<32x128xbf16, #tpu.memory_space<vmem>>, %arg8: memref<32x128xbf16, #tpu.memory_space<vmem>>, %arg9: memref<1x128xf32, #tpu.memory_space<vmem>>, %arg10: memref<32x32xbf16, #tpu.memory_space<vmem>>, %arg11: memref<32x32xbf16, #tpu.memory_space<vmem>>, %arg12: memref<1x32xf32, #tpu.memory_space<vmem>>, %arg13: memref<32x128xbf16, #tpu.memory_space<vmem>>, %arg14: memref<1x128xf32, #tpu.memory_space<vmem>>, %arg15: memref<8x128xf32, #tpu.memory_space<vmem>>, %arg16: memref<64x128xf32, #tpu.memory_space<vmem>>, %arg17: memref<8x32xf32, #tpu.memory_space<vmem>>, %arg18: memref<8x32xf32, #tpu.memory_space<vmem>>) attributes {dimension_semantics = [#tpu.dimension_semantics<arbitrary>], iteration_bounds = array<i64: 1>, scalar_prefetch = 0 : i64, scratch_operands = 3 : i64, tpu.core_type = #tpu.core_type<tc>, window_params = [{transform_indices = @transform_0, window_bounds = array<i64: 64, 32>}, {transform_indices = @transform_1, window_bounds = array<i64: 64, 32>}, {pipeline_mode = #tpu.pipeline_mode<synchronous>, transform_indices = @transform_2, window_bounds = array<i64: 32, 128>}, {pipeline_mode = #tpu.pipeline_mode<synchronous>, transform_indices = @transform_3, window_bounds = array<i64: 32, 128>}, {pipeline_mode = #tpu.pipeline_mode<synchronous>, transform_indices = @transform_4, window_bounds = array<i64: 1, 128>}, {pipeline_mode = #tpu.pipeline_mode<synchronous>, transform_indices = @transform_5, window_bounds = array<i64: 32, 128>}, {pipeline_mode = #tpu.pipeline_mode<synchronous>, transform_indices = @transform_6, window_bounds = array<i64: 32, 128>}, {pipeline_mode = #tpu.pipeline_mode<synchronous>, transform_indices = @transform_7, window_bounds = array<i64: 32, 128>}, {pipeline_mode = #tpu.pipeline_mode<synchronous>, transform_indices = @transform_8, window_bounds = array<i64: 1, 128>}, {pipeline_mode = #tpu.pipeline_mode<synchronous>, transform_indices = @transform_9, window_bounds = array<i64: 32, 32>}, {pipeline_mode = #tpu.pipeline_mode<synchronous>, transform_indices = @transform_10, window_bounds = array<i64: 32, 32>}, {pipeline_mode = #tpu.pipeline_mode<synchronous>, transform_indices = @transform_11, window_bounds = array<i64: 1, 32>}, {pipeline_mode = #tpu.pipeline_mode<synchronous>, transform_indices = @transform_12, window_bounds = array<i64: 32, 128>}, {pipeline_mode = #tpu.pipeline_mode<synchronous>, transform_indices = @transform_13, window_bounds = array<i64: 1, 128>}, {pipeline_mode = #tpu.pipeline_mode<synchronous>, transform_indices = @transform_14, window_bounds = array<i64: 8, 128>}]} {
    %c0_i32 = arith.constant 0 : i32
    %0 = arith.cmpi eq, %arg0, %c0_i32 : i32
    %1 = arith.extui %0 : i1 to i32
    %c0_i32_0 = arith.constant 0 : i32
    %2 = arith.cmpi ne, %1, %c0_i32_0 : i32
    scf.if %2 {
      %cst_58 = arith.constant 0.000000e+00 : f32
      %208 = vector.broadcast %cst_58 : f32 to vector<8x32xf32>
      %c0_59 = arith.constant 0 : index
      %c0_60 = arith.constant 0 : index
      %209 = vector.load %arg17[%c0_59, %c0_60] : memref<8x32xf32, #tpu.memory_space<vmem>>, vector<8x32xf32>
      tpu.vector_store %arg17[%c0_59, %c0_60], %208 {strides = array<i32>} : memref<8x32xf32, #tpu.memory_space<vmem>>, vector<8x32xf32>,
      %cst_61 = arith.constant 0.000000e+00 : f32
      %210 = vector.broadcast %cst_61 : f32 to vector<8x32xf32>
      %c0_62 = arith.constant 0 : index
      %c0_63 = arith.constant 0 : index
      %211 = vector.load %arg18[%c0_62, %c0_63] : memref<8x32xf32, #tpu.memory_space<vmem>>, vector<8x32xf32>
      tpu.vector_store %arg18[%c0_62, %c0_63], %210 {strides = array<i32>} : memref<8x32xf32, #tpu.memory_space<vmem>>, vector<8x32xf32>,
    } else {
    }
    %c0 = arith.constant 0 : index
    %c0_1 = arith.constant 0 : index
    %3 = vector.load %arg1[%c0, %c0_1] : memref<64x32xf32, #tpu.memory_space<vmem>>, vector<64x32xf32>
    %4 = arith.truncf %3 : vector<64x32xf32> to vector<64x32xbf16>
    %c0_2 = arith.constant 0 : index
    %c0_3 = arith.constant 0 : index
    %5 = vector.load %arg2[%c0_2, %c0_3] : memref<64x32xf32, #tpu.memory_space<vmem>>, vector<64x32xf32>
    %6 = arith.truncf %5 : vector<64x32xf32> to vector<64x32xbf16>
    %c0_4 = arith.constant 0 : index
    %c0_5 = arith.constant 0 : index
    %7 = vector.load %arg3[%c0_4, %c0_5] : memref<32x128xbf16, #tpu.memory_space<vmem>>, vector<32x128xbf16>
    %cst = arith.constant dense<0.000000e+00> : vector<64x128xf32>
    %8 = tpu.matmul %4, %7, %cst {dimension_numbers = #tpu.dot_dimension_numbers<[1], [0], [0], [1], [0, 0, 1, 1], [], []>} : vector<64x32xbf16>, vector<32x128xbf16>, vector<64x128xf32> -> vector<64x128xf32>
    %c0_6 = arith.constant 0 : index
    %c0_7 = arith.constant 0 : index
    %9 = vector.load %arg4[%c0_6, %c0_7] : memref<32x128xbf16, #tpu.memory_space<vmem>>, vector<32x128xbf16>
    %cst_8 = arith.constant dense<0.000000e+00> : vector<64x128xf32>
    %10 = tpu.matmul %6, %9, %cst_8 {dimension_numbers = #tpu.dot_dimension_numbers<[1], [0], [0], [1], [0, 0, 1, 1], [], []>} : vector<64x32xbf16>, vector<32x128xbf16>, vector<64x128xf32> -> vector<64x128xf32>
    %11 = arith.addf %8, %10 : vector<64x128xf32>
    %c0_9 = arith.constant 0 : index
    %c0_10 = arith.constant 0 : index
    %12 = vector.load %arg5[%c0_9, %c0_10] : memref<1x128xf32, #tpu.memory_space<vmem>>, vector<1x128xf32>
    %13 = vector.broadcast %12 : vector<1x128xf32> to vector<64x128xf32>
    %14 = arith.addf %11, %13 : vector<64x128xf32>
    %c0_11 = arith.constant 0 : index
    %c0_12 = arith.constant 0 : index
    %15 = vector.load %arg16[%c0_11, %c0_12] : memref<64x128xf32, #tpu.memory_space<vmem>>, vector<64x128xf32>
    tpu.vector_store %arg16[%c0_11, %c0_12], %14 {strides = array<i32>} : memref<64x128xf32, #tpu.memory_space<vmem>>, vector<64x128xf32>,
    %c0_13 = arith.constant 0 : index
    %c0_14 = arith.constant 0 : index
    %16 = vector.load %arg6[%c0_13, %c0_14] : memref<32x128xbf16, #tpu.memory_space<vmem>>, vector<32x128xbf16>
    %c0_15 = arith.constant 0 : index
    %c0_16 = arith.constant 0 : index
    %17 = vector.load %arg17[%c0_15, %c0_16] : memref<8x32xf32, #tpu.memory_space<vmem>>, vector<8x32xf32>
    %c0_17 = arith.constant 0 : index
    %c0_18 = arith.constant 0 : index
    %18 = vector.load %arg18[%c0_17, %c0_18] : memref<8x32xf32, #tpu.memory_space<vmem>>, vector<8x32xf32>
    %c0_i32_19 = arith.constant 0 : i32
    %c8_i32 = arith.constant 8 : i32
    %19 = arith.muli %c0_i32_19, %c8_i32 : i32
    %20 = tpu.assume_multiple %19, 8 : i32
    %21 = arith.index_cast %20 : i32 to index
    %c0_20 = arith.constant 0 : index
    %22 = vector.load %arg16[%21, %c0_20] : memref<64x128xf32, #tpu.memory_space<vmem>>, vector<8x128xf32>
    %23 = arith.truncf %17 : vector<8x32xf32> to vector<8x32xbf16>
    %cst_21 = arith.constant dense<0.000000e+00> : vector<8x128xf32>
    %24 = tpu.matmul %23, %16, %cst_21 {dimension_numbers = #tpu.dot_dimension_numbers<[1], [0], [0], [1], [0, 0, 1, 1], [], []>} : vector<8x32xbf16>, vector<32x128xbf16>, vector<8x128xf32> -> vector<8x128xf32>
    %25 = arith.addf %22, %24 : vector<8x128xf32>
    %26 = vector.extract_strided_slice %25 {offsets = [0, 0], sizes = [8, 96], strides = [1, 1]} : vector<8x128xf32> to vector<8x96xf32>
    %27 = arith.negf %26 : vector<8x96xf32>
    %28 = math.exp %27 : vector<8x96xf32>
    %cst_22 = arith.constant 1.000000e+00 : f32
    %29 = vector.broadcast %cst_22 : f32 to vector<8x96xf32>
    %30 = arith.addf %29, %28 : vector<8x96xf32>
    %31 = arith.divf %29, %30 : vector<8x96xf32>
    %32 = vector.extract_strided_slice %25 {offsets = [0, 96], sizes = [8, 32], strides = [1, 1]} : vector<8x128xf32> to vector<8x32xf32>
    %33 = math.tanh %32 : vector<8x32xf32>
    %34 = vector.extract_strided_slice %31 {offsets = [0, 32], sizes = [8, 32], strides = [1, 1]} : vector<8x96xf32> to vector<8x32xf32>
    %35 = arith.mulf %34, %18 : vector<8x32xf32>
    %36 = vector.extract_strided_slice %31 {offsets = [0, 0], sizes = [8, 32], strides = [1, 1]} : vector<8x96xf32> to vector<8x32xf32>
    %37 = arith.mulf %36, %33 : vector<8x32xf32>
    %38 = arith.addf %35, %37 : vector<8x32xf32>
    %39 = vector.extract_strided_slice %31 {offsets = [0, 64], sizes = [8, 32], strides = [1, 1]} : vector<8x96xf32> to vector<8x32xf32>
    %40 = math.tanh %38 : vector<8x32xf32>
    %41 = arith.mulf %39, %40 : vector<8x32xf32>
    %c1_i32 = arith.constant 1 : i32
    %c8_i32_23 = arith.constant 8 : i32
    %42 = arith.muli %c1_i32, %c8_i32_23 : i32
    %43 = tpu.assume_multiple %42, 8 : i32
    %44 = arith.index_cast %43 : i32 to index
    %c0_24 = arith.constant 0 : index
    %45 = vector.load %arg16[%44, %c0_24] : memref<64x128xf32, #tpu.memory_space<vmem>>, vector<8x128xf32>
    %46 = arith.truncf %41 : vector<8x32xf32> to vector<8x32xbf16>
    %cst_25 = arith.constant dense<0.000000e+00> : vector<8x128xf32>
    %47 = tpu.matmul %46, %16, %cst_25 {dimension_numbers = #tpu.dot_dimension_numbers<[1], [0], [0], [1], [0, 0, 1, 1], [], []>} : vector<8x32xbf16>, vector<32x128xbf16>, vector<8x128xf32> -> vector<8x128xf32>
    %48 = arith.addf %45, %47 : vector<8x128xf32>
    %49 = vector.extract_strided_slice %48 {offsets = [0, 0], sizes = [8, 96], strides = [1, 1]} : vector<8x128xf32> to vector<8x96xf32>
    %50 = arith.negf %49 : vector<8x96xf32>
    %51 = math.exp %50 : vector<8x96xf32>
    %cst_26 = arith.constant 1.000000e+00 : f32
    %52 = vector.broadcast %cst_26 : f32 to vector<8x96xf32>
    %53 = arith.addf %52, %51 : vector<8x96xf32>
    %54 = arith.divf %52, %53 : vector<8x96xf32>
    %55 = vector.extract_strided_slice %48 {offsets = [0, 96], sizes = [8, 32], strides = [1, 1]} : vector<8x128xf32> to vector<8x32xf32>
    %56 = math.tanh %55 : vector<8x32xf32>
    %57 = vector.extract_strided_slice %54 {offsets = [0, 32], sizes = [8, 32], strides = [1, 1]} : vector<8x96xf32> to vector<8x32xf32>
    %58 = arith.mulf %57, %38 : vector<8x32xf32>
    %59 = vector.extract_strided_slice %54 {offsets = [0, 0], sizes = [8, 32], strides = [1, 1]} : vector<8x96xf32> to vector<8x32xf32>
    %60 = arith.mulf %59, %56 : vector<8x32xf32>
    %61 = arith.addf %58, %60 : vector<8x32xf32>
    %62 = vector.extract_strided_slice %54 {offsets = [0, 64], sizes = [8, 32], strides = [1, 1]} : vector<8x96xf32> to vector<8x32xf32>
    %63 = math.tanh %61 : vector<8x32xf32>
    %64 = arith.mulf %62, %63 : vector<8x32xf32>
    %c2_i32 = arith.constant 2 : i32
    %c8_i32_27 = arith.constant 8 : i32
    %65 = arith.muli %c2_i32, %c8_i32_27 : i32
    %66 = tpu.assume_multiple %65, 8 : i32
    %67 = arith.index_cast %66 : i32 to index
    %c0_28 = arith.constant 0 : index
    %68 = vector.load %arg16[%67, %c0_28] : memref<64x128xf32, #tpu.memory_space<vmem>>, vector<8x128xf32>
    %69 = arith.truncf %64 : vector<8x32xf32> to vector<8x32xbf16>
    %cst_29 = arith.constant dense<0.000000e+00> : vector<8x128xf32>
    %70 = tpu.matmul %69, %16, %cst_29 {dimension_numbers = #tpu.dot_dimension_numbers<[1], [0], [0], [1], [0, 0, 1, 1], [], []>} : vector<8x32xbf16>, vector<32x128xbf16>, vector<8x128xf32> -> vector<8x128xf32>
    %71 = arith.addf %68, %70 : vector<8x128xf32>
    %72 = vector.extract_strided_slice %71 {offsets = [0, 0], sizes = [8, 96], strides = [1, 1]} : vector<8x128xf32> to vector<8x96xf32>
    %73 = arith.negf %72 : vector<8x96xf32>
    %74 = math.exp %73 : vector<8x96xf32>
    %cst_30 = arith.constant 1.000000e+00 : f32
    %75 = vector.broadcast %cst_30 : f32 to vector<8x96xf32>
    %76 = arith.addf %75, %74 : vector<8x96xf32>
    %77 = arith.divf %75, %76 : vector<8x96xf32>
    %78 = vector.extract_strided_slice %71 {offsets = [0, 96], sizes = [8, 32], strides = [1, 1]} : vector<8x128xf32> to vector<8x32xf32>
    %79 = math.tanh %78 : vector<8x32xf32>
    %80 = vector.extract_strided_slice %77 {offsets = [0, 32], sizes = [8, 32], strides = [1, 1]} : vector<8x96xf32> to vector<8x32xf32>
    %81 = arith.mulf %80, %61 : vector<8x32xf32>
    %82 = vector.extract_strided_slice %77 {offsets = [0, 0], sizes = [8, 32], strides = [1, 1]} : vector<8x96xf32> to vector<8x32xf32>
    %83 = arith.mulf %82, %79 : vector<8x32xf32>
    %84 = arith.addf %81, %83 : vector<8x32xf32>
    %85 = vector.extract_strided_slice %77 {offsets = [0, 64], sizes = [8, 32], strides = [1, 1]} : vector<8x96xf32> to vector<8x32xf32>
    %86 = math.tanh %84 : vector<8x32xf32>
    %87 = arith.mulf %85, %86 : vector<8x32xf32>
    %c3_i32 = arith.constant 3 : i32
    %c8_i32_31 = arith.constant 8 : i32
    %88 = arith.muli %c3_i32, %c8_i32_31 : i32
    %89 = tpu.assume_multiple %88, 8 : i32
    %90 = arith.index_cast %89 : i32 to index
    %c0_32 = arith.constant 0 : index
    %91 = vector.load %arg16[%90, %c0_32] : memref<64x128xf32, #tpu.memory_space<vmem>>, vector<8x128xf32>
    %92 = arith.truncf %87 : vector<8x32xf32> to vector<8x32xbf16>
    %cst_33 = arith.constant dense<0.000000e+00> : vector<8x128xf32>
    %93 = tpu.matmul %92, %16, %cst_33 {dimension_numbers = #tpu.dot_dimension_numbers<[1], [0], [0], [1], [0, 0, 1, 1], [], []>} : vector<8x32xbf16>, vector<32x128xbf16>, vector<8x128xf32> -> vector<8x128xf32>
    %94 = arith.addf %91, %93 : vector<8x128xf32>
    %95 = vector.extract_strided_slice %94 {offsets = [0, 0], sizes = [8, 96], strides = [1, 1]} : vector<8x128xf32> to vector<8x96xf32>
    %96 = arith.negf %95 : vector<8x96xf32>
    %97 = math.exp %96 : vector<8x96xf32>
    %cst_34 = arith.constant 1.000000e+00 : f32
    %98 = vector.broadcast %cst_34 : f32 to vector<8x96xf32>
    %99 = arith.addf %98, %97 : vector<8x96xf32>
    %100 = arith.divf %98, %99 : vector<8x96xf32>
    %101 = vector.extract_strided_slice %94 {offsets = [0, 96], sizes = [8, 32], strides = [1, 1]} : vector<8x128xf32> to vector<8x32xf32>
    %102 = math.tanh %101 : vector<8x32xf32>
    %103 = vector.extract_strided_slice %100 {offsets = [0, 32], sizes = [8, 32], strides = [1, 1]} : vector<8x96xf32> to vector<8x32xf32>
    %104 = arith.mulf %103, %84 : vector<8x32xf32>
    %105 = vector.extract_strided_slice %100 {offsets = [0, 0], sizes = [8, 32], strides = [1, 1]} : vector<8x96xf32> to vector<8x32xf32>
    %106 = arith.mulf %105, %102 : vector<8x32xf32>
    %107 = arith.addf %104, %106 : vector<8x32xf32>
    %108 = vector.extract_strided_slice %100 {offsets = [0, 64], sizes = [8, 32], strides = [1, 1]} : vector<8x96xf32> to vector<8x32xf32>
    %109 = math.tanh %107 : vector<8x32xf32>
    %110 = arith.mulf %108, %109 : vector<8x32xf32>
    %c4_i32 = arith.constant 4 : i32
    %c8_i32_35 = arith.constant 8 : i32
    %111 = arith.muli %c4_i32, %c8_i32_35 : i32
    %112 = tpu.assume_multiple %111, 8 : i32
    %113 = arith.index_cast %112 : i32 to index
    %c0_36 = arith.constant 0 : index
    %114 = vector.load %arg16[%113, %c0_36] : memref<64x128xf32, #tpu.memory_space<vmem>>, vector<8x128xf32>
    %115 = arith.truncf %110 : vector<8x32xf32> to vector<8x32xbf16>
    %cst_37 = arith.constant dense<0.000000e+00> : vector<8x128xf32>
    %116 = tpu.matmul %115, %16, %cst_37 {dimension_numbers = #tpu.dot_dimension_numbers<[1], [0], [0], [1], [0, 0, 1, 1], [], []>} : vector<8x32xbf16>, vector<32x128xbf16>, vector<8x128xf32> -> vector<8x128xf32>
    %117 = arith.addf %114, %116 : vector<8x128xf32>
    %118 = vector.extract_strided_slice %117 {offsets = [0, 0], sizes = [8, 96], strides = [1, 1]} : vector<8x128xf32> to vector<8x96xf32>
    %119 = arith.negf %118 : vector<8x96xf32>
    %120 = math.exp %119 : vector<8x96xf32>
    %cst_38 = arith.constant 1.000000e+00 : f32
    %121 = vector.broadcast %cst_38 : f32 to vector<8x96xf32>
    %122 = arith.addf %121, %120 : vector<8x96xf32>
    %123 = arith.divf %121, %122 : vector<8x96xf32>
    %124 = vector.extract_strided_slice %117 {offsets = [0, 96], sizes = [8, 32], strides = [1, 1]} : vector<8x128xf32> to vector<8x32xf32>
    %125 = math.tanh %124 : vector<8x32xf32>
    %126 = vector.extract_strided_slice %123 {offsets = [0, 32], sizes = [8, 32], strides = [1, 1]} : vector<8x96xf32> to vector<8x32xf32>
    %127 = arith.mulf %126, %107 : vector<8x32xf32>
    %128 = vector.extract_strided_slice %123 {offsets = [0, 0], sizes = [8, 32], strides = [1, 1]} : vector<8x96xf32> to vector<8x32xf32>
    %129 = arith.mulf %128, %125 : vector<8x32xf32>
    %130 = arith.addf %127, %129 : vector<8x32xf32>
    %131 = vector.extract_strided_slice %123 {offsets = [0, 64], sizes = [8, 32], strides = [1, 1]} : vector<8x96xf32> to vector<8x32xf32>
    %132 = math.tanh %130 : vector<8x32xf32>
    %133 = arith.mulf %131, %132 : vector<8x32xf32>
    %c5_i32 = arith.constant 5 : i32
    %c8_i32_39 = arith.constant 8 : i32
    %134 = arith.muli %c5_i32, %c8_i32_39 : i32
    %135 = tpu.assume_multiple %134, 8 : i32
    %136 = arith.index_cast %135 : i32 to index
    %c0_40 = arith.constant 0 : index
    %137 = vector.load %arg16[%136, %c0_40] : memref<64x128xf32, #tpu.memory_space<vmem>>, vector<8x128xf32>
    %138 = arith.truncf %133 : vector<8x32xf32> to vector<8x32xbf16>
    %cst_41 = arith.constant dense<0.000000e+00> : vector<8x128xf32>
    %139 = tpu.matmul %138, %16, %cst_41 {dimension_numbers = #tpu.dot_dimension_numbers<[1], [0], [0], [1], [0, 0, 1, 1], [], []>} : vector<8x32xbf16>, vector<32x128xbf16>, vector<8x128xf32> -> vector<8x128xf32>
    %140 = arith.addf %137, %139 : vector<8x128xf32>
    %141 = vector.extract_strided_slice %140 {offsets = [0, 0], sizes = [8, 96], strides = [1, 1]} : vector<8x128xf32> to vector<8x96xf32>
    %142 = arith.negf %141 : vector<8x96xf32>
    %143 = math.exp %142 : vector<8x96xf32>
    %cst_42 = arith.constant 1.000000e+00 : f32
    %144 = vector.broadcast %cst_42 : f32 to vector<8x96xf32>
    %145 = arith.addf %144, %143 : vector<8x96xf32>
    %146 = arith.divf %144, %145 : vector<8x96xf32>
    %147 = vector.extract_strided_slice %140 {offsets = [0, 96], sizes = [8, 32], strides = [1, 1]} : vector<8x128xf32> to vector<8x32xf32>
    %148 = math.tanh %147 : vector<8x32xf32>
    %149 = vector.extract_strided_slice %146 {offsets = [0, 32], sizes = [8, 32], strides = [1, 1]} : vector<8x96xf32> to vector<8x32xf32>
    %150 = arith.mulf %149, %130 : vector<8x32xf32>
    %151 = vector.extract_strided_slice %146 {offsets = [0, 0], sizes = [8, 32], strides = [1, 1]} : vector<8x96xf32> to vector<8x32xf32>
    %152 = arith.mulf %151, %148 : vector<8x32xf32>
    %153 = arith.addf %150, %152 : vector<8x32xf32>
    %154 = vector.extract_strided_slice %146 {offsets = [0, 64], sizes = [8, 32], strides = [1, 1]} : vector<8x96xf32> to vector<8x32xf32>
    %155 = math.tanh %153 : vector<8x32xf32>
    %156 = arith.mulf %154, %155 : vector<8x32xf32>
    %c6_i32 = arith.constant 6 : i32
    %c8_i32_43 = arith.constant 8 : i32
    %157 = arith.muli %c6_i32, %c8_i32_43 : i32
    %158 = tpu.assume_multiple %157, 8 : i32
    %159 = arith.index_cast %158 : i32 to index
    %c0_44 = arith.constant 0 : index
    %160 = vector.load %arg16[%159, %c0_44] : memref<64x128xf32, #tpu.memory_space<vmem>>, vector<8x128xf32>
    %161 = arith.truncf %156 : vector<8x32xf32> to vector<8x32xbf16>
    %cst_45 = arith.constant dense<0.000000e+00> : vector<8x128xf32>
    %162 = tpu.matmul %161, %16, %cst_45 {dimension_numbers = #tpu.dot_dimension_numbers<[1], [0], [0], [1], [0, 0, 1, 1], [], []>} : vector<8x32xbf16>, vector<32x128xbf16>, vector<8x128xf32> -> vector<8x128xf32>
    %163 = arith.addf %160, %162 : vector<8x128xf32>
    %164 = vector.extract_strided_slice %163 {offsets = [0, 0], sizes = [8, 96], strides = [1, 1]} : vector<8x128xf32> to vector<8x96xf32>
    %165 = arith.negf %164 : vector<8x96xf32>
    %166 = math.exp %165 : vector<8x96xf32>
    %cst_46 = arith.constant 1.000000e+00 : f32
    %167 = vector.broadcast %cst_46 : f32 to vector<8x96xf32>
    %168 = arith.addf %167, %166 : vector<8x96xf32>
    %169 = arith.divf %167, %168 : vector<8x96xf32>
    %170 = vector.extract_strided_slice %163 {offsets = [0, 96], sizes = [8, 32], strides = [1, 1]} : vector<8x128xf32> to vector<8x32xf32>
    %171 = math.tanh %170 : vector<8x32xf32>
    %172 = vector.extract_strided_slice %169 {offsets = [0, 32], sizes = [8, 32], strides = [1, 1]} : vector<8x96xf32> to vector<8x32xf32>
    %173 = arith.mulf %172, %153 : vector<8x32xf32>
    %174 = vector.extract_strided_slice %169 {offsets = [0, 0], sizes = [8, 32], strides = [1, 1]} : vector<8x96xf32> to vector<8x32xf32>
    %175 = arith.mulf %174, %171 : vector<8x32xf32>
    %176 = arith.addf %173, %175 : vector<8x32xf32>
    %177 = vector.extract_strided_slice %169 {offsets = [0, 64], sizes = [8, 32], strides = [1, 1]} : vector<8x96xf32> to vector<8x32xf32>
    %178 = math.tanh %176 : vector<8x32xf32>
    %179 = arith.mulf %177, %178 : vector<8x32xf32>
    %c7_i32 = arith.constant 7 : i32
    %c8_i32_47 = arith.constant 8 : i32
    %180 = arith.muli %c7_i32, %c8_i32_47 : i32
    %181 = tpu.assume_multiple %180, 8 : i32
    %182 = arith.index_cast %181 : i32 to index
    %c0_48 = arith.constant 0 : index
    %183 = vector.load %arg16[%182, %c0_48] : memref<64x128xf32, #tpu.memory_space<vmem>>, vector<8x128xf32>
    %184 = arith.truncf %179 : vector<8x32xf32> to vector<8x32xbf16>
    %cst_49 = arith.constant dense<0.000000e+00> : vector<8x128xf32>
    %185 = tpu.matmul %184, %16, %cst_49 {dimension_numbers = #tpu.dot_dimension_numbers<[1], [0], [0], [1], [0, 0, 1, 1], [], []>} : vector<8x32xbf16>, vector<32x128xbf16>, vector<8x128xf32> -> vector<8x128xf32>
    %186 = arith.addf %183, %185 : vector<8x128xf32>
    %187 = vector.extract_strided_slice %186 {offsets = [0, 0], sizes = [8, 96], strides = [1, 1]} : vector<8x128xf32> to vector<8x96xf32>
    %188 = arith.negf %187 : vector<8x96xf32>
    %189 = math.exp %188 : vector<8x96xf32>
    %cst_50 = arith.constant 1.000000e+00 : f32
    %190 = vector.broadcast %cst_50 : f32 to vector<8x96xf32>
    %191 = arith.addf %190, %189 : vector<8x96xf32>
    %192 = arith.divf %190, %191 : vector<8x96xf32>
    %193 = vector.extract_strided_slice %186 {offsets = [0, 96], sizes = [8, 32], strides = [1, 1]} : vector<8x128xf32> to vector<8x32xf32>
    %194 = math.tanh %193 : vector<8x32xf32>
    %195 = vector.extract_strided_slice %192 {offsets = [0, 32], sizes = [8, 32], strides = [1, 1]} : vector<8x96xf32> to vector<8x32xf32>
    %196 = arith.mulf %195, %176 : vector<8x32xf32>
    %197 = vector.extract_strided_slice %192 {offsets = [0, 0], sizes = [8, 32], strides = [1, 1]} : vector<8x96xf32> to vector<8x32xf32>
    %198 = arith.mulf %197, %194 : vector<8x32xf32>
    %199 = arith.addf %196, %198 : vector<8x32xf32>
    %200 = vector.extract_strided_slice %192 {offsets = [0, 64], sizes = [8, 32], strides = [1, 1]} : vector<8x96xf32> to vector<8x32xf32>
    %201 = math.tanh %199 : vector<8x32xf32>
    %202 = arith.mulf %200, %201 : vector<8x32xf32>
    %c8_i32_51 = arith.constant 8 : i32
    %c0_52 = arith.constant 0 : index
    %c0_53 = arith.constant 0 : index
    %203 = vector.load %arg17[%c0_52, %c0_53] : memref<8x32xf32, #tpu.memory_space<vmem>>, vector<8x32xf32>
    tpu.vector_store %arg17[%c0_52, %c0_53], %202 {strides = array<i32>} : memref<8x32xf32, #tpu.memory_space<vmem>>, vector<8x32xf32>,
    %c0_54 = arith.constant 0 : index
    %c0_55 = arith.constant 0 : index
    %204 = vector.load %arg18[%c0_54, %c0_55] : memref<8x32xf32, #tpu.memory_space<vmem>>, vector<8x32xf32>
    tpu.vector_store %arg18[%c0_54, %c0_55], %199 {strides = array<i32>} : memref<8x32xf32, #tpu.memory_space<vmem>>, vector<8x32xf32>,
    %c0_i32_56 = arith.constant 0 : i32
    %205 = arith.cmpi eq, %arg0, %c0_i32_56 : i32
    %206 = arith.extui %205 : i1 to i32
    %c0_i32_57 = arith.constant 0 : i32
    %207 = arith.cmpi ne, %206, %c0_i32_57 : i32
    scf.if %207 {
      %208 = vector.extract_strided_slice %4 {offsets = [56, 0], sizes = [8, 32], strides = [1, 1]} : vector<64x32xbf16> to vector<8x32xbf16>
      %209 = vector.extract_strided_slice %6 {offsets = [56, 0], sizes = [8, 32], strides = [1, 1]} : vector<64x32xbf16> to vector<8x32xbf16>
      %c0_58 = arith.constant 0 : index
      %c0_59 = arith.constant 0 : index
      %210 = vector.load %arg7[%c0_58, %c0_59] : memref<32x128xbf16, #tpu.memory_space<vmem>>, vector<32x128xbf16>
      %cst_60 = arith.constant dense<0.000000e+00> : vector<8x128xf32>
      %211 = tpu.matmul %208, %210, %cst_60 {dimension_numbers = #tpu.dot_dimension_numbers<[1], [0], [0], [1], [0, 0, 1, 1], [], []>} : vector<8x32xbf16>, vector<32x128xbf16>, vector<8x128xf32> -> vector<8x128xf32>
      %c0_61 = arith.constant 0 : index
      %c0_62 = arith.constant 0 : index
      %212 = vector.load %arg8[%c0_61, %c0_62] : memref<32x128xbf16, #tpu.memory_space<vmem>>, vector<32x128xbf16>
      %cst_63 = arith.constant dense<0.000000e+00> : vector<8x128xf32>
      %213 = tpu.matmul %209, %212, %cst_63 {dimension_numbers = #tpu.dot_dimension_numbers<[1], [0], [0], [1], [0, 0, 1, 1], [], []>} : vector<8x32xbf16>, vector<32x128xbf16>, vector<8x128xf32> -> vector<8x128xf32>
      %214 = arith.addf %211, %213 : vector<8x128xf32>
      %c0_64 = arith.constant 0 : index
      %c0_65 = arith.constant 0 : index
      %215 = vector.load %arg9[%c0_64, %c0_65] : memref<1x128xf32, #tpu.memory_space<vmem>>, vector<1x128xf32>
      %216 = vector.broadcast %215 : vector<1x128xf32> to vector<8x128xf32>
      %217 = arith.addf %214, %216 : vector<8x128xf32>
      %218 = vector.extract_strided_slice %217 {offsets = [0, 0], sizes = [8, 96], strides = [1, 1]} : vector<8x128xf32> to vector<8x96xf32>
      %219 = arith.negf %218 : vector<8x96xf32>
      %220 = math.exp %219 : vector<8x96xf32>
      %cst_66 = arith.constant 1.000000e+00 : f32
      %221 = vector.broadcast %cst_66 : f32 to vector<8x96xf32>
      %222 = arith.addf %221, %220 : vector<8x96xf32>
      %223 = arith.divf %221, %222 : vector<8x96xf32>
      %224 = vector.extract_strided_slice %217 {offsets = [0, 96], sizes = [8, 32], strides = [1, 1]} : vector<8x128xf32> to vector<8x32xf32>
      %225 = math.tanh %224 : vector<8x32xf32>
      %226 = vector.extract_strided_slice %223 {offsets = [0, 0], sizes = [8, 32], strides = [1, 1]} : vector<8x96xf32> to vector<8x32xf32>
      %227 = arith.mulf %226, %225 : vector<8x32xf32>
      %228 = vector.extract_strided_slice %223 {offsets = [0, 64], sizes = [8, 32], strides = [1, 1]} : vector<8x96xf32> to vector<8x32xf32>
      %229 = math.tanh %227 : vector<8x32xf32>
      %230 = arith.mulf %228, %229 : vector<8x32xf32>
      %231 = arith.truncf %202 : vector<8x32xf32> to vector<8x32xbf16>
      %c0_67 = arith.constant 0 : index
      %c0_68 = arith.constant 0 : index
      %232 = vector.load %arg10[%c0_67, %c0_68] : memref<32x32xbf16, #tpu.memory_space<vmem>>, vector<32x32xbf16>
      %cst_69 = arith.constant dense<0.000000e+00> : vector<8x32xf32>
      %233 = tpu.matmul %231, %232, %cst_69 {dimension_numbers = #tpu.dot_dimension_numbers<[1], [0], [0], [1], [0, 0, 1, 1], [], []>} : vector<8x32xbf16>, vector<32x32xbf16>, vector<8x32xf32> -> vector<8x32xf32>
      %234 = arith.truncf %230 : vector<8x32xf32> to vector<8x32xbf16>
      %c0_70 = arith.constant 0 : index
      %c0_71 = arith.constant 0 : index
      %235 = vector.load %arg11[%c0_70, %c0_71] : memref<32x32xbf16, #tpu.memory_space<vmem>>, vector<32x32xbf16>
      %cst_72 = arith.constant dense<0.000000e+00> : vector<8x32xf32>
      %236 = tpu.matmul %234, %235, %cst_72 {dimension_numbers = #tpu.dot_dimension_numbers<[1], [0], [0], [1], [0, 0, 1, 1], [], []>} : vector<8x32xbf16>, vector<32x32xbf16>, vector<8x32xf32> -> vector<8x32xf32>
      %237 = arith.addf %233, %236 : vector<8x32xf32>
      %c0_73 = arith.constant 0 : index
      %c0_74 = arith.constant 0 : index
      %238 = vector.load %arg12[%c0_73, %c0_74] : memref<1x32xf32, #tpu.memory_space<vmem>>, vector<1x32xf32>
      %239 = vector.broadcast %238 : vector<1x32xf32> to vector<8x32xf32>
      %240 = arith.addf %237, %239 : vector<8x32xf32>
      %cst_75 = arith.constant 0.000000e+00 : f32
      %241 = vector.broadcast %cst_75 : f32 to vector<8x32xf32>
      %242 = arith.maximumf %240, %241 : vector<8x32xf32>
      %243 = arith.truncf %242 : vector<8x32xf32> to vector<8x32xbf16>
      %c0_76 = arith.constant 0 : index
      %c0_77 = arith.constant 0 : index
      %244 = vector.load %arg13[%c0_76, %c0_77] : memref<32x128xbf16, #tpu.memory_space<vmem>>, vector<32x128xbf16>
      %cst_78 = arith.constant dense<0.000000e+00> : vector<8x128xf32>
      %245 = tpu.matmul %243, %244, %cst_78 {dimension_numbers = #tpu.dot_dimension_numbers<[1], [0], [0], [1], [0, 0, 1, 1], [], []>} : vector<8x32xbf16>, vector<32x128xbf16>, vector<8x128xf32> -> vector<8x128xf32>
      %c0_79 = arith.constant 0 : index
      %c0_80 = arith.constant 0 : index
      %246 = vector.load %arg14[%c0_79, %c0_80] : memref<1x128xf32, #tpu.memory_space<vmem>>, vector<1x128xf32>
      %247 = vector.broadcast %246 : vector<1x128xf32> to vector<8x128xf32>
      %248 = arith.addf %245, %247 : vector<8x128xf32>
      %249 = arith.negf %248 : vector<8x128xf32>
      %250 = math.exp %249 : vector<8x128xf32>
      %cst_81 = arith.constant 1.000000e+00 : f32
      %251 = vector.broadcast %cst_81 : f32 to vector<8x128xf32>
      %252 = arith.addf %251, %250 : vector<8x128xf32>
      %253 = arith.divf %251, %252 : vector<8x128xf32>
      %c0_82 = arith.constant 0 : index
      %c0_83 = arith.constant 0 : index
      %254 = vector.load %arg15[%c0_82, %c0_83] : memref<8x128xf32, #tpu.memory_space<vmem>>, vector<8x128xf32>
      tpu.vector_store %arg15[%c0_82, %c0_83], %253 {strides = array<i32>} : memref<8x128xf32, #tpu.memory_space<vmem>>, vector<8x128xf32>,
    } else {
    }
    return
  }
  func.func @transform_0(%arg0: i32) -> (i32, i32) {
    %c0_i32 = arith.constant 0 : i32
    %c0_i32_0 = arith.constant 0 : i32
    return %arg0, %c0_i32 : i32, i32
  }
  func.func @transform_1(%arg0: i32) -> (i32, i32) {
    %c0_i32 = arith.constant 0 : i32
    %c0_i32_0 = arith.constant 0 : i32
    return %arg0, %c0_i32 : i32, i32
  }
  func.func @transform_2(%arg0: i32) -> (i32, i32) {
    %c0_i32 = arith.constant 0 : i32
    %c0_i32_0 = arith.constant 0 : i32
    %c0_i32_1 = arith.constant 0 : i32
    return %c0_i32, %c0_i32_0 : i32, i32
  }
  func.func @transform_3(%arg0: i32) -> (i32, i32) {
    %c0_i32 = arith.constant 0 : i32
    %c0_i32_0 = arith.constant 0 : i32
    %c0_i32_1 = arith.constant 0 : i32
    return %c0_i32, %c0_i32_0 : i32, i32
  }
  func.func @transform_4(%arg0: i32) -> (i32, i32) {
    %c0_i32 = arith.constant 0 : i32
    %c0_i32_0 = arith.constant 0 : i32
    %c0_i32_1 = arith.constant 0 : i32
    return %c0_i32, %c0_i32_0 : i32, i32
  }
  func.func @transform_5(%arg0: i32) -> (i32, i32) {
    %c0_i32 = arith.constant 0 : i32
    %c0_i32_0 = arith.constant 0 : i32
    %c0_i32_1 = arith.constant 0 : i32
    return %c0_i32, %c0_i32_0 : i32, i32
  }
  func.func @transform_6(%arg0: i32) -> (i32, i32) {
    %c0_i32 = arith.constant 0 : i32
    %c0_i32_0 = arith.constant 0 : i32
    %c0_i32_1 = arith.constant 0 : i32
    return %c0_i32, %c0_i32_0 : i32, i32
  }
  func.func @transform_7(%arg0: i32) -> (i32, i32) {
    %c0_i32 = arith.constant 0 : i32
    %c0_i32_0 = arith.constant 0 : i32
    %c0_i32_1 = arith.constant 0 : i32
    return %c0_i32, %c0_i32_0 : i32, i32
  }
  func.func @transform_8(%arg0: i32) -> (i32, i32) {
    %c0_i32 = arith.constant 0 : i32
    %c0_i32_0 = arith.constant 0 : i32
    %c0_i32_1 = arith.constant 0 : i32
    return %c0_i32, %c0_i32_0 : i32, i32
  }
  func.func @transform_9(%arg0: i32) -> (i32, i32) {
    %c0_i32 = arith.constant 0 : i32
    %c0_i32_0 = arith.constant 0 : i32
    %c0_i32_1 = arith.constant 0 : i32
    return %c0_i32, %c0_i32_0 : i32, i32
  }
  func.func @transform_10(%arg0: i32) -> (i32, i32) {
    %c0_i32 = arith.constant 0 : i32
    %c0_i32_0 = arith.constant 0 : i32
    %c0_i32_1 = arith.constant 0 : i32
    return %c0_i32, %c0_i32_0 : i32, i32
  }
  func.func @transform_11(%arg0: i32) -> (i32, i32) {
    %c0_i32 = arith.constant 0 : i32
    %c0_i32_0 = arith.constant 0 : i32
    %c0_i32_1 = arith.constant 0 : i32
    return %c0_i32, %c0_i32_0 : i32, i32
  }
  func.func @transform_12(%arg0: i32) -> (i32, i32) {
    %c0_i32 = arith.constant 0 : i32
    %c0_i32_0 = arith.constant 0 : i32
    %c0_i32_1 = arith.constant 0 : i32
    return %c0_i32, %c0_i32_0 : i32, i32
  }
  func.func @transform_13(%arg0: i32) -> (i32, i32) {
    %c0_i32 = arith.constant 0 : i32
    %c0_i32_0 = arith.constant 0 : i32
    %c0_i32_1 = arith.constant 0 : i32
    return %c0_i32, %c0_i32_0 : i32, i32
  }
  func.func @transform_14(%arg0: i32) -> (i32, i32) {
    %c0_i32 = arith.constant 0 : i32
    %c0_i32_0 = arith.constant 0 : i32
    %c0_i32_1 = arith.constant 0 : i32
    return %c0_i32, %c0_i32_0 : i32, i32
  }
}

</mosaic_0001>

<bundles_post_ra>
// kernel: aron_forward.3
= control target key start
LH: loop header
LB: loop body
LE: loop exit
PB: predicated region body
PF: predicated region fallthrough
CT: control target
= control target key end

     0   :  { %vm76_vm0 = vcmask 130048   ;;  %vm162_vm1 = vcmask 261120   ;;  %s1673_s1 = inlined_call_operand.vmem [shape: bf16[16,32], index: 1, kind: input, shape index: {}]   ;;  %s1674_s0 = inlined_call_operand.vmem [shape: f32[64,16], index: 0, kind: input, shape index: {}]   ;;  %s1675_s2 = inlined_call_operand.vmem [shape: f32[1,32], index: 2, kind: input, shape index: {}]   ;;  %s1676_s3 = inlined_call_operand.vmem [shape: bf16[32,32], index: 3, kind: input, shape index: {}]   ;;  %s1677_s7 = inlined_call_operand.vmem [shape: f32[1,32], index: 7, kind: input, shape index: {}]   ;;  %s1678_s8 = inlined_call_operand.vmem [shape: f32[1,32], index: 8, kind: input, shape index: {}]   ;;  %s1679_s4 = inlined_call_operand.vmem [shape: f32[1,32], index: 4, kind: input, shape index: {}]   ;;  %s1680_s5 = inlined_call_operand.vmem [shape: bf16[32,32], index: 5, kind: input, shape index: {}]   ;;  %s1681_s6 = inlined_call_operand.vmem [shape: f32[1,32], index: 6, kind: input, shape index: {}]   ;;  %s1682_s9 = inlined_call_operand.vmem [shape: bf16[32,128], index: 9, kind: input, shape index: {}]   ;;  %s1683_s11 = inlined_call_operand.vmem [shape: bf16[32,128], index: 11, kind: input, shape index: {}]   ;;  %s1684_s10 = inlined_call_operand.vmem [shape: f32[1,128], index: 10, kind: input, shape index: {}]   ;;  %s1685_s12 = inlined_call_operand.vmem [shape: f32[1,128], index: 12, kind: input, shape index: {}]   ;;  %s1686_s13 = inlined_call_operand.vmem [shape: f32[64,128], index: 13, kind: output, shape index: {0}]   ;;  %s1687_s14 = inlined_call_operand.vmem [shape: f32[64,128], index: 14, kind: output, shape index: {1}]  }
   0x1   :  { %v1117_v0 = vld [vmem:[%s1673_s1] sm:$0xff]   ;;  %v50_v2 = vld [vmem:[%s1674_s0 + $0x8] sm:$0xff]  ;;  %v51_v3 = vld [vmem:[%s1674_s0 + $0x10] sm:$0xff] }
   0x2   :  { %v49_v1 = vld [vmem:[%s1674_s0] sm:$0xff]  ;;  %1057 = vmatprep.subr.bf16.mxu0 %v1117_v0  ;;  %1115 = vmatprep.subr.bf16.mxu1 %v1117_v0  ;;  %v52_v5 = vld [vmem:[%s1674_s0 + $0x18] sm:$0xff]  ;;  %v54_v7 = vld [vmem:[%s1674_s0 + $0x28] sm:$0xff] }
   0x3   :  { %v57_v4 = vpack.c.bf16 %v50_v2, %v49_v1  ;;  %v53_v6 = vld [vmem:[%s1674_s0 + $0x20] sm:$0xff]  ;;  %1058 = vmatpush3.bf16.msra.mxu0 %v1117_v0  ;;  %1116 = vmatpush3.bf16.msra.mxu1 %v1117_v0  ;;  %v58_v8 = vpack.c.bf16 %v52_v5, %v51_v3  ;;  %v55_v10 = vld [vmem:[%s1674_s0 + $0x30] sm:$0xff]  ;;  %v56_v11 = vld [vmem:[%s1674_s0 + $0x38] sm:$0xff] }
   0x4   :  { %v59_v9 = vpack.c.bf16 %v54_v7, %v53_v6  ;;  %v60_v12 = vpack.c.bf16 %v56_v11, %v55_v10  ;;  %v992_v13 = vld [vmem:[%s1675_s2] ss:$0 sm:$0xff] }
   0x5   :  { %1059 = vmatprep.mubr.msk.bf16.mxu0 %vm76_vm0, %v57_v4 }
   0x6   :  { %1063 = vmatprep.mubr.msk.bf16.mxu1 %vm76_vm0, %v59_v9  ;;  %1060 = vmatmul.mubr.msk.bf16.vlgmr.msra.gmra.mxu0 %vm76_vm0, %v58_v8 }
   0x7   :  { %1064 = vmatmul.mubr.msk.bf16.vlgmr.msra.gmra.mxu1 %vm76_vm0, %v60_v12 }
  0xc6   :  { %v1061_v14 = vpop.f32.mrf.mxu0 }
  0xc7   :  { %v1065_v15 = vpop.f32.mrf.mxu1  ;;  %v132_v16 = vadd.f32 %v1061_v14, %v992_v13 }
  0xc8   :  { %v123_v17 = vpop.f32.mrf.mxu0  ;;  %v148_v38 = vadd.f32 %v1065_v15, %v992_v13 }
  0xc9   :  { %v139_v18 = vpop.f32.mrf.mxu1  ;;  %v156_v19 = vmax.f32 %v132_v16, 0.0  ;;  %v124_v20 = vadd.f32 %v992_v13, %v123_v17 }
  0xca   :  { %v1062_v21 = vpop.f32.mrf.mxu0  ;;  %v140_v31 = vadd.f32 %v992_v13, %v139_v18  ;;  %v160_v42 = vmax.f32 %v148_v38, 0.0 }
  0xcb   :  { %v1066_v22 = vpop.f32.mrf.mxu1  ;;  %v154_v23 = vmax.f32 %v124_v20, 0.0  ;;  %v135_v24 = vadd.f32 %v1062_v21, %v992_v13  ;;  %v169_v25 = vsel %vm162_vm1, %v156_v19, 0.0 }
  0xcc   :  { %v126_v26 = vpop.f32.mrf.mxu0  ;;  %170 = vadd.xlane.f32.xlu1 %v169_v25  ;;  %v151_v36 = vadd.f32 %v1066_v22, %v992_v13  ;;  %v158_v39 = vmax.f32 %v140_v31, 0.0  ;;  %v181_v45 = vsel %vm162_vm1, %v160_v42, 0.0  ;;  %v1118_v22 = vld [vmem:[%s1676_s3 + $0x8] sm:$0xff]  }
  0xcd   :  { %v142_v27 = vpop.f32.mrf.mxu1  ;;  %v157_v28 = vmax.f32 %v135_v24, 0.0  ;;  %v127_v29 = vadd.f32 %v992_v13, %v126_v26  ;;  %v163_v32 = vsel %vm162_vm1, %v154_v23, 0.0  ;;  %1067 = vmatprep.subr.bf16.mxu1 %v1118_v22 }
  0xce   :  { %v143_v30 = vadd.f32 %v992_v13, %v142_v27  ;;  %164 = vadd.xlane.f32.xlu0 %v163_v32  ;;  %v161_v41 = vmax.f32 %v151_v36, 0.0  ;;  %v175_v43 = vsel %vm162_vm1, %v158_v39, 0.0  ;;  %1068 = vmatpush3.bf16.msra.mxu1 %v1118_v22 }
  0xcf   :  { %v155_v33 = vmax.f32 %v127_v29, 0.0  ;;  %v172_v35 = vsel %vm162_vm1, %v157_v28, 0.0 }
  0xd0   :  { %v159_v34 = vmax.f32 %v143_v30, 0.0  ;;  %173 = vadd.xlane.f32.xlu1 %v172_v35  ;;  %v184_v44 = vsel %vm162_vm1, %v161_v41, 0.0 }
  0xd1   :  { %v166_v37 = vsel %vm162_vm1, %v155_v33, 0.0 }
  0xd2   :  { %v178_v40 = vsel %vm162_vm1, %v159_v34, 0.0  ;;  %167 = vadd.xlane.f32.xlu0 %v166_v37 }
  0xd4   :  { %179 = vadd.xlane.f32.xlu1 %v178_v40 }
  0xd6   :  { %176 = vadd.xlane.f32.xlu0 %v175_v43 }
  0xd8   :  { %185 = vadd.xlane.f32.xlu1 %v184_v44 }
  0xda   :  { %182 = vadd.xlane.f32.xlu0 %v181_v45 }
 0x155   :  { %v171_v46 = vpop.xlane.xlu1 %170 }
 0x156   :  { %v190_v47 = vmul.f32 0.03125, %v171_v46 }
 0x157   :  { %v165_v48 = vpop.xlane.xlu0 %164 }
 0x158   :  { %v188_v49 = vmul.f32 0.03125, %v165_v48  ;;  %v1291_v50 = vsub.f32 %v156_v19, %v190_v47 }
 0x159   :  { %v174_v51 = vpop.xlane.xlu1 %173 }
 0x15a   :  { %v1293_v52 = vsub.f32 %v154_v23, %v188_v49  ;;  %v191_v53 = vmul.f32 0.03125, %v174_v51  ;;  %v206_v59 = vmul.f32 %v1291_v50, %v1291_v50  ;;  %v1119_v23 = vld [vmem:[%s1676_s3] sm:$0xff]  }
 0x15b   :  { %v168_v54 = vpop.xlane.xlu0 %167  ;;  %1069 = vmatprep.subr.bf16.mxu1 %v1119_v23  ;;  %v1341_v51 = vld [vmem:[%s1677_s7] ss:$0 sm:$0xff] }
 0x15c   :  { %v189_v55 = vmul.f32 0.03125, %v168_v54  ;;  %v204_v56 = vmul.f32 %v1293_v52, %v1293_v52  ;;  %v1297_v57 = vsub.f32 %v157_v28, %v191_v53  ;;  %v218_v3 = vsel %vm162_vm1, %v206_v59, 0.0  ;;  %1070 = vmatpush3.bf16.msra.mxu1 %v1119_v23  ;;  %v1349_v59 = vld [vmem:[%s1678_s8] ss:$0 sm:$0xff] }
 0x15d   :  { %v180_v58 = vpop.xlane.xlu1 %179  ;;  %v1000_v23 = vld [vmem:[%s1679_s4] ss:$0 sm:$0xff] }
 0x15e   :  { %v1301_v60 = vsub.f32 %v155_v33, %v189_v55  ;;  %v193_v61 = vmul.f32 0.03125, %v180_v58  ;;  %v212_v62 = vsel %vm162_vm1, %v204_v56, 0.0  ;;  %v207_v4 = vmul.f32 %v1297_v57, %v1297_v57 }
 0x15f   :  { %213 = vadd.xlane.f32.xlu0 %v212_v62  ;;  %v177_v63 = vpop.xlane.xlu0 %176 }
 0x160   :  { %v192_v0 = vmul.f32 0.03125, %v177_v63  ;;  %v205_v1 = vmul.f32 %v1301_v60, %v1301_v60  ;;  %v1309_v5 = vsub.f32 %v159_v34, %v193_v61  ;;  %v221_v12 = vsel %vm162_vm1, %v207_v4, 0.0 }
 0x161   :  { %v186_v2 = vpop.xlane.xlu1 %185 }
 0x162   :  { %v1311_v6 = vsub.f32 %v158_v39, %v192_v0  ;;  %v195_v7 = vmul.f32 0.03125, %v186_v2  ;;  %v215_v8 = vsel %vm162_vm1, %v205_v1, 0.0  ;;  %v209_v16 = vmul.f32 %v1309_v5, %v1309_v5 }
 0x163   :  { %219 = vadd.xlane.f32.xlu0 %v218_v3  ;;  %216 = vadd.xlane.f32.xlu1 %v215_v8  ;;  %v183_v9 = vpop.xlane.xlu0 %182 }
 0x164   :  { %v194_v10 = vmul.f32 0.03125, %v183_v9  ;;  %v208_v11 = vmul.f32 %v1311_v6, %v1311_v6  ;;  %v1317_v13 = vsub.f32 %v161_v41, %v195_v7  ;;  %v227_v18 = vsel %vm162_vm1, %v209_v16, 0.0 }
 0x166   :  { %v1319_v14 = vsub.f32 %v160_v42, %v194_v10  ;;  %v224_v15 = vsel %vm162_vm1, %v208_v11, 0.0  ;;  %v211_v20 = vmul.f32 %v1317_v13, %v1317_v13 }
 0x167   :  { %222 = vadd.xlane.f32.xlu1 %v221_v12  ;;  %225 = vadd.xlane.f32.xlu0 %v224_v15 }
 0x168   :  { %v210_v17 = vmul.f32 %v1319_v14, %v1319_v14  ;;  %v233_v21 = vsel %vm162_vm1, %v211_v20, 0.0 }
 0x16a   :  { %v230_v19 = vsel %vm162_vm1, %v210_v17, 0.0 }
 0x16b   :  { %228 = vadd.xlane.f32.xlu1 %v227_v18  ;;  %231 = vadd.xlane.f32.xlu0 %v230_v19 }
 0x16f   :  { %234 = vadd.xlane.f32.xlu1 %v233_v21 }
 0x1e8   :  { %v214_v24 = vpop.xlane.xlu0 %213 }
 0x1e9   :  { %v236_v25 = vmul.f32 0.03125, %v214_v24 }
 0x1eb   :  { %v244_v26 = vadd.f32 1e-05, %v236_v25 }
 0x1ec   :  { %v217_v27 = vpop.xlane.xlu1 %216  ;;  %v220_v28 = vpop.xlane.xlu0 %219 }
 0x1ed   :  { %1126 = vrsqrt.f32 %v244_v26  ;;  %v237_v29 = vmul.f32 0.03125, %v217_v27  ;;  %v238_v30 = vmul.f32 0.03125, %v220_v28 }
 0x1ef   :  { %v245_v31 = vadd.f32 1e-05, %v237_v29  ;;  %v246_v32 = vadd.f32 1e-05, %v238_v30 }
 0x1f0   :  { %v223_v33 = vpop.xlane.xlu1 %222  ;;  %v226_v34 = vpop.xlane.xlu0 %225 }
 0x1f1   :  { %1128 = vrsqrt.f32 %v245_v31  ;;  %v239_v35 = vmul.f32 0.03125, %v223_v33  ;;  %v240_v36 = vmul.f32 0.03125, %v226_v34 }
 0x1f2   :  { %1130 = vrsqrt.f32 %v246_v32 }
 0x1f3   :  { %v247_v37 = vadd.f32 1e-05, %v239_v35  ;;  %v248_v38 = vadd.f32 1e-05, %v240_v36 }
 0x1f4   :  { %v229_v39 = vpop.xlane.xlu1 %228  ;;  %v232_v40 = vpop.xlane.xlu0 %231 }
 0x1f5   :  { %1132 = vrsqrt.f32 %v247_v37  ;;  %v241_v41 = vmul.f32 0.03125, %v229_v39  ;;  %v242_v42 = vmul.f32 0.03125, %v232_v40 }
 0x1f6   :  { %1134 = vrsqrt.f32 %v248_v38 }
 0x1f7   :  { %v249_v43 = vadd.f32 1e-05, %v241_v41  ;;  %v250_v44 = vadd.f32 1e-05, %v242_v42 }
 0x1f8   :  { %v235_v45 = vpop.xlane.xlu1 %234 }
 0x1f9   :  { %1136 = vrsqrt.f32 %v249_v43  ;;  %v243_v46 = vmul.f32 0.03125, %v235_v45 }
 0x1fa   :  { %v1127_v47 = vpop.eup %1126  ;;  %1138 = vrsqrt.f32 %v250_v44 }
 0x1fb   :  { %v251_v48 = vadd.f32 1e-05, %v243_v46  ;;  %v260_v49 = vmul.f32 %v1127_v47, %v1293_v52 }
 0x1fd   :  { %1140 = vrsqrt.f32 %v251_v48  ;;  %v274_v56 = vmul.f32 %v1341_v51, %v260_v49 }
 0x1fe   :  { %v1129_v53 = vpop.eup %1128 }
 0x1ff   :  { %v1131_v54 = vpop.eup %1130  ;;  %v261_v55 = vmul.f32 %v1129_v53, %v1301_v60  ;;  %v1354_v0 = vadd.f32 %v1349_v59, %v274_v56 }
 0x200   :  { %v262_v58 = vmul.f32 %v1131_v54, %v1291_v50 }
 0x201   :  { %v275_v52 = vmul.f32 %v1341_v51, %v261_v55 }
 0x202   :  { %v1133_v61 = vpop.eup %1132  ;;  %v276_v1 = vmul.f32 %v1341_v51, %v262_v58 }
 0x203   :  { %v1135_v62 = vpop.eup %1134  ;;  %v263_v63 = vmul.f32 %v1133_v61, %v1297_v57  ;;  %v1357_v60 = vadd.f32 %v1349_v59, %v275_v52 }
 0x204   :  { %v264_v50 = vmul.f32 %v1135_v62, %v1311_v6  ;;  %v1366_v57 = vadd.f32 %v1349_v59, %v276_v1 }
 0x205   :  { %v296_v2 = vpack.c.bf16 %v1357_v60, %v1354_v0  ;;  %v277_v3 = vmul.f32 %v1341_v51, %v263_v63 }
 0x206   :  { %v1137_v4 = vpop.eup %1136  ;;  %v278_v10 = vmul.f32 %v1341_v51, %v264_v50 }
 0x207   :  { %v1139_v7 = vpop.eup %1138  ;;  %1071 = vmatprep.mubr.msk.bf16.mxu1 %vm162_vm1, %v296_v2  ;;  %v1369_v8 = vadd.f32 %v1349_v59, %v277_v3  ;;  %v265_v9 = vmul.f32 %v1137_v4, %v1309_v5 }
 0x208   :  { %v266_v6 = vmul.f32 %v1139_v7, %v1319_v14  ;;  %v1379_v16 = vadd.f32 %v1349_v59, %v278_v10 }
 0x209   :  { %v297_v11 = vpack.c.bf16 %v1369_v8, %v1366_v57  ;;  %v279_v12 = vmul.f32 %v1341_v51, %v265_v9 }
 0x20a   :  { %v1141_v15 = vpop.eup %1140  ;;  %v280_v18 = vmul.f32 %v1341_v51, %v266_v6 }
 0x20b   :  { %1072 = vmatmul.mubr.msk.bf16.vlgmr.msra.gmra.mxu1 %vm162_vm1, %v297_v11  ;;  %v1382_v17 = vadd.f32 %v1349_v59, %v279_v12  ;;  %v267_v5 = vmul.f32 %v1141_v15, %v1317_v13 }
 0x20c   :  { %v1391_v20 = vadd.f32 %v1349_v59, %v280_v18 }
 0x20d   :  { %v298_v14 = vpack.c.bf16 %v1382_v17, %v1379_v16  ;;  %v281_v19 = vmul.f32 %v1341_v51, %v267_v5 }
 0x20f   :  { %1075 = vmatprep.mubr.msk.bf16.mxu1 %vm162_vm1, %v298_v14  ;;  %v1394_v21 = vadd.f32 %v1349_v59, %v281_v19 }
 0x211   :  { %v299_v22 = vpack.c.bf16 %v1394_v21, %v1391_v20 }
 0x213   :  { %1076 = vmatmul.mubr.msk.bf16.gmra.mxu1 %vm162_vm1, %v299_v22 }
 0x2cb   :  { %v1073_v13 = vpop.f32.mrf.mxu1 }
 0x2cc   :  { %v378_v25 = vadd.f32 %v1073_v13, %v1000_v23 }
 0x2cd   :  { %v369_v24 = vpop.f32.mrf.mxu1 }
 0x2ce   :  { %v370_v26 = vadd.f32 %v1000_v23, %v369_v24  ;;  %v402_v31 = vmax.f32 %v378_v25, 0.0 }
 0x2cf   :  { %v1074_v27 = vpop.f32.mrf.mxu1 }
 0x2d0   :  { %v400_v28 = vmax.f32 %v370_v26, 0.0  ;;  %v381_v29 = vadd.f32 %v1074_v27, %v1000_v23  ;;  %v414_v41 = vsel %vm162_vm1, %v402_v31, 0.0 }
 0x2d1   :  { %v372_v30 = vpop.f32.mrf.mxu1 }
 0x2d2   :  { %v373_v32 = vadd.f32 %v1000_v23, %v372_v30  ;;  %v408_v33 = vsel %vm162_vm1, %v400_v28, 0.0  ;;  %v403_v36 = vmax.f32 %v381_v29, 0.0 }
 0x2d3   :  { %409 = vadd.xlane.f32.xlu0 %v408_v33  ;;  %v1077_v34 = vpop.f32.mrf.mxu1 }
 0x2d4   :  { %v401_v35 = vmax.f32 %v373_v32, 0.0  ;;  %v394_v38 = vadd.f32 %v1077_v34, %v1000_v23  ;;  %v417_v45 = vsel %vm162_vm1, %v403_v36, 0.0 }
 0x2d5   :  { %v385_v37 = vpop.f32.mrf.mxu1 }
 0x2d6   :  { %v386_v39 = vadd.f32 %v1000_v23, %v385_v37  ;;  %v411_v40 = vsel %vm162_vm1, %v401_v35, 0.0  ;;  %v406_v46 = vmax.f32 %v394_v38, 0.0 }
 0x2d7   :  { %412 = vadd.xlane.f32.xlu1 %v411_v40  ;;  %415 = vadd.xlane.f32.xlu0 %v414_v41  ;;  %v1078_v42 = vpop.f32.mrf.mxu1  ;;  %v1120_v41 = vld [vmem:[%s1680_s5 + $0x8] sm:$0xff]  }
 0x2d8   :  { %v404_v43 = vmax.f32 %v386_v39, 0.0  ;;  %v397_v47 = vadd.f32 %v1078_v42, %v1000_v23  ;;  %v426_v56 = vsel %vm162_vm1, %v406_v46, 0.0  ;;  %v1121_v42 = vld [vmem:[%s1680_s5] sm:$0xff]   ;;  %1079 = vmatprep.subr.bf16.mxu0 %v1120_v41 }
 0x2d9   :  { %v388_v44 = vpop.f32.mrf.mxu1  ;;  %1080 = vmatpush3.bf16.msra.mxu0 %v1120_v41 }
 0x2da   :  { %v389_v48 = vadd.f32 %v1000_v23, %v388_v44  ;;  %v420_v49 = vsel %vm162_vm1, %v404_v43, 0.0  ;;  %v407_v54 = vmax.f32 %v397_v47, 0.0  ;;  %1081 = vmatprep.subr.bf16.mxu0 %v1121_v42 }
 0x2db   :  { %418 = vadd.xlane.f32.xlu1 %v417_v45  ;;  %421 = vadd.xlane.f32.xlu0 %v420_v49 }
 0x2dc   :  { %v405_v53 = vmax.f32 %v389_v48, 0.0  ;;  %v429_v58 = vsel %vm162_vm1, %v407_v54, 0.0 }
 0x2dd   :  { %1082 = vmatpush3.bf16.msra.mxu0 %v1121_v42 }
 0x2de   :  { %v423_v55 = vsel %vm162_vm1, %v405_v53, 0.0 }
 0x2df   :  { %424 = vadd.xlane.f32.xlu1 %v423_v55  ;;  %427 = vadd.xlane.f32.xlu0 %v426_v56 }
 0x2e3   :  { %430 = vadd.xlane.f32.xlu1 %v429_v58 }
 0x35c   :  { %v410_v52 = vpop.xlane.xlu0 %409 }
 0x35d   :  { %v432_v61 = vmul.f32 0.03125, %v410_v52 }
 0x35f   :  { %v1410_v62 = vsub.f32 %v400_v28, %v432_v61 }
 0x360   :  { %v413_v63 = vpop.xlane.xlu1 %412  ;;  %v416_v1 = vpop.xlane.xlu0 %415 }
 0x361   :  { %v433_v50 = vmul.f32 0.03125, %v413_v63  ;;  %v434_v2 = vmul.f32 0.03125, %v416_v1  ;;  %v448_v3 = vmul.f32 %v1410_v62, %v1410_v62 }
 0x363   :  { %v1414_v4 = vsub.f32 %v401_v35, %v433_v50  ;;  %v1416_v7 = vsub.f32 %v402_v31, %v434_v2  ;;  %v456_v9 = vsel %vm162_vm1, %v448_v3, 0.0 }
 0x364   :  { %v419_v10 = vpop.xlane.xlu1 %418  ;;  %457 = vadd.xlane.f32.xlu0 %v456_v9  ;;  %v422_v6 = vpop.xlane.xlu0 %421 }
 0x365   :  { %v435_v11 = vmul.f32 0.03125, %v419_v10  ;;  %v436_v12 = vmul.f32 0.03125, %v422_v6  ;;  %v449_v15 = vmul.f32 %v1414_v4, %v1414_v4  ;;  %v450_v5 = vmul.f32 %v1416_v7, %v1416_v7 }
 0x367   :  { %v1423_v18 = vsub.f32 %v403_v36, %v435_v11  ;;  %v1425_v14 = vsub.f32 %v404_v43, %v436_v12  ;;  %v459_v19 = vsel %vm162_vm1, %v449_v15, 0.0  ;;  %v462_v22 = vsel %vm162_vm1, %v450_v5, 0.0 }
 0x368   :  { %460 = vadd.xlane.f32.xlu1 %v459_v19  ;;  %v425_v13 = vpop.xlane.xlu1 %424  ;;  %463 = vadd.xlane.f32.xlu0 %v462_v22  ;;  %v428_v23 = vpop.xlane.xlu0 %427 }
 0x369   :  { %v437_v24 = vmul.f32 0.03125, %v425_v13  ;;  %v438_v25 = vmul.f32 0.03125, %v428_v23  ;;  %v451_v26 = vmul.f32 %v1423_v18, %v1423_v18  ;;  %v452_v27 = vmul.f32 %v1425_v14, %v1425_v14 }
 0x36b   :  { %v1433_v28 = vsub.f32 %v405_v53, %v437_v24  ;;  %v1435_v29 = vsub.f32 %v406_v46, %v438_v25  ;;  %v465_v30 = vsel %vm162_vm1, %v451_v26, 0.0  ;;  %v468_v31 = vsel %vm162_vm1, %v452_v27, 0.0 }
 0x36c   :  { %466 = vadd.xlane.f32.xlu1 %v465_v30  ;;  %v431_v32 = vpop.xlane.xlu1 %430  ;;  %469 = vadd.xlane.f32.xlu0 %v468_v31 }
 0x36d   :  { %v439_v33 = vmul.f32 0.03125, %v431_v32  ;;  %v453_v34 = vmul.f32 %v1433_v28, %v1433_v28  ;;  %v454_v35 = vmul.f32 %v1435_v29, %v1435_v29 }
 0x36f   :  { %v1443_v36 = vsub.f32 %v407_v54, %v439_v33  ;;  %v471_v37 = vsel %vm162_vm1, %v453_v34, 0.0  ;;  %v474_v38 = vsel %vm162_vm1, %v454_v35, 0.0 }
 0x370   :  { %472 = vadd.xlane.f32.xlu1 %v471_v37  ;;  %475 = vadd.xlane.f32.xlu0 %v474_v38 }
 0x371   :  { %v455_v39 = vmul.f32 %v1443_v36, %v1443_v36 }
 0x373   :  { %v477_v40 = vsel %vm162_vm1, %v455_v39, 0.0 }
 0x374   :  { %478 = vadd.xlane.f32.xlu1 %v477_v40 }
 0x3ed   :  { %v458_v43 = vpop.xlane.xlu0 %457 }
 0x3ee   :  { %v480_v44 = vmul.f32 0.03125, %v458_v43 }
 0x3f0   :  { %v488_v45 = vadd.f32 1e-05, %v480_v44 }
 0x3f1   :  { %v461_v46 = vpop.xlane.xlu1 %460  ;;  %v464_v47 = vpop.xlane.xlu0 %463 }
 0x3f2   :  { %1142 = vrsqrt.f32 %v488_v45  ;;  %v481_v48 = vmul.f32 0.03125, %v461_v46  ;;  %v482_v49 = vmul.f32 0.03125, %v464_v47 }
 0x3f4   :  { %v489_v53 = vadd.f32 1e-05, %v481_v48  ;;  %v490_v54 = vadd.f32 1e-05, %v482_v49 }
 0x3f5   :  { %v467_v55 = vpop.xlane.xlu1 %466  ;;  %v470_v56 = vpop.xlane.xlu0 %469 }
 0x3f6   :  { %1144 = vrsqrt.f32 %v489_v53  ;;  %v483_v58 = vmul.f32 0.03125, %v467_v55  ;;  %v484_v52 = vmul.f32 0.03125, %v470_v56  ;;  %v1007_v55 = vld [vmem:[%s1681_s6] ss:$0 sm:$0xff] }
 0x3f7   :  { %1146 = vrsqrt.f32 %v490_v54 }
 0x3f8   :  { %v491_v61 = vadd.f32 1e-05, %v483_v58  ;;  %v492_v63 = vadd.f32 1e-05, %v484_v52 }
 0x3f9   :  { %v473_v1 = vpop.xlane.xlu1 %472  ;;  %v476_v50 = vpop.xlane.xlu0 %475 }
 0x3fa   :  { %1148 = vrsqrt.f32 %v491_v61  ;;  %v485_v2 = vmul.f32 0.03125, %v473_v1  ;;  %v486_v3 = vmul.f32 0.03125, %v476_v50 }
 0x3fb   :  { %1150 = vrsqrt.f32 %v492_v63 }
 0x3fc   :  { %v493_v9 = vadd.f32 1e-05, %v485_v2  ;;  %v494_v10 = vadd.f32 1e-05, %v486_v3 }
 0x3fd   :  { %v479_v6 = vpop.xlane.xlu1 %478 }
 0x3fe   :  { %1152 = vrsqrt.f32 %v493_v9  ;;  %v487_v11 = vmul.f32 0.03125, %v479_v6 }
 0x3ff   :  { %v1143_v12 = vpop.eup %1142  ;;  %1154 = vrsqrt.f32 %v494_v10 }
 0x400   :  { %v495_v15 = vadd.f32 1e-05, %v487_v11  ;;  %v504_v5 = vmul.f32 %v1143_v12, %v1410_v62 }
 0x402   :  { %1156 = vrsqrt.f32 %v495_v15  ;;  %v512_v19 = vmul.f32 %v1341_v51, %v504_v5 }
 0x403   :  { %v1145_v22 = vpop.eup %1144 }
 0x404   :  { %v1147_v13 = vpop.eup %1146  ;;  %v505_v23 = vmul.f32 %v1145_v22, %v1414_v4  ;;  %v1462_v26 = vadd.f32 %v1349_v59, %v512_v19 }
 0x405   :  { %v506_v24 = vmul.f32 %v1147_v13, %v1416_v7 }
 0x406   :  { %v513_v25 = vmul.f32 %v1341_v51, %v505_v23  ;;  %v528_v7 = vadd.f32 %v1462_v26, %v1354_v0 }
 0x407   :  { %v1149_v27 = vpop.eup %1148  ;;  %v514_v30 = vmul.f32 %v1341_v51, %v506_v24 }
 0x408   :  { %v1151_v31 = vpop.eup %1150  ;;  %v507_v62 = vmul.f32 %v1149_v27, %v1423_v18  ;;  %v1467_v32 = vadd.f32 %v1349_v59, %v513_v25 }
 0x409   :  { %v508_v33 = vmul.f32 %v1151_v31, %v1425_v14  ;;  %v1476_v35 = vadd.f32 %v1349_v59, %v514_v30 }
 0x40a   :  { %v515_v4 = vmul.f32 %v1341_v51, %v507_v62  ;;  %v529_v34 = vadd.f32 %v1467_v32, %v1357_v60 }
 0x40b   :  { %v1153_v37 = vpop.eup %1152  ;;  %v516_v38 = vmul.f32 %v1341_v51, %v508_v33  ;;  %v530_v0 = vadd.f32 %v1476_v35, %v1366_v57 }
 0x40c   :  { %v1155_v18 = vpop.eup %1154  ;;  %v536_v39 = vpack.c.bf16 %v529_v34, %v528_v7  ;;  %v1480_v40 = vadd.f32 %v1349_v59, %v515_v4  ;;  %v509_v14 = vmul.f32 %v1153_v37, %v1433_v28 }
 0x40d   :  { %v510_v41 = vmul.f32 %v1155_v18, %v1435_v29  ;;  %v1491_v43 = vadd.f32 %v1349_v59, %v516_v38 }
 0x40e   :  { %1083 = vmatprep.mubr.msk.bf16.mxu0 %vm162_vm1, %v536_v39  ;;  %v531_v60 = vadd.f32 %v1480_v40, %v1369_v8  ;;  %v517_v42 = vmul.f32 %v1341_v51, %v509_v14 }
 0x40f   :  { %v1157_v44 = vpop.eup %1156  ;;  %v518_v45 = vmul.f32 %v1341_v51, %v510_v41  ;;  %v532_v57 = vadd.f32 %v1491_v43, %v1379_v16 }
 0x410   :  { %v537_v46 = vpack.c.bf16 %v531_v60, %v530_v0  ;;  %v1495_v28 = vadd.f32 %v1349_v59, %v517_v42  ;;  %v511_v29 = vmul.f32 %v1157_v44, %v1443_v36 }
 0x411   :  { %v1505_v48 = vadd.f32 %v1349_v59, %v518_v45 }
 0x412   :  { %1084 = vmatmul.mubr.msk.bf16.vlgmr.msra.gmra.mxu0 %vm162_vm1, %v537_v46  ;;  %v533_v8 = vadd.f32 %v1495_v28, %v1382_v17  ;;  %v519_v47 = vmul.f32 %v1341_v51, %v511_v29 }
 0x413   :  { %v534_v36 = vadd.f32 %v1505_v48, %v1391_v20 }
 0x414   :  { %v538_v49 = vpack.c.bf16 %v533_v8, %v532_v57  ;;  %v1508_v53 = vadd.f32 %v1349_v59, %v519_v47 }
 0x416   :  { %1087 = vmatprep.mubr.msk.bf16.mxu0 %vm162_vm1, %v538_v49  ;;  %v535_v16 = vadd.f32 %v1508_v53, %v1394_v21 }
 0x418   :  { %v539_v54 = vpack.c.bf16 %v535_v16, %v534_v36 }
 0x41a   :  { %1088 = vmatmul.mubr.msk.bf16.gmra.mxu0 %vm162_vm1, %v539_v54 }
 0x4d2   :  { %v1085_v17 = vpop.f32.mrf.mxu0 }
 0x4d3   :  { %v618_v58 = vadd.f32 %v1085_v17, %v1007_v55 }
 0x4d4   :  { %v609_v56 = vpop.f32.mrf.mxu0 }
 0x4d5   :  { %v610_v52 = vadd.f32 %v1007_v55, %v609_v56  ;;  %v642_v2 = vmax.f32 %v618_v58, 0.0 }
 0x4d6   :  { %v1086_v61 = vpop.f32.mrf.mxu0 }
 0x4d7   :  { %v640_v63 = vmax.f32 %v610_v52, 0.0  ;;  %v621_v1 = vadd.f32 %v1086_v61, %v1007_v55  ;;  %v654_v5 = vsel %vm162_vm1, %v642_v2, 0.0 }
 0x4d8   :  { %v612_v50 = vpop.f32.mrf.mxu0 }
 0x4d9   :  { %v613_v20 = vadd.f32 %v1007_v55, %v612_v50  ;;  %v648_v3 = vsel %vm162_vm1, %v640_v63, 0.0  ;;  %v643_v10 = vmax.f32 %v621_v1, 0.0 }
 0x4da   :  { %649 = vadd.xlane.f32.xlu0 %v648_v3  ;;  %v1089_v21 = vpop.f32.mrf.mxu0 }
 0x4db   :  { %v641_v9 = vmax.f32 %v613_v20, 0.0  ;;  %v634_v11 = vadd.f32 %v1089_v21, %v1007_v55  ;;  %v657_v23 = vsel %vm162_vm1, %v643_v10, 0.0 }
 0x4dc   :  { %v625_v6 = vpop.f32.mrf.mxu0 }
 0x4dd   :  { %v626_v12 = vadd.f32 %v1007_v55, %v625_v6  ;;  %v651_v15 = vsel %vm162_vm1, %v641_v9, 0.0  ;;  %v646_v24 = vmax.f32 %v634_v11, 0.0 }
 0x4de   :  { %652 = vadd.xlane.f32.xlu1 %v651_v15  ;;  %655 = vadd.xlane.f32.xlu0 %v654_v5  ;;  %v1090_v19 = vpop.f32.mrf.mxu0  ;;  %v1122_v5 = vld [vmem:[%s1682_s9 + $0x8] sm:$0xff]  }
 0x4df   :  { %v644_v22 = vmax.f32 %v626_v12, 0.0  ;;  %v637_v25 = vadd.f32 %v1090_v19, %v1007_v55  ;;  %v666_v4 = vsel %vm162_vm1, %v646_v24, 0.0  ;;  %v1123_v19 = vld [vmem:[%s1683_s11 + $0x8] sm:$0xff]   ;;  %1091 = vmatprep.subr.bf16.mxu1 %v1122_v5 }
 0x4e0   :  { %v628_v13 = vpop.f32.mrf.mxu0  ;;  %1103 = vmatprep.subr.bf16.mxu0 %v1123_v19  ;;  %1092 = vmatpush3.bf16.msra.mxu1 %v1122_v5 }
 0x4e1   :  { %v629_v27 = vadd.f32 %v1007_v55, %v628_v13  ;;  %v660_v30 = vsel %vm162_vm1, %v644_v22, 0.0  ;;  %v647_v62 = vmax.f32 %v637_v25, 0.0  ;;  %1104 = vmatpush3.bf16.msra.mxu0 %v1123_v19  ;;  %v1125_v13 = vld [vmem:[%s1683_s11] sm:$0xff]  }
 0x4e2   :  { %658 = vadd.xlane.f32.xlu1 %v657_v23  ;;  %661 = vadd.xlane.f32.xlu0 %v660_v30 }
 0x4e3   :  { %v645_v31 = vmax.f32 %v629_v27, 0.0  ;;  %v669_v7 = vsel %vm162_vm1, %v647_v62, 0.0  ;;  %1105 = vmatprep.subr.bf16.mxu0 %v1125_v13 }
 0x4e5   :  { %v663_v33 = vsel %vm162_vm1, %v645_v31, 0.0  ;;  %1106 = vmatpush3.bf16.msra.mxu0 %v1125_v13 }
 0x4e6   :  { %664 = vadd.xlane.f32.xlu1 %v663_v33  ;;  %667 = vadd.xlane.f32.xlu0 %v666_v4 }
 0x4ea   :  { %670 = vadd.xlane.f32.xlu1 %v669_v7 }
 0x563   :  { %v650_v34 = vpop.xlane.xlu0 %649 }
 0x564   :  { %v672_v37 = vmul.f32 0.03125, %v650_v34 }
 0x566   :  { %v1527_v38 = vsub.f32 %v640_v63, %v672_v37 }
 0x567   :  { %v653_v18 = vpop.xlane.xlu1 %652  ;;  %v656_v39 = vpop.xlane.xlu0 %655 }
 0x568   :  { %v673_v14 = vmul.f32 0.03125, %v653_v18  ;;  %v674_v41 = vmul.f32 0.03125, %v656_v39  ;;  %v688_v0 = vmul.f32 %v1527_v38, %v1527_v38 }
 0x56a   :  { %v1531_v60 = vsub.f32 %v641_v9, %v673_v14  ;;  %v1533_v42 = vsub.f32 %v642_v2, %v674_v41  ;;  %v696_v44 = vsel %vm162_vm1, %v688_v0, 0.0 }
 0x56b   :  { %v659_v45 = vpop.xlane.xlu1 %658  ;;  %697 = vadd.xlane.f32.xlu0 %v696_v44  ;;  %v662_v46 = vpop.xlane.xlu0 %661 }
 0x56c   :  { %v675_v29 = vmul.f32 0.03125, %v659_v45  ;;  %v676_v57 = vmul.f32 0.03125, %v662_v46  ;;  %v689_v8 = vmul.f32 %v1531_v60, %v1531_v60  ;;  %v690_v47 = vmul.f32 %v1533_v42, %v1533_v42 }
 0x56e   :  { %v1540_v49 = vsub.f32 %v643_v10, %v675_v29  ;;  %v1542_v36 = vsub.f32 %v644_v22, %v676_v57  ;;  %v699_v16 = vsel %vm162_vm1, %v689_v8, 0.0  ;;  %v702_v54 = vsel %vm162_vm1, %v690_v47, 0.0  ;;  %v1124_v22 = vld [vmem:[%s1682_s9] sm:$0xff]  }
 0x56f   :  { %700 = vadd.xlane.f32.xlu1 %v699_v16  ;;  %v665_v17 = vpop.xlane.xlu1 %664  ;;  %703 = vadd.xlane.f32.xlu0 %v702_v54  ;;  %v668_v55 = vpop.xlane.xlu0 %667 }
 0x570   :  { %v677_v56 = vmul.f32 0.03125, %v665_v17  ;;  %v678_v58 = vmul.f32 0.03125, %v668_v55  ;;  %v691_v52 = vmul.f32 %v1540_v49, %v1540_v49  ;;  %v692_v61 = vmul.f32 %v1542_v36, %v1542_v36  ;;  %1093 = vmatprep.subr.bf16.mxu1 %v1124_v22 }
 0x571   :  { %1094 = vmatpush3.bf16.msra.mxu1 %v1124_v22 }
 0x572   :  { %v1550_v63 = vsub.f32 %v645_v31, %v677_v56  ;;  %v1552_v1 = vsub.f32 %v646_v24, %v678_v58  ;;  %v705_v50 = vsel %vm162_vm1, %v691_v52, 0.0  ;;  %v708_v2 = vsel %vm162_vm1, %v692_v61, 0.0 }
 0x573   :  { %706 = vadd.xlane.f32.xlu1 %v705_v50  ;;  %v671_v20 = vpop.xlane.xlu1 %670  ;;  %709 = vadd.xlane.f32.xlu0 %v708_v2 }
 0x574   :  { %v679_v3 = vmul.f32 0.03125, %v671_v20  ;;  %v693_v21 = vmul.f32 %v1550_v63, %v1550_v63  ;;  %v694_v9 = vmul.f32 %v1552_v1, %v1552_v1 }
 0x576   :  { %v1560_v10 = vsub.f32 %v647_v62, %v679_v3  ;;  %v711_v6 = vsel %vm162_vm1, %v693_v21, 0.0  ;;  %v714_v11 = vsel %vm162_vm1, %v694_v9, 0.0 }
 0x577   :  { %712 = vadd.xlane.f32.xlu1 %v711_v6  ;;  %715 = vadd.xlane.f32.xlu0 %v714_v11 }
 0x578   :  { %v695_v12 = vmul.f32 %v1560_v10, %v1560_v10 }
 0x57a   :  { %v717_v15 = vsel %vm162_vm1, %v695_v12, 0.0 }
 0x57b   :  { %718 = vadd.xlane.f32.xlu1 %v717_v15 }
 0x5f4   :  { %v698_v23 = vpop.xlane.xlu0 %697 }
 0x5f5   :  { %v720_v24 = vmul.f32 0.03125, %v698_v23 }
 0x5f7   :  { %v728_v25 = vadd.f32 1e-05, %v720_v24 }
 0x5f8   :  { %v701_v27 = vpop.xlane.xlu1 %700  ;;  %v704_v30 = vpop.xlane.xlu0 %703 }
 0x5f9   :  { %1158 = vrsqrt.f32 %v728_v25  ;;  %v721_v31 = vmul.f32 0.03125, %v701_v27  ;;  %v722_v62 = vmul.f32 0.03125, %v704_v30 }
 0x5fb   :  { %v729_v33 = vadd.f32 1e-05, %v721_v31  ;;  %v730_v4 = vadd.f32 1e-05, %v722_v62 }
 0x5fc   :  { %v707_v7 = vpop.xlane.xlu1 %706  ;;  %v710_v34 = vpop.xlane.xlu0 %709 }
 0x5fd   :  { %1160 = vrsqrt.f32 %v729_v33  ;;  %v723_v37 = vmul.f32 0.03125, %v707_v7  ;;  %v724_v18 = vmul.f32 0.03125, %v710_v34 }
 0x5fe   :  { %1162 = vrsqrt.f32 %v730_v4 }
 0x5ff   :  { %v731_v39 = vadd.f32 1e-05, %v723_v37  ;;  %v732_v14 = vadd.f32 1e-05, %v724_v18 }
 0x600   :  { %v713_v41 = vpop.xlane.xlu1 %712  ;;  %v716_v0 = vpop.xlane.xlu0 %715 }
 0x601   :  { %1164 = vrsqrt.f32 %v731_v39  ;;  %v725_v44 = vmul.f32 0.03125, %v713_v41  ;;  %v726_v45 = vmul.f32 0.03125, %v716_v0 }
 0x602   :  { %1166 = vrsqrt.f32 %v732_v14 }
 0x603   :  { %v733_v46 = vadd.f32 1e-05, %v725_v44  ;;  %v734_v29 = vadd.f32 1e-05, %v726_v45 }
 0x604   :  { %v719_v57 = vpop.xlane.xlu1 %718 }
 0x605   :  { %1168 = vrsqrt.f32 %v733_v46  ;;  %v727_v8 = vmul.f32 0.03125, %v719_v57 }
 0x606   :  { %v1159_v47 = vpop.eup %1158  ;;  %1170 = vrsqrt.f32 %v734_v29 }
 0x607   :  { %v735_v16 = vadd.f32 1e-05, %v727_v8  ;;  %v744_v54 = vmul.f32 %v1159_v47, %v1527_v38 }
 0x609   :  { %1172 = vrsqrt.f32 %v735_v16  ;;  %v752_v17 = vmul.f32 %v1341_v51, %v744_v54 }
 0x60a   :  { %v1161_v55 = vpop.eup %1160 }
 0x60b   :  { %v1163_v56 = vpop.eup %1162  ;;  %v745_v58 = vmul.f32 %v1161_v55, %v1531_v60  ;;  %v760_v50 = vadd.f32 %v1349_v59, %v752_v17 }
 0x60c   :  { %v746_v52 = vmul.f32 %v1163_v56, %v1533_v42 }
 0x60d   :  { %v753_v61 = vmul.f32 %v1341_v51, %v745_v58  ;;  %v768_v42 = vadd.f32 %v760_v50, %v1462_v26 }
 0x60e   :  { %v1165_v2 = vpop.eup %1164  ;;  %v754_v20 = vmul.f32 %v1341_v51, %v746_v52 }
 0x60f   :  { %v1167_v3 = vpop.eup %1166  ;;  %v747_v21 = vmul.f32 %v1165_v2, %v1540_v49  ;;  %v761_v38 = vadd.f32 %v1349_v59, %v753_v61 }
 0x610   :  { %v748_v9 = vmul.f32 %v1167_v3, %v1542_v36  ;;  %v762_v6 = vadd.f32 %v1349_v59, %v754_v20 }
 0x611   :  { %v755_v60 = vmul.f32 %v1341_v51, %v747_v21  ;;  %v769_v11 = vadd.f32 %v761_v38, %v1467_v32 }
 0x612   :  { %v1169_v12 = vpop.eup %1168  ;;  %v756_v15 = vmul.f32 %v1341_v51, %v748_v9  ;;  %v770_v26 = vadd.f32 %v762_v6, %v1476_v35 }
 0x613   :  { %v1171_v5 = vpop.eup %1170  ;;  %v763_v19 = vadd.f32 %v1349_v59, %v755_v60  ;;  %v776_v22 = vpack.c.bf16 %v769_v11, %v768_v42  ;;  %v749_v49 = vmul.f32 %v1169_v12, %v1550_v63 }
 0x614   :  { %v750_v13 = vmul.f32 %v1171_v5, %v1552_v1  ;;  %v764_v36 = vadd.f32 %v1349_v59, %v756_v15 }
 0x615   :  { %1095 = vmatprep.mubr.msk.bf16.mxu1 %vm162_vm1, %v776_v22  ;;  %1107 = vmatprep.mubr.msk.bf16.mxu0 %vm162_vm1, %v776_v22  ;;  %v771_v32 = vadd.f32 %v763_v19, %v1480_v40  ;;  %v757_v23 = vmul.f32 %v1341_v51, %v749_v49 }
 0x616   :  { %v1173_v24 = vpop.eup %1172  ;;  %v758_v25 = vmul.f32 %v1341_v51, %v750_v13  ;;  %v772_v30 = vadd.f32 %v764_v36, %v1491_v43 }
 0x617   :  { %v751_v27 = vmul.f32 %v1173_v24, %v1560_v10  ;;  %v777_v63 = vpack.c.bf16 %v771_v32, %v770_v26  ;;  %v765_v1 = vadd.f32 %v1349_v59, %v757_v23 }
 0x618   :  { %v766_v31 = vadd.f32 %v1349_v59, %v758_v25 }
 0x619   :  { %1096 = vmatmul.mubr.msk.bf16.vlgmr.msra.gmra.mxu1 %vm162_vm1, %v777_v63  ;;  %1108 = vmatmul.mubr.msk.bf16.vlgmr.msra.gmra.mxu0 %vm162_vm1, %v777_v63  ;;  %v773_v35 = vadd.f32 %v765_v1, %v1495_v28  ;;  %v759_v40 = vmul.f32 %v1341_v51, %v751_v27  ;;  %v1014_v51 = vld [vmem:[%s1684_s10] ss:$0 sm:$0xff] }
 0x61a   :  { %v774_v10 = vadd.f32 %v766_v31, %v1505_v48 }
 0x61b   :  { %v778_v62 = vpack.c.bf16 %v773_v35, %v772_v30  ;;  %v767_v33 = vadd.f32 %v1349_v59, %v759_v40  ;;  %v1021_v59 = vld [vmem:[%s1685_s12] ss:$0 sm:$0xff] }
 0x61d   :  { %1099 = vmatprep.mubr.msk.bf16.mxu1 %vm162_vm1, %v778_v62  ;;  %1111 = vmatprep.mubr.msk.bf16.mxu0 %vm162_vm1, %v778_v62  ;;  %v775_v43 = vadd.f32 %v767_v33, %v1508_v53 }
 0x61f   :  { %v779_v4 = vpack.c.bf16 %v775_v43, %v774_v10 }
 0x621   :  { %1100 = vmatmul.mubr.msk.bf16.gmra.mxu1 %vm162_vm1, %v779_v4  ;;  %1112 = vmatmul.mubr.msk.bf16.gmra.mxu0 %vm162_vm1, %v779_v4 }
 0x6d9   :  { %v1097_v28 = vpop.f32.mrf.mxu1  ;;  %v1109_v7 = vpop.f32.mrf.mxu0 }
 0x6da   :  { %v858_v34 = vadd.f32 %v1097_v28, %v1014_v51  ;;  %v954_v37 = vadd.f32 %v1109_v7, %v1021_v59 }
 0x6db   :  { %v849_v48 = vpop.f32.mrf.mxu1  ;;  %v945_v18 = vpop.f32.mrf.mxu0 }
 0x6dc   :  { %882 = vst [vmem:[%s1686_s13 + $0x10] sm:$0xff] %v858_v34  ;;  %978 = vst [vmem:[%s1687_s14 + $0x10] sm:$0xff] %v954_v37  ;;  %v850_v53 = vadd.f32 %v1014_v51, %v849_v48  ;;  %v946_v39 = vadd.f32 %v1021_v59, %v945_v18 }
 0x6dd   :  { %v1098_v14 = vpop.f32.mrf.mxu1  ;;  %v1110_v41 = vpop.f32.mrf.mxu0 }
 0x6de   :  { %880 = vst [vmem:[%s1686_s13] sm:$0xff] %v850_v53  ;;  %976 = vst [vmem:[%s1687_s14] sm:$0xff] %v946_v39  ;;  %v861_v0 = vadd.f32 %v1098_v14, %v1014_v51  ;;  %v957_v44 = vadd.f32 %v1110_v41, %v1021_v59 }
 0x6df   :  { %v852_v45 = vpop.f32.mrf.mxu1  ;;  %v948_v46 = vpop.f32.mrf.mxu0 }
 0x6e0   :  { %883 = vst [vmem:[%s1686_s13 + $0x18] sm:$0xff] %v861_v0  ;;  %979 = vst [vmem:[%s1687_s14 + $0x18] sm:$0xff] %v957_v44  ;;  %v853_v29 = vadd.f32 %v1014_v51, %v852_v45  ;;  %v949_v57 = vadd.f32 %v1021_v59, %v948_v46 }
 0x6e1   :  { %v1101_v8 = vpop.f32.mrf.mxu1  ;;  %v1113_v47 = vpop.f32.mrf.mxu0 }
 0x6e2   :  { %881 = vst [vmem:[%s1686_s13 + $0x8] sm:$0xff] %v853_v29  ;;  %977 = vst [vmem:[%s1687_s14 + $0x8] sm:$0xff] %v949_v57  ;;  %v874_v16 = vadd.f32 %v1101_v8, %v1014_v51  ;;  %v970_v54 = vadd.f32 %v1113_v47, %v1021_v59 }
 0x6e3   :  { %v865_v17 = vpop.f32.mrf.mxu1  ;;  %v961_v55 = vpop.f32.mrf.mxu0 }
 0x6e4   :  { %886 = vst [vmem:[%s1686_s13 + $0x30] sm:$0xff] %v874_v16  ;;  %982 = vst [vmem:[%s1687_s14 + $0x30] sm:$0xff] %v970_v54  ;;  %v866_v56 = vadd.f32 %v1014_v51, %v865_v17  ;;  %v962_v58 = vadd.f32 %v1021_v59, %v961_v55 }
 0x6e5   :  { %v1102_v52 = vpop.f32.mrf.mxu1  ;;  %v1114_v61 = vpop.f32.mrf.mxu0 }
 0x6e6   :  { %884 = vst [vmem:[%s1686_s13 + $0x20] sm:$0xff] %v866_v56  ;;  %980 = vst [vmem:[%s1687_s14 + $0x20] sm:$0xff] %v962_v58  ;;  %v877_v50 = vadd.f32 %v1102_v52, %v1014_v51  ;;  %v973_v2 = vadd.f32 %v1114_v61, %v1021_v59 }
 0x6e7   :  { %v868_v20 = vpop.f32.mrf.mxu1  ;;  %v964_v3 = vpop.f32.mrf.mxu0 }
 0x6e8   :  { %887 = vst [vmem:[%s1686_s13 + $0x38] sm:$0xff] %v877_v50  ;;  %983 = vst [vmem:[%s1687_s14 + $0x38] sm:$0xff] %v973_v2  ;;  %v869_v21 = vadd.f32 %v1014_v51, %v868_v20  ;;  %v965_v38 = vadd.f32 %v1021_v59, %v964_v3 }
 0x6ea   :  { %885 = vst [vmem:[%s1686_s13 + $0x28] sm:$0xff] %v869_v21  ;;  %981 = vst [vmem:[%s1687_s14 + $0x28] sm:$0xff] %v965_v38 }

// kernel: aron_forward.4
= control target key start
LH: loop header
LB: loop body
LE: loop exit
PB: predicated region body
PF: predicated region fallthrough
CT: control target
= control target key end

     0   :  { %vm60_vm0 = vcmask 261120   ;;  %v1808_v0 = vmov 0.0   ;;  %vm1809_vm1 = vmmov 0   ;;  %s1811_s29 = smov 64   ;;  %s2297_s2 = inlined_call_operand.vmem [shape: bf16[32,128], index: 2, kind: input, shape index: {}]   ;;  %s2298_s3 = inlined_call_operand.vmem [shape: bf16[32,128], index: 3, kind: input, shape index: {}]   ;;  %s2299_s0 = inlined_call_operand.vmem [shape: f32[64,128], index: 0, kind: input, shape index: {}]   ;;  %s2300_s1 = inlined_call_operand.vmem [shape: f32[64,128], index: 1, kind: input, shape index: {}]   ;;  %s2301_s4 = inlined_call_operand.vmem [shape: f32[64,32], index: 4, kind: output, shape index: {0}]   ;;  %s2302_s5 = inlined_call_operand.vmem [shape: f32[64,32], index: 5, kind: output, shape index: {1}]  }
   0x1   :  { %1543 = vmatprep.subr.bf16.mxu0 %v1808_v0  ;;  %1551 = vmatprep.subr.bf16.mxu1 %v1808_v0  ;;  %v1848_v1 = vld [vmem:[%s2297_s2 + $0x8] sm:$0xff]   ;;  %61 = vst.msk [vmem:[#allocation2] sm:$0xff] %vm60_vm0, %v1808_v0  ;;  %62 = vst.msk [vmem:[#allocation2 + $0x8] sm:$0xff] %vm60_vm0, %v1808_v0  ;;  %v1871_v3 = vld [vmem:[%s2297_s2] sm:$0xff]   ;;  %s1810_s2 = smov 32  }
   0x2   :  { %63 = vst.msk [vmem:[#allocation2 + $0x10] sm:$0xff] %vm60_vm0, %v1808_v0  ;;  %64 = vst.msk [vmem:[#allocation2 + $0x18] sm:$0xff] %vm60_vm0, %v1808_v0  ;;  %v1861_v2 = vld [vmem:[%s2298_s3 + $0x8] sm:$0xff]   ;;  %1547 = vmatprep.mubr.msk.bf16.mxu0 %vm1809_vm1, %v1808_v0  ;;  %1555 = vmatprep.mubr.msk.bf16.mxu1 %vm1809_vm1, %v1808_v0  ;;  %v1878_v4 = vld [vmem:[%s2298_s3] sm:$0xff]  }
   0x3   :  { %1544 = vmatpush3.bf16.msra.mxu0 %v1848_v1  ;;  %1552 = vmatpush3.bf16.msra.mxu1 %v1861_v2  ;;  %v80_v11 = vld [vmem:[%s2299_s0] sm:$0xff]  ;;  %v1434_v12 = vld [vmem:[%s2300_s1 + $0x38] sm:$0xff]  ;;  %v1441_v55 = vld [vmem:[%s2299_s0 + $0x8] sm:$0xff] }
   0x4   :  { %1545 = vmatprep.subr.bf16.mxu0 %v1808_v0  ;;  %1553 = vmatprep.subr.bf16.mxu1 %v1808_v0  ;;  %v1443_v59 = vld [vmem:[%s2300_s1 + $0x30] sm:$0xff] }
   0x7   :  { %1546 = vmatpush3.bf16.msra.mxu0 %v1871_v3  ;;  %1554 = vmatpush3.bf16.msra.mxu1 %v1878_v4 }
   0x8   :  { %v73_v5 = vld [vmem:[#allocation2] sm:$0xff]  ;;  %v75_v7 = vld [vmem:[#allocation2 + $0x8] sm:$0xff]  ;;  %1559 = vmatprep.subr.bf16.mxu0 %v1808_v0  ;;  %1567 = vmatprep.subr.bf16.mxu1 %v1808_v0 }
   0x9   :  { %v77_v6 = vld [vmem:[#allocation2 + $0x10] sm:$0xff]  ;;  %v81_v8 = vpack.c.bf16 %v73_v5, %v73_v5  ;;  %206 = vrot.lane.b32.xlu1 %v75_v7, %s1810_s2  ;;  %v79_v10 = vld [vmem:[#allocation2 + $0x18] sm:$0xff] }
   0xa   :  { %v141_v9 = vpack.c.bf16 %v77_v6, %v77_v6 }
   0xb   :  { %1548 = vmatmul.mubr.msk.bf16.vlgmr.msra.gmra.mxu0 %vm60_vm0, %v81_v8 }
   0xc   :  { %1556 = vmatmul.mubr.msk.bf16.vlgmr.msra.gmra.mxu1 %vm60_vm0, %v141_v9  ;;  %1560 = vmatpush3.bf16.msra.mxu0 %v1848_v1 }
   0xd   :  { %1568 = vmatpush3.bf16.msra.mxu1 %v1861_v2  ;;  %234 = vrot.lane.b32.xlu1 %v79_v10, %s1810_s2 }
   0xe   :  { %1561 = vmatprep.subr.bf16.mxu0 %v1808_v0  ;;  %1563 = vmatprep.mubr.msk.bf16.mxu0 %vm1809_vm1, %v1808_v0 }
   0xf   :  { %1569 = vmatprep.subr.bf16.mxu1 %v1808_v0  ;;  %1571 = vmatprep.mubr.msk.bf16.mxu1 %vm1809_vm1, %v1808_v0 }
  0x10   :  { %1562 = vmatpush3.bf16.msra.mxu0 %v1871_v3 }
  0x11   :  { %1570 = vmatpush3.bf16.msra.mxu1 %v1878_v4  ;;  %1575 = vmatprep.subr.bf16.mxu0 %v1808_v0 }
  0x12   :  { %1583 = vmatprep.subr.bf16.mxu1 %v1808_v0 }
  0x7b   :  { %v207_v37 = vpop.permute.xlu1 %206 }
  0x7f   :  { %v235_v39 = vpop.permute.xlu1 %234 }
  0xcb   :  { %v132_v13 = vpop.f32.mrf.mxu0 }
  0xcc   :  { %v191_v14 = vpop.f32.mrf.mxu1  ;;  %v138_v15 = vadd.f32 %v132_v13, %v80_v11 }
  0xcd   :  { %v197_v16 = vadd.f32 %v1434_v12, %v191_v14  ;;  %v1549_v17 = vpop.f32.mrf.mxu0 }
  0xce   :  { %v1557_v18 = vpop.f32.mrf.mxu1  ;;  %1680 = vtanh.f32 %v138_v15  ;;  %v1438_v25 = vmul.f32 -1.442695, %v138_v15 }
  0xcf   :  { %v135_v19 = vpop.f32.mrf.mxu0  ;;  %1682 = vtanh.f32 %v197_v16  ;;  %v1439_v26 = vmul.f32 -1.442695, %v197_v16 }
  0xd0   :  { %v194_v20 = vpop.f32.mrf.mxu1  ;;  %1684 = vpow2.f32 %v1438_v25 }
  0xd1   :  { %v1550_v21 = vpop.f32.mrf.mxu0  ;;  %1686 = vpow2.f32 %v1439_v26 }
  0xd2   :  { %v1558_v22 = vpop.f32.mrf.mxu1 }
  0xdb   :  { %v1681_v23 = vpop.eup %1680 }
  0xdc   :  { %211 = vrot.lane.b32.xlu0 %v1681_v23, %s1810_s2  ;;  %v1683_v24 = vpop.eup %1682 }
  0xdd   :  { %v1685_v27 = vpop.eup %1684 }
  0xde   :  { %v201_v28 = vadd.f32 1.0, %v1685_v27  ;;  %v1687_v29 = vpop.eup %1686 }
  0xdf   :  { %v229_v30 = vadd.f32 1.0, %v1687_v29 }
  0xe0   :  { %239 = vrot.lane.b32.xlu0 %v1683_v24, %s1810_s2  ;;  %1688 = vrcp.f32 %v201_v28 }
  0xe1   :  { %1690 = vrcp.f32 %v229_v30 }
  0xed   :  { %v1689_v31 = vpop.eup %1688 }
  0xee   :  { %v1691_v34 = vpop.eup %1690  ;;  %v209_v38 = vmul.f32 %v1689_v31, %v207_v37 }
  0xef   :  { %v237_v42 = vmul.f32 %v1691_v34, %v235_v39 }
 0x14e   :  { %v212_v32 = vpop.permute.xlu0 %211 }
 0x14f   :  { %v214_v33 = vmul.f32 %v1689_v31, %v212_v32 }
 0x151   :  { %216 = vrot.lane.b32.xlu0 %v214_v33, %s1810_s2 }
 0x152   :  { %v240_v35 = vpop.permute.xlu0 %239 }
 0x153   :  { %v242_v36 = vmul.f32 %v1691_v34, %v240_v35 }
 0x155   :  { %244 = vrot.lane.b32.xlu1 %v242_v36, %s1810_s2 }
 0x1c3   :  { %v217_v40 = vpop.permute.xlu0 %216 }
 0x1c4   :  { %v1911_v41 = vadd.f32 %v217_v40, %v209_v38  ;;  %v1449_v38 = vld [vmem:[%s2299_s0 + $0x10] sm:$0xff] }
 0x1c6   :  { %1692 = vtanh.f32 %v1911_v41 }
 0x1c7   :  { %v245_v43 = vpop.permute.xlu1 %244 }
 0x1c8   :  { %v1914_v44 = vadd.f32 %v245_v43, %v237_v42  ;;  %v1451_v42 = vld [vmem:[%s2300_s1 + $0x28] sm:$0xff] }
 0x1ca   :  { %1694 = vtanh.f32 %v1914_v44 }
 0x1d3   :  { %v1693_v45 = vpop.eup %1692 }
 0x1d4   :  { %222 = vrot.lane.b32.xlu0 %v1693_v45, %s1810_s2 }
 0x1d7   :  { %v1695_v46 = vpop.eup %1694 }
 0x1d8   :  { %250 = vrot.lane.b32.xlu1 %v1695_v46, %s1810_s2 }
 0x246   :  { %v223_v47 = vpop.permute.xlu0 %222 }
 0x247   :  { %v1919_v48 = vmul.f32 %v1689_v31, %v223_v47 }
 0x249   :  { %v267_v49 = vpack.c.bf16 %v1919_v48, %v1919_v48 }
 0x24a   :  { %v251_v50 = vpop.permute.xlu1 %250 }
 0x24b   :  { %v1923_v51 = vmul.f32 %v1691_v34, %v251_v50  ;;  %269 = vrot.lane.b32.xlu0 %v267_v49, %s1811_s29 }
 0x24d   :  { %v317_v52 = vpack.c.bf16 %v1923_v51, %v1923_v51 }
 0x24f   :  { %319 = vrot.lane.b32.xlu1 %v317_v52, %s1811_s29 }
 0x2bd   :  { %v270_v53 = vpop.permute.xlu0 %269 }
 0x2be   :  { %1564 = vmatmul.mubr.msk.bf16.vlgmr.msra.gmra.mxu0 %vm60_vm0, %v270_v53 }
 0x2bf   :  { %1576 = vmatpush3.bf16.msra.mxu0 %v1848_v1  ;;  %1579 = vmatprep.mubr.msk.bf16.mxu0 %vm1809_vm1, %v1808_v0 }
 0x2c0   :  { %1577 = vmatprep.subr.bf16.mxu0 %v1808_v0 }
 0x2c1   :  { %v320_v54 = vpop.permute.xlu1 %319 }
 0x2c2   :  { %1572 = vmatmul.mubr.msk.bf16.vlgmr.msra.gmra.mxu1 %vm60_vm0, %v320_v54 }
 0x2c3   :  { %1584 = vmatpush3.bf16.msra.mxu1 %v1861_v2  ;;  %1578 = vmatpush3.bf16.msra.mxu0 %v1871_v3 }
 0x2c4   :  { %1585 = vmatprep.subr.bf16.mxu1 %v1808_v0  ;;  %1587 = vmatprep.mubr.msk.bf16.mxu1 %vm1809_vm1, %v1808_v0 }
 0x2c5   :  { %1591 = vmatprep.subr.bf16.mxu0 %v1808_v0 }
 0x2c7   :  { %1586 = vmatpush3.bf16.msra.mxu1 %v1878_v4 }
 0x2c8   :  { %1599 = vmatprep.subr.bf16.mxu1 %v1808_v0 }
 0x37e   :  { %v308_v56 = vpop.f32.mrf.mxu0 }
 0x37f   :  { %v314_v57 = vadd.f32 %v1441_v55, %v308_v56 }
 0x380   :  { %v1565_v58 = vpop.f32.mrf.mxu0 }
 0x381   :  { %1696 = vtanh.f32 %v314_v57  ;;  %v1445_v10 = vmul.f32 -1.442695, %v314_v57 }
 0x382   :  { %v311_v60 = vpop.f32.mrf.mxu0  ;;  %v358_v61 = vpop.f32.mrf.mxu1 }
 0x383   :  { %v364_v62 = vadd.f32 %v1443_v59, %v358_v61 }
 0x384   :  { %v1566_v63 = vpop.f32.mrf.mxu0  ;;  %v1573_v5 = vpop.f32.mrf.mxu1 }
 0x385   :  { %1698 = vtanh.f32 %v364_v62  ;;  %v1446_v11 = vmul.f32 -1.442695, %v364_v62 }
 0x386   :  { %v361_v6 = vpop.f32.mrf.mxu1  ;;  %1700 = vpow2.f32 %v1445_v10 }
 0x387   :  { %1702 = vpow2.f32 %v1446_v11 }
 0x388   :  { %v1574_v7 = vpop.f32.mrf.mxu1 }
 0x38e   :  { %v1697_v8 = vpop.eup %1696 }
 0x38f   :  { %374 = vrot.lane.b32.xlu0 %v1697_v8, %s1810_s2 }
 0x392   :  { %v1699_v9 = vpop.eup %1698 }
 0x393   :  { %398 = vrot.lane.b32.xlu1 %v1699_v9, %s1810_s2  ;;  %v1701_v12 = vpop.eup %1700 }
 0x394   :  { %v368_v13 = vadd.f32 1.0, %v1701_v12  ;;  %v1703_v14 = vpop.eup %1702 }
 0x395   :  { %v392_v15 = vadd.f32 1.0, %v1703_v14 }
 0x396   :  { %1704 = vrcp.f32 %v368_v13 }
 0x397   :  { %1706 = vrcp.f32 %v392_v15 }
 0x3a3   :  { %v1705_v16 = vpop.eup %1704 }
 0x3a4   :  { %v1707_v19 = vpop.eup %1706  ;;  %v372_v22 = vmul.f32 %v1705_v16, %v1911_v41 }
 0x3a5   :  { %v396_v25 = vmul.f32 %v1707_v19, %v1914_v44 }
 0x401   :  { %v375_v17 = vpop.permute.xlu0 %374 }
 0x402   :  { %v377_v18 = vmul.f32 %v1705_v16, %v375_v17 }
 0x404   :  { %379 = vrot.lane.b32.xlu0 %v377_v18, %s1810_s2 }
 0x405   :  { %v399_v20 = vpop.permute.xlu1 %398 }
 0x406   :  { %v401_v21 = vmul.f32 %v1707_v19, %v399_v20 }
 0x408   :  { %403 = vrot.lane.b32.xlu1 %v401_v21, %s1810_s2 }
 0x476   :  { %v380_v23 = vpop.permute.xlu0 %379 }
 0x477   :  { %v1954_v24 = vadd.f32 %v380_v23, %v372_v22  ;;  %v1457_v23 = vld [vmem:[%s2299_s0 + $0x18] sm:$0xff] }
 0x479   :  { %1708 = vtanh.f32 %v1954_v24 }
 0x47a   :  { %v404_v26 = vpop.permute.xlu1 %403 }
 0x47b   :  { %v1958_v27 = vadd.f32 %v404_v26, %v396_v25 }
 0x47d   :  { %1710 = vtanh.f32 %v1958_v27 }
 0x486   :  { %v1709_v28 = vpop.eup %1708 }
 0x487   :  { %385 = vrot.lane.b32.xlu0 %v1709_v28, %s1810_s2 }
 0x48a   :  { %v1711_v29 = vpop.eup %1710 }
 0x48b   :  { %409 = vrot.lane.b32.xlu1 %v1711_v29, %s1810_s2 }
 0x4f9   :  { %v386_v30 = vpop.permute.xlu0 %385 }
 0x4fa   :  { %v1963_v31 = vmul.f32 %v1705_v16, %v386_v30 }
 0x4fc   :  { %v427_v32 = vpack.c.bf16 %v1963_v31, %v1963_v31 }
 0x4fd   :  { %v410_v33 = vpop.permute.xlu1 %409 }
 0x4fe   :  { %v1967_v34 = vmul.f32 %v1707_v19, %v410_v33  ;;  %429 = vrot.lane.b32.xlu0 %v427_v32, %s1811_s29 }
 0x500   :  { %v477_v35 = vpack.c.bf16 %v1967_v34, %v1967_v34 }
 0x502   :  { %479 = vrot.lane.b32.xlu1 %v477_v35, %s1811_s29 }
 0x570   :  { %v430_v36 = vpop.permute.xlu0 %429 }
 0x571   :  { %1580 = vmatmul.mubr.msk.bf16.vlgmr.msra.gmra.mxu0 %vm60_vm0, %v430_v36 }
 0x572   :  { %1592 = vmatpush3.bf16.msra.mxu0 %v1848_v1  ;;  %1595 = vmatprep.mubr.msk.bf16.mxu0 %vm1809_vm1, %v1808_v0 }
 0x573   :  { %1593 = vmatprep.subr.bf16.mxu0 %v1808_v0 }
 0x574   :  { %v480_v37 = vpop.permute.xlu1 %479 }
 0x575   :  { %1588 = vmatmul.mubr.msk.bf16.vlgmr.msra.gmra.mxu1 %vm60_vm0, %v480_v37 }
 0x576   :  { %1600 = vmatpush3.bf16.msra.mxu1 %v1861_v2  ;;  %1594 = vmatpush3.bf16.msra.mxu0 %v1871_v3 }
 0x577   :  { %1601 = vmatprep.subr.bf16.mxu1 %v1808_v0  ;;  %1603 = vmatprep.mubr.msk.bf16.mxu1 %vm1809_vm1, %v1808_v0 }
 0x578   :  { %1607 = vmatprep.subr.bf16.mxu0 %v1808_v0 }
 0x57a   :  { %1602 = vmatpush3.bf16.msra.mxu1 %v1878_v4 }
 0x57b   :  { %1615 = vmatprep.subr.bf16.mxu1 %v1808_v0 }
 0x631   :  { %v468_v39 = vpop.f32.mrf.mxu0 }
 0x632   :  { %v474_v40 = vadd.f32 %v1449_v38, %v468_v39 }
 0x633   :  { %v1581_v41 = vpop.f32.mrf.mxu0 }
 0x634   :  { %1712 = vtanh.f32 %v474_v40  ;;  %v1453_v54 = vmul.f32 -1.442695, %v474_v40 }
 0x635   :  { %v471_v43 = vpop.f32.mrf.mxu0  ;;  %v518_v44 = vpop.f32.mrf.mxu1 }
 0x636   :  { %v524_v45 = vadd.f32 %v1451_v42, %v518_v44 }
 0x637   :  { %v1582_v46 = vpop.f32.mrf.mxu0  ;;  %v1589_v47 = vpop.f32.mrf.mxu1 }
 0x638   :  { %1714 = vtanh.f32 %v524_v45  ;;  %v1454_v55 = vmul.f32 -1.442695, %v524_v45 }
 0x639   :  { %v521_v49 = vpop.f32.mrf.mxu1  ;;  %1716 = vpow2.f32 %v1453_v54 }
 0x63a   :  { %1718 = vpow2.f32 %v1454_v55 }
 0x63b   :  { %v1590_v50 = vpop.f32.mrf.mxu1 }
 0x641   :  { %v1713_v52 = vpop.eup %1712 }
 0x642   :  { %534 = vrot.lane.b32.xlu0 %v1713_v52, %s1810_s2 }
 0x645   :  { %v1715_v53 = vpop.eup %1714 }
 0x646   :  { %558 = vrot.lane.b32.xlu1 %v1715_v53, %s1810_s2  ;;  %v1717_v56 = vpop.eup %1716 }
 0x647   :  { %v528_v57 = vadd.f32 1.0, %v1717_v56  ;;  %v1719_v58 = vpop.eup %1718 }
 0x648   :  { %v552_v59 = vadd.f32 1.0, %v1719_v58 }
 0x649   :  { %1720 = vrcp.f32 %v528_v57 }
 0x64a   :  { %1722 = vrcp.f32 %v552_v59 }
 0x656   :  { %v1721_v60 = vpop.eup %1720 }
 0x657   :  { %v1723_v63 = vpop.eup %1722  ;;  %v532_v7 = vmul.f32 %v1721_v60, %v1954_v24 }
 0x658   :  { %v556_v10 = vmul.f32 %v1723_v63, %v1958_v27  ;;  %v1459_v27 = vld [vmem:[%s2300_s1 + $0x20] sm:$0xff] }
 0x6b4   :  { %v535_v61 = vpop.permute.xlu0 %534 }
 0x6b5   :  { %v537_v62 = vmul.f32 %v1721_v60, %v535_v61 }
 0x6b7   :  { %539 = vrot.lane.b32.xlu0 %v537_v62, %s1810_s2 }
 0x6b8   :  { %v559_v5 = vpop.permute.xlu1 %558 }
 0x6b9   :  { %v561_v6 = vmul.f32 %v1723_v63, %v559_v5 }
 0x6bb   :  { %563 = vrot.lane.b32.xlu1 %v561_v6, %s1810_s2 }
 0x729   :  { %v540_v8 = vpop.permute.xlu0 %539 }
 0x72a   :  { %v1998_v9 = vadd.f32 %v540_v8, %v532_v7 }
 0x72c   :  { %1724 = vtanh.f32 %v1998_v9 }
 0x72d   :  { %v564_v11 = vpop.permute.xlu1 %563 }
 0x72e   :  { %v2002_v12 = vadd.f32 %v564_v11, %v556_v10  ;;  %v1465_v10 = vld [vmem:[%s2299_s0 + $0x20] sm:$0xff] }
 0x730   :  { %1726 = vtanh.f32 %v2002_v12 }
 0x739   :  { %v1725_v13 = vpop.eup %1724 }
 0x73a   :  { %545 = vrot.lane.b32.xlu0 %v1725_v13, %s1810_s2 }
 0x73d   :  { %v1727_v14 = vpop.eup %1726 }
 0x73e   :  { %569 = vrot.lane.b32.xlu1 %v1727_v14, %s1810_s2  ;;  %v1467_v14 = vld [vmem:[%s2300_s1 + $0x18] sm:$0xff] }
 0x7ac   :  { %v546_v15 = vpop.permute.xlu0 %545 }
 0x7ad   :  { %v2007_v16 = vmul.f32 %v1721_v60, %v546_v15 }
 0x7af   :  { %v587_v17 = vpack.c.bf16 %v2007_v16, %v2007_v16 }
 0x7b0   :  { %v570_v18 = vpop.permute.xlu1 %569 }
 0x7b1   :  { %v2011_v19 = vmul.f32 %v1723_v63, %v570_v18  ;;  %589 = vrot.lane.b32.xlu0 %v587_v17, %s1811_s29 }
 0x7b3   :  { %v637_v20 = vpack.c.bf16 %v2011_v19, %v2011_v19 }
 0x7b5   :  { %639 = vrot.lane.b32.xlu1 %v637_v20, %s1811_s29 }
 0x823   :  { %v590_v21 = vpop.permute.xlu0 %589 }
 0x824   :  { %1596 = vmatmul.mubr.msk.bf16.vlgmr.msra.gmra.mxu0 %vm60_vm0, %v590_v21 }
 0x825   :  { %1608 = vmatpush3.bf16.msra.mxu0 %v1848_v1  ;;  %1611 = vmatprep.mubr.msk.bf16.mxu0 %vm1809_vm1, %v1808_v0 }
 0x826   :  { %1609 = vmatprep.subr.bf16.mxu0 %v1808_v0 }
 0x827   :  { %v640_v22 = vpop.permute.xlu1 %639 }
 0x828   :  { %1604 = vmatmul.mubr.msk.bf16.vlgmr.msra.gmra.mxu1 %vm60_vm0, %v640_v22 }
 0x829   :  { %1616 = vmatpush3.bf16.msra.mxu1 %v1861_v2  ;;  %1610 = vmatpush3.bf16.msra.mxu0 %v1871_v3 }
 0x82a   :  { %1617 = vmatprep.subr.bf16.mxu1 %v1808_v0  ;;  %1619 = vmatprep.mubr.msk.bf16.mxu1 %vm1809_vm1, %v1808_v0 }
 0x82b   :  { %1623 = vmatprep.subr.bf16.mxu0 %v1808_v0 }
 0x82d   :  { %1618 = vmatpush3.bf16.msra.mxu1 %v1878_v4 }
 0x82e   :  { %1631 = vmatprep.subr.bf16.mxu1 %v1808_v0 }
 0x8e4   :  { %v628_v24 = vpop.f32.mrf.mxu0 }
 0x8e5   :  { %v634_v25 = vadd.f32 %v1457_v23, %v628_v24 }
 0x8e6   :  { %v1597_v26 = vpop.f32.mrf.mxu0 }
 0x8e7   :  { %1728 = vtanh.f32 %v634_v25  ;;  %v1461_v39 = vmul.f32 -1.442695, %v634_v25 }
 0x8e8   :  { %v631_v28 = vpop.f32.mrf.mxu0  ;;  %v678_v29 = vpop.f32.mrf.mxu1 }
 0x8e9   :  { %v684_v30 = vadd.f32 %v1459_v27, %v678_v29 }
 0x8ea   :  { %v1598_v32 = vpop.f32.mrf.mxu0  ;;  %v1605_v33 = vpop.f32.mrf.mxu1 }
 0x8eb   :  { %1730 = vtanh.f32 %v684_v30  ;;  %v1462_v40 = vmul.f32 -1.442695, %v684_v30 }
 0x8ec   :  { %v681_v35 = vpop.f32.mrf.mxu1  ;;  %1732 = vpow2.f32 %v1461_v39 }
 0x8ed   :  { %1734 = vpow2.f32 %v1462_v40 }
 0x8ee   :  { %v1606_v36 = vpop.f32.mrf.mxu1 }
 0x8f4   :  { %v1729_v37 = vpop.eup %1728 }
 0x8f5   :  { %694 = vrot.lane.b32.xlu0 %v1729_v37, %s1810_s2 }
 0x8f8   :  { %v1731_v38 = vpop.eup %1730 }
 0x8f9   :  { %718 = vrot.lane.b32.xlu1 %v1731_v38, %s1810_s2  ;;  %v1733_v41 = vpop.eup %1732 }
 0x8fa   :  { %v688_v42 = vadd.f32 1.0, %v1733_v41  ;;  %v1735_v43 = vpop.eup %1734 }
 0x8fb   :  { %v712_v44 = vadd.f32 1.0, %v1735_v43 }
 0x8fc   :  { %1736 = vrcp.f32 %v688_v42 }
 0x8fd   :  { %1738 = vrcp.f32 %v712_v44 }
 0x909   :  { %v1737_v45 = vpop.eup %1736 }
 0x90a   :  { %v1739_v49 = vpop.eup %1738  ;;  %v692_v53 = vmul.f32 %v1737_v45, %v1998_v9 }
 0x90b   :  { %v716_v56 = vmul.f32 %v1739_v49, %v2002_v12 }
 0x967   :  { %v695_v46 = vpop.permute.xlu0 %694 }
 0x968   :  { %v697_v47 = vmul.f32 %v1737_v45, %v695_v46 }
 0x96a   :  { %699 = vrot.lane.b32.xlu0 %v697_v47, %s1810_s2 }
 0x96b   :  { %v719_v50 = vpop.permute.xlu1 %718 }
 0x96c   :  { %v721_v52 = vmul.f32 %v1739_v49, %v719_v50 }
 0x96e   :  { %723 = vrot.lane.b32.xlu1 %v721_v52, %s1810_s2 }
 0x9dc   :  { %v700_v54 = vpop.permute.xlu0 %699 }
 0x9dd   :  { %v2042_v55 = vadd.f32 %v700_v54, %v692_v53 }
 0x9df   :  { %1740 = vtanh.f32 %v2042_v55 }
 0x9e0   :  { %v724_v57 = vpop.permute.xlu1 %723 }
 0x9e1   :  { %v2046_v58 = vadd.f32 %v724_v57, %v716_v56 }
 0x9e3   :  { %1742 = vtanh.f32 %v2046_v58 }
 0x9ec   :  { %v1741_v59 = vpop.eup %1740 }
 0x9ed   :  { %705 = vrot.lane.b32.xlu0 %v1741_v59, %s1810_s2 }
 0x9f0   :  { %v1743_v60 = vpop.eup %1742 }
 0x9f1   :  { %729 = vrot.lane.b32.xlu1 %v1743_v60, %s1810_s2 }
 0xa5f   :  { %v706_v61 = vpop.permute.xlu0 %705 }
 0xa60   :  { %v2051_v62 = vmul.f32 %v1737_v45, %v706_v61 }
 0xa62   :  { %v747_v63 = vpack.c.bf16 %v2051_v62, %v2051_v62 }
 0xa63   :  { %v730_v5 = vpop.permute.xlu1 %729 }
 0xa64   :  { %v2055_v6 = vmul.f32 %v1739_v49, %v730_v5  ;;  %749 = vrot.lane.b32.xlu0 %v747_v63, %s1811_s29  ;;  %v1475_v63 = vld [vmem:[%s2300_s1 + $0x10] sm:$0xff] }
 0xa66   :  { %v797_v7 = vpack.c.bf16 %v2055_v6, %v2055_v6 }
 0xa68   :  { %799 = vrot.lane.b32.xlu1 %v797_v7, %s1811_s29 }
 0xad6   :  { %v750_v8 = vpop.permute.xlu0 %749 }
 0xad7   :  { %1612 = vmatmul.mubr.msk.bf16.vlgmr.msra.gmra.mxu0 %vm60_vm0, %v750_v8 }
 0xad8   :  { %1624 = vmatpush3.bf16.msra.mxu0 %v1848_v1  ;;  %1627 = vmatprep.mubr.msk.bf16.mxu0 %vm1809_vm1, %v1808_v0 }
 0xad9   :  { %1625 = vmatprep.subr.bf16.mxu0 %v1808_v0 }
 0xada   :  { %v800_v9 = vpop.permute.xlu1 %799 }
 0xadb   :  { %1620 = vmatmul.mubr.msk.bf16.vlgmr.msra.gmra.mxu1 %vm60_vm0, %v800_v9 }
 0xadc   :  { %1632 = vmatpush3.bf16.msra.mxu1 %v1861_v2  ;;  %1626 = vmatpush3.bf16.msra.mxu0 %v1871_v3 }
 0xadd   :  { %1633 = vmatprep.subr.bf16.mxu1 %v1808_v0  ;;  %1635 = vmatprep.mubr.msk.bf16.mxu1 %vm1809_vm1, %v1808_v0 }
 0xade   :  { %1639 = vmatprep.subr.bf16.mxu0 %v1808_v0 }
 0xae0   :  { %1634 = vmatpush3.bf16.msra.mxu1 %v1878_v4 }
 0xae1   :  { %1647 = vmatprep.subr.bf16.mxu1 %v1808_v0 }
 0xb97   :  { %v788_v11 = vpop.f32.mrf.mxu0 }
 0xb98   :  { %v794_v12 = vadd.f32 %v1465_v10, %v788_v11 }
 0xb99   :  { %v1613_v13 = vpop.f32.mrf.mxu0 }
 0xb9a   :  { %1744 = vtanh.f32 %v794_v12  ;;  %v1469_v26 = vmul.f32 -1.442695, %v794_v12 }
 0xb9b   :  { %v791_v15 = vpop.f32.mrf.mxu0  ;;  %v838_v17 = vpop.f32.mrf.mxu1 }
 0xb9c   :  { %v844_v18 = vadd.f32 %v1467_v14, %v838_v17 }
 0xb9d   :  { %v1614_v20 = vpop.f32.mrf.mxu0  ;;  %v1621_v21 = vpop.f32.mrf.mxu1 }
 0xb9e   :  { %1746 = vtanh.f32 %v844_v18  ;;  %v1470_v27 = vmul.f32 -1.442695, %v844_v18 }
 0xb9f   :  { %v841_v22 = vpop.f32.mrf.mxu1  ;;  %1748 = vpow2.f32 %v1469_v26 }
 0xba0   :  { %1750 = vpow2.f32 %v1470_v27 }
 0xba1   :  { %v1622_v23 = vpop.f32.mrf.mxu1 }
 0xba7   :  { %v1745_v24 = vpop.eup %1744 }
 0xba8   :  { %854 = vrot.lane.b32.xlu0 %v1745_v24, %s1810_s2 }
 0xbab   :  { %v1747_v25 = vpop.eup %1746 }
 0xbac   :  { %878 = vrot.lane.b32.xlu1 %v1747_v25, %s1810_s2  ;;  %v1749_v28 = vpop.eup %1748 }
 0xbad   :  { %v848_v29 = vadd.f32 1.0, %v1749_v28  ;;  %v1751_v30 = vpop.eup %1750 }
 0xbae   :  { %v872_v32 = vadd.f32 1.0, %v1751_v30 }
 0xbaf   :  { %1752 = vrcp.f32 %v848_v29 }
 0xbb0   :  { %1754 = vrcp.f32 %v872_v32 }
 0xbbc   :  { %v1753_v33 = vpop.eup %1752 }
 0xbbd   :  { %v1755_v37 = vpop.eup %1754  ;;  %v852_v40 = vmul.f32 %v1753_v33, %v2042_v55 }
 0xbbe   :  { %v876_v43 = vmul.f32 %v1755_v37, %v2046_v58  ;;  %v1473_v58 = vld [vmem:[%s2299_s0 + $0x28] sm:$0xff] }
 0xc1a   :  { %v855_v35 = vpop.permute.xlu0 %854 }
 0xc1b   :  { %v857_v36 = vmul.f32 %v1753_v33, %v855_v35 }
 0xc1d   :  { %859 = vrot.lane.b32.xlu0 %v857_v36, %s1810_s2 }
 0xc1e   :  { %v879_v38 = vpop.permute.xlu1 %878 }
 0xc1f   :  { %v881_v39 = vmul.f32 %v1755_v37, %v879_v38 }
 0xc21   :  { %883 = vrot.lane.b32.xlu1 %v881_v39, %s1810_s2 }
 0xc8f   :  { %v860_v41 = vpop.permute.xlu0 %859 }
 0xc90   :  { %v2086_v42 = vadd.f32 %v860_v41, %v852_v40 }
 0xc92   :  { %1756 = vtanh.f32 %v2086_v42 }
 0xc93   :  { %v884_v44 = vpop.permute.xlu1 %883 }
 0xc94   :  { %v2090_v45 = vadd.f32 %v884_v44, %v876_v43 }
 0xc96   :  { %1758 = vtanh.f32 %v2090_v45 }
 0xc9f   :  { %v1757_v46 = vpop.eup %1756 }
 0xca0   :  { %865 = vrot.lane.b32.xlu0 %v1757_v46, %s1810_s2 }
 0xca3   :  { %v1759_v47 = vpop.eup %1758 }
 0xca4   :  { %889 = vrot.lane.b32.xlu1 %v1759_v47, %s1810_s2 }
 0xd12   :  { %v866_v49 = vpop.permute.xlu0 %865 }
 0xd13   :  { %v2095_v50 = vmul.f32 %v1753_v33, %v866_v49 }
 0xd15   :  { %v907_v52 = vpack.c.bf16 %v2095_v50, %v2095_v50 }
 0xd16   :  { %v890_v53 = vpop.permute.xlu1 %889 }
 0xd17   :  { %v2099_v54 = vmul.f32 %v1755_v37, %v890_v53  ;;  %909 = vrot.lane.b32.xlu0 %v907_v52, %s1811_s29 }
 0xd19   :  { %v957_v55 = vpack.c.bf16 %v2099_v54, %v2099_v54 }
 0xd1b   :  { %959 = vrot.lane.b32.xlu1 %v957_v55, %s1811_s29 }
 0xd89   :  { %v910_v56 = vpop.permute.xlu0 %909 }
 0xd8a   :  { %1628 = vmatmul.mubr.msk.bf16.vlgmr.msra.gmra.mxu0 %vm60_vm0, %v910_v56 }
 0xd8b   :  { %1640 = vmatpush3.bf16.msra.mxu0 %v1848_v1  ;;  %1643 = vmatprep.mubr.msk.bf16.mxu0 %vm1809_vm1, %v1808_v0 }
 0xd8c   :  { %1641 = vmatprep.subr.bf16.mxu0 %v1808_v0 }
 0xd8d   :  { %v960_v57 = vpop.permute.xlu1 %959 }
 0xd8e   :  { %1636 = vmatmul.mubr.msk.bf16.vlgmr.msra.gmra.mxu1 %vm60_vm0, %v960_v57 }
 0xd8f   :  { %1648 = vmatpush3.bf16.msra.mxu1 %v1861_v2  ;;  %1642 = vmatpush3.bf16.msra.mxu0 %v1871_v3 }
 0xd90   :  { %1649 = vmatprep.subr.bf16.mxu1 %v1808_v0  ;;  %1651 = vmatprep.mubr.msk.bf16.mxu1 %vm1809_vm1, %v1808_v0 }
 0xd91   :  { %1655 = vmatprep.subr.bf16.mxu0 %v1808_v0 }
 0xd93   :  { %1650 = vmatpush3.bf16.msra.mxu1 %v1878_v4 }
 0xd94   :  { %1663 = vmatprep.subr.bf16.mxu1 %v1808_v0 }
 0xe4a   :  { %v948_v59 = vpop.f32.mrf.mxu0 }
 0xe4b   :  { %v954_v60 = vadd.f32 %v1473_v58, %v948_v59 }
 0xe4c   :  { %v1629_v61 = vpop.f32.mrf.mxu0 }
 0xe4d   :  { %1760 = vtanh.f32 %v954_v60  ;;  %v1477_v15 = vmul.f32 -1.442695, %v954_v60 }
 0xe4e   :  { %v951_v5 = vpop.f32.mrf.mxu0  ;;  %v998_v7 = vpop.f32.mrf.mxu1 }
 0xe4f   :  { %v1004_v8 = vadd.f32 %v1475_v63, %v998_v7 }
 0xe50   :  { %v1630_v9 = vpop.f32.mrf.mxu0  ;;  %v1637_v10 = vpop.f32.mrf.mxu1 }
 0xe51   :  { %1762 = vtanh.f32 %v1004_v8  ;;  %v1478_v17 = vmul.f32 -1.442695, %v1004_v8 }
 0xe52   :  { %v1001_v11 = vpop.f32.mrf.mxu1  ;;  %1764 = vpow2.f32 %v1477_v15 }
 0xe53   :  { %1766 = vpow2.f32 %v1478_v17 }
 0xe54   :  { %v1638_v12 = vpop.f32.mrf.mxu1 }
 0xe5a   :  { %v1761_v13 = vpop.eup %1760 }
 0xe5b   :  { %1014 = vrot.lane.b32.xlu0 %v1761_v13, %s1810_s2 }
 0xe5e   :  { %v1763_v14 = vpop.eup %1762 }
 0xe5f   :  { %1038 = vrot.lane.b32.xlu1 %v1763_v14, %s1810_s2  ;;  %v1765_v18 = vpop.eup %1764 }
 0xe60   :  { %v1008_v20 = vadd.f32 1.0, %v1765_v18  ;;  %v1767_v21 = vpop.eup %1766 }
 0xe61   :  { %v1032_v22 = vadd.f32 1.0, %v1767_v21 }
 0xe62   :  { %1768 = vrcp.f32 %v1008_v20 }
 0xe63   :  { %1770 = vrcp.f32 %v1032_v22 }
 0xe6f   :  { %v1769_v23 = vpop.eup %1768 }
 0xe70   :  { %v1771_v26 = vpop.eup %1770  ;;  %v1012_v29 = vmul.f32 %v1769_v23, %v2086_v42 }
 0xe71   :  { %v1036_v33 = vmul.f32 %v1771_v26, %v2090_v45 }
 0xecd   :  { %v1015_v24 = vpop.permute.xlu0 %1014 }
 0xece   :  { %v1017_v25 = vmul.f32 %v1769_v23, %v1015_v24 }
 0xed0   :  { %1019 = vrot.lane.b32.xlu0 %v1017_v25, %s1810_s2 }
 0xed1   :  { %v1039_v27 = vpop.permute.xlu1 %1038 }
 0xed2   :  { %v1041_v28 = vmul.f32 %v1771_v26, %v1039_v27 }
 0xed4   :  { %1043 = vrot.lane.b32.xlu1 %v1041_v28, %s1810_s2 }
 0xf42   :  { %v1020_v30 = vpop.permute.xlu0 %1019 }
 0xf43   :  { %v2130_v32 = vadd.f32 %v1020_v30, %v1012_v29 }
 0xf45   :  { %1772 = vtanh.f32 %v2130_v32 }
 0xf46   :  { %v1044_v35 = vpop.permute.xlu1 %1043 }
 0xf47   :  { %v2134_v36 = vadd.f32 %v1044_v35, %v1036_v33  ;;  %v1489_v35 = vld [vmem:[%s2299_s0 + $0x38] sm:$0xff] }
 0xf49   :  { %1774 = vtanh.f32 %v2134_v36 }
 0xf52   :  { %v1773_v37 = vpop.eup %1772 }
 0xf53   :  { %1025 = vrot.lane.b32.xlu0 %v1773_v37, %s1810_s2 }
 0xf56   :  { %v1775_v38 = vpop.eup %1774 }
 0xf57   :  { %1049 = vrot.lane.b32.xlu1 %v1775_v38, %s1810_s2 }
 0xfc5   :  { %v1026_v39 = vpop.permute.xlu0 %1025 }
 0xfc6   :  { %v2139_v40 = vmul.f32 %v1769_v23, %v1026_v39  ;;  %v1275_v39 = vld [vmem:[%s2300_s1] sm:$0xff] }
 0xfc8   :  { %v1067_v41 = vpack.c.bf16 %v2139_v40, %v2139_v40 }
 0xfc9   :  { %v1050_v42 = vpop.permute.xlu1 %1049 }
 0xfca   :  { %v2143_v43 = vmul.f32 %v1771_v26, %v1050_v42  ;;  %1069 = vrot.lane.b32.xlu0 %v1067_v41, %s1811_s29 }
 0xfcc   :  { %v1117_v44 = vpack.c.bf16 %v2143_v43, %v2143_v43 }
 0xfce   :  { %1119 = vrot.lane.b32.xlu1 %v1117_v44, %s1811_s29 }
0x103c   :  { %v1070_v45 = vpop.permute.xlu0 %1069 }
0x103d   :  { %1644 = vmatmul.mubr.msk.bf16.vlgmr.msra.gmra.mxu0 %vm60_vm0, %v1070_v45 }
0x103e   :  { %1656 = vmatpush3.bf16.msra.mxu0 %v1848_v1  ;;  %1659 = vmatprep.mubr.msk.bf16.mxu0 %vm1809_vm1, %v1808_v0  ;;  %v1481_v1 = vld [vmem:[%s2299_s0 + $0x30] sm:$0xff] }
0x103f   :  { %1657 = vmatprep.subr.bf16.mxu0 %v1808_v0 }
0x1040   :  { %v1120_v46 = vpop.permute.xlu1 %1119 }
0x1041   :  { %1652 = vmatmul.mubr.msk.bf16.vlgmr.msra.gmra.mxu1 %vm60_vm0, %v1120_v46 }
0x1042   :  { %1664 = vmatpush3.bf16.msra.mxu1 %v1861_v2  ;;  %1658 = vmatpush3.bf16.msra.mxu0 %v1871_v3  ;;  %v1483_v2 = vld [vmem:[%s2300_s1 + $0x8] sm:$0xff] }
0x1043   :  { %1665 = vmatprep.subr.bf16.mxu1 %v1808_v0  ;;  %1667 = vmatprep.mubr.msk.bf16.mxu1 %vm1809_vm1, %v1808_v0 }
0x1046   :  { %1666 = vmatpush3.bf16.msra.mxu1 %v1878_v4 }
0x10fd   :  { %v1108_v47 = vpop.f32.mrf.mxu0 }
0x10fe   :  { %v1114_v49 = vadd.f32 %v1481_v1, %v1108_v47 }
0x10ff   :  { %v1645_v52 = vpop.f32.mrf.mxu0 }
0x1100   :  { %1776 = vtanh.f32 %v1114_v49  ;;  %v1485_v60 = vmul.f32 -1.442695, %v1114_v49 }
0x1101   :  { %v1111_v3 = vpop.f32.mrf.mxu0  ;;  %v1158_v53 = vpop.f32.mrf.mxu1 }
0x1102   :  { %v1164_v55 = vadd.f32 %v1483_v2, %v1158_v53 }
0x1103   :  { %v1646_v56 = vpop.f32.mrf.mxu0  ;;  %v1653_v57 = vpop.f32.mrf.mxu1 }
0x1104   :  { %1778 = vtanh.f32 %v1164_v55  ;;  %v1486_v61 = vmul.f32 -1.442695, %v1164_v55 }
0x1105   :  { %v1161_v0 = vpop.f32.mrf.mxu1  ;;  %1780 = vpow2.f32 %v1485_v60 }
0x1106   :  { %1782 = vpow2.f32 %v1486_v61 }
0x1107   :  { %v1654_v4 = vpop.f32.mrf.mxu1 }
0x110d   :  { %v1777_v58 = vpop.eup %1776 }
0x110e   :  { %1174 = vrot.lane.b32.xlu0 %v1777_v58, %s1810_s2 }
0x1111   :  { %v1779_v59 = vpop.eup %1778 }
0x1112   :  { %1198 = vrot.lane.b32.xlu1 %v1779_v59, %s1810_s2  ;;  %v1781_v63 = vpop.eup %1780 }
0x1113   :  { %v1168_v5 = vadd.f32 1.0, %v1781_v63  ;;  %v1783_v7 = vpop.eup %1782 }
0x1114   :  { %v1192_v8 = vadd.f32 1.0, %v1783_v7 }
0x1115   :  { %1784 = vrcp.f32 %v1168_v5 }
0x1116   :  { %1786 = vrcp.f32 %v1192_v8 }
0x1122   :  { %v1785_v9 = vpop.eup %1784 }
0x1123   :  { %v1787_v12 = vpop.eup %1786  ;;  %v1172_v15 = vmul.f32 %v1785_v9, %v2130_v32 }
0x1124   :  { %v1196_v20 = vmul.f32 %v1787_v12, %v2134_v36 }
0x1180   :  { %v1175_v10 = vpop.permute.xlu0 %1174 }
0x1181   :  { %v1177_v11 = vmul.f32 %v1785_v9, %v1175_v10 }
0x1183   :  { %1179 = vrot.lane.b32.xlu0 %v1177_v11, %s1810_s2 }
0x1184   :  { %v1199_v13 = vpop.permute.xlu1 %1198 }
0x1185   :  { %v1201_v14 = vmul.f32 %v1787_v12, %v1199_v13 }
0x1187   :  { %1203 = vrot.lane.b32.xlu1 %v1201_v14, %s1810_s2 }
0x11f5   :  { %v1180_v17 = vpop.permute.xlu0 %1179 }
0x11f6   :  { %v1182_v18 = vadd.f32 %v1180_v17, %v1172_v15 }
0x11f8   :  { %1788 = vtanh.f32 %v1182_v18 }
0x11f9   :  { %v1204_v21 = vpop.permute.xlu1 %1203 }
0x11fa   :  { %v1206_v22 = vadd.f32 %v1204_v21, %v1196_v20 }
0x11fc   :  { %1790 = vtanh.f32 %v1206_v22 }
0x1205   :  { %v1789_v23 = vpop.eup %1788 }
0x1206   :  { %1185 = vrot.lane.b32.xlu0 %v1789_v23, %s1810_s2 }
0x1209   :  { %v1791_v24 = vpop.eup %1790 }
0x120a   :  { %1209 = vrot.lane.b32.xlu1 %v1791_v24, %s1810_s2 }
0x1278   :  { %v1186_v25 = vpop.permute.xlu0 %1185 }
0x1279   :  { %v2175_v26 = vmul.f32 %v1785_v9, %v1186_v25 }
0x127b   :  { %v1227_v27 = vpack.c.bf16 %v2175_v26, %v2175_v26 }
0x127c   :  { %v1210_v28 = vpop.permute.xlu1 %1209 }
0x127d   :  { %v2179_v29 = vmul.f32 %v1787_v12, %v1210_v28  ;;  %1229 = vrot.lane.b32.xlu0 %v1227_v27, %s1811_s29 }
0x127f   :  { %v1276_v30 = vpack.c.bf16 %v2179_v29, %v2179_v29 }
0x1281   :  { %1278 = vrot.lane.b32.xlu1 %v1276_v30, %s1811_s29 }
0x12ef   :  { %v1230_v32 = vpop.permute.xlu0 %1229 }
0x12f0   :  { %1660 = vmatmul.mubr.msk.bf16.vlgmr.msra.gmra.mxu0 %vm60_vm0, %v1230_v32 }
0x12f3   :  { %v1279_v33 = vpop.permute.xlu1 %1278 }
0x12f4   :  { %1668 = vmatmul.mubr.msk.bf16.vlgmr.msra.gmra.mxu1 %vm60_vm0, %v1279_v33 }
0x13b0   :  { %v1268_v36 = vpop.f32.mrf.mxu0 }
0x13b1   :  { %v1274_v37 = vadd.f32 %v1489_v35, %v1268_v36 }
0x13b2   :  { %v1661_v38 = vpop.f32.mrf.mxu0 }
0x13b3   :  { %1792 = vtanh.f32 %v1274_v37  ;;  %v1492_v2 = vmul.f32 -1.442695, %v1274_v37 }
0x13b4   :  { %v1271_v41 = vpop.f32.mrf.mxu0  ;;  %v1317_v42 = vpop.f32.mrf.mxu1 }
0x13b5   :  { %v1323_v44 = vadd.f32 %v1317_v42, %v1275_v39 }
0x13b6   :  { %v1662_v45 = vpop.f32.mrf.mxu0  ;;  %v1669_v46 = vpop.f32.mrf.mxu1 }
0x13b7   :  { %1794 = vtanh.f32 %v1323_v44  ;;  %v1493_v3 = vmul.f32 -1.442695, %v1323_v44 }
0x13b8   :  { %v1320_v1 = vpop.f32.mrf.mxu1  ;;  %1796 = vpow2.f32 %v1492_v2 }
0x13b9   :  { %1798 = vpow2.f32 %v1493_v3 }
0x13ba   :  { %v1670_v47 = vpop.f32.mrf.mxu1 }
0x13c0   :  { %v1793_v49 = vpop.eup %1792 }
0x13c1   :  { %1333 = vrot.lane.b32.xlu0 %v1793_v49, %s1810_s2 }
0x13c4   :  { %v1795_v52 = vpop.eup %1794 }
0x13c5   :  { %1357 = vrot.lane.b32.xlu1 %v1795_v52, %s1810_s2  ;;  %v1797_v53 = vpop.eup %1796 }
0x13c6   :  { %v1327_v55 = vadd.f32 1.0, %v1797_v53  ;;  %v1799_v56 = vpop.eup %1798 }
0x13c7   :  { %v1351_v57 = vadd.f32 1.0, %v1799_v56 }
0x13c8   :  { %1800 = vrcp.f32 %v1327_v55 }
0x13c9   :  { %1802 = vrcp.f32 %v1351_v57 }
0x13d5   :  { %v1801_v0 = vpop.eup %1800 }
0x13d6   :  { %v1803_v59 = vpop.eup %1802  ;;  %v1331_v63 = vmul.f32 %v1801_v0, %v1182_v18 }
0x13d7   :  { %v1355_v8 = vmul.f32 %v1803_v59, %v1206_v22 }
0x1433   :  { %v1334_v4 = vpop.permute.xlu0 %1333 }
0x1434   :  { %v1336_v58 = vmul.f32 %v1801_v0, %v1334_v4 }
0x1436   :  { %1338 = vrot.lane.b32.xlu0 %v1336_v58, %s1810_s2 }
0x1437   :  { %v1358_v60 = vpop.permute.xlu1 %1357 }
0x1438   :  { %v1360_v61 = vmul.f32 %v1803_v59, %v1358_v60 }
0x143a   :  { %1362 = vrot.lane.b32.xlu1 %v1360_v61, %s1810_s2 }
0x14a8   :  { %v1339_v5 = vpop.permute.xlu0 %1338 }
0x14a9   :  { %v1341_v7 = vadd.f32 %v1339_v5, %v1331_v63 }
0x14ab   :  { %1804 = vtanh.f32 %v1341_v7 }
0x14ac   :  { %v1363_v9 = vpop.permute.xlu1 %1362 }
0x14ad   :  { %v1365_v10 = vadd.f32 %v1363_v9, %v1355_v8 }
0x14af   :  { %1806 = vtanh.f32 %v1365_v10 }
0x14b8   :  { %v1805_v11 = vpop.eup %1804 }
0x14b9   :  { %1344 = vrot.lane.b32.xlu0 %v1805_v11, %s1810_s2 }
0x14bc   :  { %v1807_v12 = vpop.eup %1806 }
0x14bd   :  { %1368 = vrot.lane.b32.xlu1 %v1807_v12, %s1810_s2  ;;  %255 = vrot.lane.b32.xlu0 %v1919_v48, %s1811_s29  ;;  %s1812_s2 = smov 96  }
0x14c1   :  { %260 = vrot.lane.b32.xlu1 %v1923_v51, %s1811_s29  ;;  %414 = vrot.lane.b32.xlu0 %v1963_v31, %s1811_s29 }
0x14c5   :  { %420 = vrot.lane.b32.xlu1 %v1967_v34, %s1811_s29  ;;  %574 = vrot.lane.b32.xlu0 %v2007_v16, %s1811_s29 }
0x14c9   :  { %580 = vrot.lane.b32.xlu1 %v2011_v19, %s1811_s29  ;;  %734 = vrot.lane.b32.xlu0 %v2051_v62, %s1811_s29 }
0x14cd   :  { %740 = vrot.lane.b32.xlu1 %v2055_v6, %s1811_s29  ;;  %894 = vrot.lane.b32.xlu0 %v2095_v50, %s1811_s29 }
0x14d1   :  { %900 = vrot.lane.b32.xlu1 %v2099_v54, %s1811_s29  ;;  %1054 = vrot.lane.b32.xlu0 %v2139_v40, %s1811_s29 }
0x14d5   :  { %1060 = vrot.lane.b32.xlu1 %v2143_v43, %s1811_s29  ;;  %1214 = vrot.lane.b32.xlu0 %v2175_v26, %s1811_s29 }
0x14d9   :  { %1220 = vrot.lane.b32.xlu1 %v2179_v29, %s1811_s29 }
0x152b   :  { %v1345_v48 = vpop.permute.xlu0 %1344 }
0x152c   :  { %v1347_v51 = vmul.f32 %v1801_v0, %v1345_v48 }
0x152e   :  { %1373 = vrot.lane.b32.xlu0 %v1347_v51, %s1811_s29 }
0x152f   :  { %v1369_v31 = vpop.permute.xlu1 %1368  ;;  %v256_v34 = vpop.permute.xlu0 %255 }
0x1530   :  { %v1371_v16 = vmul.f32 %v1803_v59, %v1369_v31  ;;  %258 = vst.msk [vmem:[%s2301_s4] sm:$0xff] %vm60_vm0, %v256_v34 }
0x1532   :  { %1379 = vrot.lane.b32.xlu1 %v1371_v16, %s1811_s29  ;;  %1385 = vrot.lane.b32.xlu0 %v1341_v7, %s1812_s2 }
0x1533   :  { %v261_v19 = vpop.permute.xlu1 %260  ;;  %v415_v62 = vpop.permute.xlu0 %414 }
0x1534   :  { %1440 = vst.msk [vmem:[%s2302_s5 + $0x38] sm:$0xff] %vm60_vm0, %v261_v19  ;;  %1447 = vst.msk [vmem:[%s2301_s4 + $0x8] sm:$0xff] %vm60_vm0, %v415_v62 }
0x1536   :  { %1391 = vrot.lane.b32.xlu1 %v1365_v10, %s1812_s2 }
0x1537   :  { %v421_v6 = vpop.permute.xlu1 %420  ;;  %v575_v50 = vpop.permute.xlu0 %574 }
0x1538   :  { %1448 = vst.msk [vmem:[%s2302_s5 + $0x30] sm:$0xff] %vm60_vm0, %v421_v6  ;;  %1455 = vst.msk [vmem:[%s2301_s4 + $0x10] sm:$0xff] %vm60_vm0, %v575_v50 }
0x153b   :  { %v581_v54 = vpop.permute.xlu1 %580  ;;  %v735_v40 = vpop.permute.xlu0 %734 }
0x153c   :  { %1456 = vst.msk [vmem:[%s2302_s5 + $0x28] sm:$0xff] %vm60_vm0, %v581_v54  ;;  %1463 = vst.msk [vmem:[%s2301_s4 + $0x18] sm:$0xff] %vm60_vm0, %v735_v40 }
0x153f   :  { %v741_v43 = vpop.permute.xlu1 %740  ;;  %v895_v13 = vpop.permute.xlu0 %894 }
0x1540   :  { %1464 = vst.msk [vmem:[%s2302_s5 + $0x20] sm:$0xff] %vm60_vm0, %v741_v43  ;;  %1471 = vst.msk [vmem:[%s2301_s4 + $0x20] sm:$0xff] %vm60_vm0, %v895_v13 }
0x1543   :  { %v901_v14 = vpop.permute.xlu1 %900  ;;  %v1055_v15 = vpop.permute.xlu0 %1054 }
0x1544   :  { %1472 = vst.msk [vmem:[%s2302_s5 + $0x18] sm:$0xff] %vm60_vm0, %v901_v14  ;;  %1479 = vst.msk [vmem:[%s2301_s4 + $0x28] sm:$0xff] %vm60_vm0, %v1055_v15 }
0x1547   :  { %v1061_v17 = vpop.permute.xlu1 %1060  ;;  %v1215_v18 = vpop.permute.xlu0 %1214 }
0x1548   :  { %1480 = vst.msk [vmem:[%s2302_s5 + $0x10] sm:$0xff] %vm60_vm0, %v1061_v17  ;;  %1487 = vst.msk [vmem:[%s2301_s4 + $0x30] sm:$0xff] %vm60_vm0, %v1215_v18 }
0x154b   :  { %v1221_v20 = vpop.permute.xlu1 %1220 }
0x154c   :  { %1488 = vst.msk [vmem:[%s2302_s5 + $0x8] sm:$0xff] %vm60_vm0, %v1221_v20 }
0x15a0   :  { %v1374_v21 = vpop.permute.xlu0 %1373 }
0x15a1   :  { %1494 = vst.msk [vmem:[%s2301_s4 + $0x38] sm:$0xff] %vm60_vm0, %v1374_v21  ;;  %1383 = vst.msk [vmem:[#allocation2] sm:$0xff] %vm60_vm0, %v1374_v21 }
0x15a4   :  { %v1380_v22 = vpop.permute.xlu1 %1379  ;;  %v1386_v23 = vpop.permute.xlu0 %1385 }
0x15a5   :  { %1382 = vst.msk [vmem:[%s2302_s5] sm:$0xff] %vm60_vm0, %v1380_v22  ;;  %1389 = vst.msk [vmem:[#allocation2 + $0x10] sm:$0xff] %vm60_vm0, %v1380_v22 }
0x15a6   :  { %1388 = vst.msk [vmem:[#allocation2 + $0x8] sm:$0xff] %vm60_vm0, %v1386_v23 }
0x15a8   :  { %v1392_v24 = vpop.permute.xlu1 %1391 }
0x15a9   :  { %1394 = vst.msk [vmem:[#allocation2 + $0x18] sm:$0xff] %vm60_vm0, %v1392_v24 }

// kernel: aron_forward.5
= control target key start
LH: loop header
LB: loop body
LE: loop exit
PB: predicated region body
PF: predicated region fallthrough
CT: control target
= control target key end

     0   :  { %vm52_vm0 = vcmask 261120   ;;  %v1600_v1 = vmov 0.0   ;;  %vm1601_vm1 = vmmov 0   ;;  %s1957_s3 = inlined_call_operand.vmem [shape: bf16[32,128], index: 3, kind: input, shape index: {}]   ;;  %s1958_s2 = inlined_call_operand.vmem [shape: bf16[32,128], index: 2, kind: input, shape index: {}]   ;;  %s1959_s1 = inlined_call_operand.vmem [shape: f32[64,32], index: 1, kind: input, shape index: {}]   ;;  %s1960_s0 = inlined_call_operand.vmem [shape: f32[64,32], index: 0, kind: input, shape index: {}]   ;;  %s1961_s5 = inlined_call_operand.vmem [shape: bf16[32,128], index: 5, kind: input, shape index: {}]   ;;  %s1962_s4 = inlined_call_operand.vmem [shape: f32[1,128], index: 4, kind: input, shape index: {}]   ;;  %s1963_s7 = inlined_call_operand.vmem [shape: bf16[32,128], index: 7, kind: input, shape index: {}]   ;;  %s1964_s6 = inlined_call_operand.vmem [shape: bf16[32,128], index: 6, kind: input, shape index: {}]   ;;  %s1965_s8 = inlined_call_operand.vmem [shape: f32[1,128], index: 8, kind: input, shape index: {}]   ;;  %s1966_s10 = inlined_call_operand.vmem [shape: bf16[32,32], index: 10, kind: input, shape index: {}]   ;;  %s1967_s9 = inlined_call_operand.vmem [shape: bf16[32,32], index: 9, kind: input, shape index: {}]   ;;  %s1968_s12 = inlined_call_operand.vmem [shape: bf16[32,128], index: 12, kind: input, shape index: {}]   ;;  %s1969_s11 = inlined_call_operand.vmem [shape: f32[1,32], index: 11, kind: input, shape index: {}]   ;;  %s1970_s13 = inlined_call_operand.vmem [shape: f32[1,128], index: 13, kind: input, shape index: {}]   ;;  %s1971_s14 = inlined_call_operand.vmem [shape: f32[8,128], index: 14, kind: output, shape index: {}]  }
   0x1   :  { %v1508_v0 = vld [vmem:[%s1957_s3 + $0x8] sm:$0xff]   ;;  %53 = vst.msk [vmem:[#allocation3] sm:$0xff] %vm52_vm0, %v1600_v1  ;;  %54 = vst.msk [vmem:[#allocation4] sm:$0xff] %vm52_vm0, %v1600_v1  ;;  %v1510_v3 = vld [vmem:[%s1957_s3] sm:$0xff]  }
   0x2   :  { %v1509_v2 = vld [vmem:[%s1958_s2 + $0x8] sm:$0xff]   ;;  %1375 = vmatprep.subr.bf16.mxu0 %v1508_v0  ;;  %v1511_v4 = vld [vmem:[%s1958_s2] sm:$0xff]   ;;  %v69_v10 = vld [vmem:[%s1959_s1 + $0x10] sm:$0xff] }
   0x3   :  { %1387 = vmatprep.subr.bf16.mxu1 %v1509_v2  ;;  %1376 = vmatpush3.bf16.msra.mxu0 %v1508_v0  ;;  %v67_v5 = vld [vmem:[%s1959_s1] sm:$0xff]  ;;  %v68_v6 = vld [vmem:[%s1959_s1 + $0x8] sm:$0xff]  ;;  %v70_v11 = vld [vmem:[%s1959_s1 + $0x18] sm:$0xff] }
   0x4   :  { %1388 = vmatpush3.bf16.msra.mxu1 %v1509_v2  ;;  %1377 = vmatprep.subr.bf16.mxu0 %v1510_v3  ;;  %v55_v7 = vld [vmem:[%s1960_s0] sm:$0xff]  ;;  %v75_v8 = vpack.c.bf16 %v68_v6, %v67_v5  ;;  %v56_v9 = vld [vmem:[%s1960_s0 + $0x8] sm:$0xff]  ;;  %v76_v13 = vpack.c.bf16 %v70_v11, %v69_v10  ;;  %v57_v14 = vld [vmem:[%s1960_s0 + $0x10] sm:$0xff] }
   0x5   :  { %1389 = vmatprep.subr.bf16.mxu1 %v1511_v4  ;;  %v63_v12 = vpack.c.bf16 %v56_v9, %v55_v7  ;;  %v58_v15 = vld [vmem:[%s1960_s0 + $0x18] sm:$0xff]  ;;  %v1724_v17 = vld [vmem:[%s1961_s5 + $0x8] sm:$0xff]   ;;  %v71_v18 = vld [vmem:[%s1959_s1 + $0x20] sm:$0xff] }
   0x6   :  { %1379 = vmatprep.mubr.msk.bf16.mxu0 %vm52_vm0, %v75_v8  ;;  %v64_v16 = vpack.c.bf16 %v58_v15, %v57_v14  ;;  %v72_v19 = vld [vmem:[%s1959_s1 + $0x28] sm:$0xff]  ;;  %v59_v20 = vld [vmem:[%s1960_s0 + $0x20] sm:$0xff]  ;;  %v73_v24 = vld [vmem:[%s1959_s1 + $0x30] sm:$0xff] }
   0x7   :  { %1378 = vmatpush3.bf16.msra.mxu0 %v1510_v3  ;;  %1391 = vmatprep.mubr.msk.bf16.mxu1 %vm52_vm0, %v63_v12  ;;  %v60_v21 = vld [vmem:[%s1960_s0 + $0x28] sm:$0xff]  ;;  %v77_v22 = vpack.c.bf16 %v72_v19, %v71_v18  ;;  %v74_v25 = vld [vmem:[%s1959_s1 + $0x38] sm:$0xff]  ;;  %v1753_v26 = vld [vmem:[%s1961_s5] sm:$0xff]   ;;  %s1603_s5 = smov 64  }
   0x8   :  { %1390 = vmatpush3.bf16.msra.mxu1 %v1511_v4  ;;  %1399 = vmatprep.subr.bf16.mxu0 %v1600_v1  ;;  %v65_v23 = vpack.c.bf16 %v60_v21, %v59_v20  ;;  %v61_v27 = vld [vmem:[%s1960_s0 + $0x30] sm:$0xff]  ;;  %v62_v28 = vld [vmem:[%s1960_s0 + $0x38] sm:$0xff]  ;;  %v1765_v29 = vpack.c.bf16 %v74_v25, %v73_v24  ;;  %v293_v31 = vld [vmem:[#allocation3] sm:$0xff] }
   0x9   :  { %1407 = vmatprep.subr.bf16.mxu1 %v1600_v1  ;;  %v1768_v30 = vpack.c.bf16 %v62_v28, %v61_v27  ;;  %v296_v32 = vpack.c.bf16 %v293_v31, %v293_v31  ;;  %v1285_v35 = vld [vmem:[%s1962_s4] ss:$0 sm:$0xff]  ;;  %s1602_s4 = smov 32   ;;  %v294_v9 = vld [vmem:[#allocation4] sm:$0xff] }
   0xa   :  { %1380 = vmatmul.mubr.msk.bf16.vlgmr.msra.gmra.mxu0 %vm52_vm0, %v76_v13 }
   0xb   :  { %1392 = vmatmul.mubr.msk.bf16.vlgmr.msra.gmra.mxu1 %vm52_vm0, %v64_v16  ;;  %1400 = vmatpush3.bf16.msra.mxu0 %v1724_v17 }
   0xc   :  { %1383 = vmatprep.mubr.msk.bf16.mxu0 %vm52_vm0, %v77_v22  ;;  %1395 = vmatprep.mubr.msk.bf16.mxu1 %vm52_vm0, %v65_v23 }
   0xd   :  { %1401 = vmatprep.subr.bf16.mxu0 %v1600_v1  ;;  %1408 = vmatpush3.bf16.msra.mxu1 %v1724_v17 }
   0xe   :  { %1409 = vmatprep.subr.bf16.mxu1 %v1600_v1 }
   0xf   :  { %1402 = vmatpush3.bf16.msra.mxu0 %v1753_v26 }
  0x10   :  { %1415 = vmatprep.subr.bf16.mxu0 %v1600_v1 }
  0x11   :  { %1410 = vmatpush3.bf16.msra.mxu1 %v1753_v26 }
  0x12   :  { %1384 = vmatmul.mubr.msk.bf16.gmra.mxu0 %vm52_vm0, %v1765_v29  ;;  %1423 = vmatprep.subr.bf16.mxu1 %v1600_v1 }
  0x13   :  { %1396 = vmatmul.mubr.msk.bf16.gmra.mxu1 %vm52_vm0, %v1768_v30  ;;  %1403 = vmatprep.mubr.msk.bf16.mxu0 %vm1601_vm1, %v1600_v1 }
  0x14   :  { %1411 = vmatprep.mubr.msk.bf16.mxu1 %vm1601_vm1, %v1600_v1 }
  0x1a   :  { %1404 = vmatmul.mubr.msk.bf16.vlgmr.msra.gmra.mxu0 %vm52_vm0, %v296_v32 }
  0x1b   :  { %1416 = vmatpush3.bf16.msra.mxu0 %v1724_v17  ;;  %1419 = vmatprep.mubr.msk.bf16.mxu0 %vm1601_vm1, %v1600_v1 }
  0x1c   :  { %1417 = vmatprep.subr.bf16.mxu0 %v1600_v1 }
  0x1f   :  { %1418 = vmatpush3.bf16.msra.mxu0 %v1753_v26 }
  0x20   :  { %1431 = vmatprep.subr.bf16.mxu0 %v1600_v1 }
  0xca   :  { %v1381_v33 = vpop.f32.mrf.mxu0 }
  0xcb   :  { %v1393_v34 = vpop.f32.mrf.mxu1 }
  0xcc   :  { %v244_v36 = vadd.f32 %v1393_v34, %v1381_v33  ;;  %v146_v37 = vpop.f32.mrf.mxu0 }
  0xcd   :  { %v235_v38 = vpop.f32.mrf.mxu1 }
  0xce   :  { %v1382_v39 = vpop.f32.mrf.mxu0  ;;  %v1792_v40 = vadd.f32 %v1285_v35, %v244_v36  ;;  %v236_v52 = vadd.f32 %v235_v38, %v146_v37 }
  0xcf   :  { %v1394_v41 = vpop.f32.mrf.mxu1 }
  0xd0   :  { %v247_v42 = vadd.f32 %v1394_v41, %v1382_v39  ;;  %v149_v43 = vpop.f32.mrf.mxu0  ;;  %v273_v62 = vadd.f32 %v1285_v35, %v236_v52 }
  0xd1   :  { %v238_v44 = vpop.f32.mrf.mxu1 }
  0xd2   :  { %v239_v45 = vadd.f32 %v238_v44, %v149_v43  ;;  %v1385_v46 = vpop.f32.mrf.mxu0  ;;  %v1794_v47 = vadd.f32 %v1285_v35, %v247_v42 }
  0xd3   :  { %v1397_v48 = vpop.f32.mrf.mxu1 }
  0xd4   :  { %v260_v49 = vadd.f32 %v1397_v48, %v1385_v46  ;;  %v162_v50 = vpop.f32.mrf.mxu0  ;;  %v274_v51 = vadd.f32 %v1285_v35, %v239_v45 }
  0xd5   :  { %v251_v53 = vpop.f32.mrf.mxu1 }
  0xd6   :  { %v252_v54 = vadd.f32 %v251_v53, %v162_v50  ;;  %v1386_v55 = vpop.f32.mrf.mxu0  ;;  %v1796_v56 = vadd.f32 %v1285_v35, %v260_v49 }
  0xd7   :  { %v1398_v57 = vpop.f32.mrf.mxu1 }
  0xd8   :  { %v263_v58 = vadd.f32 %v1398_v57, %v1386_v55  ;;  %v165_v59 = vpop.f32.mrf.mxu0  ;;  %v1798_v60 = vadd.f32 %v1285_v35, %v252_v54 }
  0xd9   :  { %v254_v61 = vpop.f32.mrf.mxu1 }
  0xda   :  { %v255_v63 = vadd.f32 %v254_v61, %v165_v59  ;;  %v346_v0 = vpop.f32.mrf.mxu0  ;;  %v1800_v2 = vadd.f32 %v1285_v35, %v263_v58 }
  0xdb   :  { %v352_v3 = vadd.f32 %v346_v0, %v273_v62 }
  0xdc   :  { %v1405_v4 = vpop.f32.mrf.mxu0  ;;  %v1802_v5 = vadd.f32 %v1285_v35, %v255_v63 }
  0xdd   :  { %1524 = vtanh.f32 %v352_v3  ;;  %v1289_v10 = vmul.f32 -1.442695, %v352_v3 }
  0xde   :  { %v349_v6 = vpop.f32.mrf.mxu0 }
  0xdf   :  { %1526 = vpow2.f32 %v1289_v10 }
  0xe0   :  { %v1406_v7 = vpop.f32.mrf.mxu0 }
  0xea   :  { %v1525_v8 = vpop.eup %1524 }
  0xeb   :  { %366 = vrot.lane.b32.xlu0 %v1525_v8, %s1602_s4 }
  0xec   :  { %v1527_v11 = vpop.eup %1526 }
  0xed   :  { %v356_v12 = vadd.f32 1.0, %v1527_v11 }
  0xef   :  { %361 = vrot.lane.b32.xlu0 %v294_v9, %s1602_s4  ;;  %1528 = vrcp.f32 %v356_v12 }
  0xfc   :  { %v1529_v13 = vpop.eup %1528 }
 0x15d   :  { %v367_v14 = vpop.permute.xlu0 %366 }
 0x15e   :  { %v369_v15 = vmul.f32 %v1529_v13, %v367_v14 }
 0x160   :  { %371 = vrot.lane.b32.xlu1 %v369_v15, %s1602_s4 }
 0x161   :  { %v362_v16 = vpop.permute.xlu0 %361 }
 0x162   :  { %v364_v18 = vmul.f32 %v1529_v13, %v362_v16 }
 0x1d2   :  { %v372_v19 = vpop.permute.xlu1 %371 }
 0x1d3   :  { %v374_v20 = vadd.f32 %v372_v19, %v364_v18 }
 0x1d5   :  { %1530 = vtanh.f32 %v374_v20 }
 0x1e2   :  { %v1531_v21 = vpop.eup %1530 }
 0x1e3   :  { %377 = vrot.lane.b32.xlu1 %v1531_v21, %s1602_s4 }
 0x255   :  { %v378_v22 = vpop.permute.xlu1 %377 }
 0x256   :  { %v380_v23 = vmul.f32 %v1529_v13, %v378_v22 }
 0x258   :  { %v383_v24 = vpack.c.bf16 %v380_v23, %v380_v23 }
 0x25a   :  { %385 = vrot.lane.b32.xlu0 %v383_v24, %s1603_s5 }
 0x2cc   :  { %v386_v25 = vpop.permute.xlu0 %385 }
 0x2cd   :  { %1412 = vmatmul.mubr.msk.bf16.vlgmr.msra.gmra.mxu1 %vm52_vm0, %v386_v25 }
 0x2ce   :  { %1424 = vmatpush3.bf16.msra.mxu1 %v1724_v17  ;;  %1427 = vmatprep.mubr.msk.bf16.mxu1 %vm1601_vm1, %v1600_v1 }
 0x2cf   :  { %1425 = vmatprep.subr.bf16.mxu1 %v1600_v1 }
 0x2d2   :  { %1426 = vmatpush3.bf16.msra.mxu1 %v1753_v26 }
 0x2d3   :  { %1439 = vmatprep.subr.bf16.mxu1 %v1600_v1 }
 0x38d   :  { %v424_v27 = vpop.f32.mrf.mxu1 }
 0x38e   :  { %v430_v28 = vadd.f32 %v424_v27, %v274_v51 }
 0x38f   :  { %v1413_v31 = vpop.f32.mrf.mxu1 }
 0x390   :  { %1532 = vtanh.f32 %v430_v28  ;;  %v1291_v35 = vmul.f32 -1.442695, %v430_v28 }
 0x391   :  { %v427_v32 = vpop.f32.mrf.mxu1 }
 0x392   :  { %1534 = vpow2.f32 %v1291_v35 }
 0x393   :  { %v1414_v33 = vpop.f32.mrf.mxu1 }
 0x39d   :  { %v1533_v34 = vpop.eup %1532 }
 0x39e   :  { %440 = vrot.lane.b32.xlu1 %v1533_v34, %s1602_s4 }
 0x39f   :  { %v1535_v36 = vpop.eup %1534 }
 0x3a0   :  { %v434_v37 = vadd.f32 1.0, %v1535_v36 }
 0x3a2   :  { %1536 = vrcp.f32 %v434_v37 }
 0x3af   :  { %v1537_v38 = vpop.eup %1536 }
 0x3b0   :  { %v438_v42 = vmul.f32 %v1537_v38, %v374_v20 }
 0x410   :  { %v441_v39 = vpop.permute.xlu1 %440 }
 0x411   :  { %v443_v41 = vmul.f32 %v1537_v38, %v441_v39 }
 0x413   :  { %445 = vrot.lane.b32.xlu0 %v443_v41, %s1602_s4 }
 0x485   :  { %v446_v43 = vpop.permute.xlu0 %445 }
 0x486   :  { %v448_v44 = vadd.f32 %v446_v43, %v438_v42 }
 0x488   :  { %1538 = vtanh.f32 %v448_v44 }
 0x495   :  { %v1539_v45 = vpop.eup %1538 }
 0x496   :  { %451 = vrot.lane.b32.xlu1 %v1539_v45, %s1602_s4 }
 0x508   :  { %v452_v46 = vpop.permute.xlu1 %451 }
 0x509   :  { %v454_v48 = vmul.f32 %v1537_v38, %v452_v46 }
 0x50b   :  { %v457_v49 = vpack.c.bf16 %v454_v48, %v454_v48 }
 0x50d   :  { %459 = vrot.lane.b32.xlu0 %v457_v49, %s1603_s5 }
 0x57f   :  { %v460_v50 = vpop.permute.xlu0 %459 }
 0x580   :  { %1420 = vmatmul.mubr.msk.bf16.vlgmr.msra.gmra.mxu0 %vm52_vm0, %v460_v50 }
 0x581   :  { %1432 = vmatpush3.bf16.msra.mxu0 %v1724_v17  ;;  %1435 = vmatprep.mubr.msk.bf16.mxu0 %vm1601_vm1, %v1600_v1 }
 0x582   :  { %1433 = vmatprep.subr.bf16.mxu0 %v1600_v1 }
 0x585   :  { %1434 = vmatpush3.bf16.msra.mxu0 %v1753_v26 }
 0x586   :  { %1447 = vmatprep.subr.bf16.mxu0 %v1600_v1 }
 0x640   :  { %v498_v51 = vpop.f32.mrf.mxu0 }
 0x641   :  { %v504_v52 = vadd.f32 %v498_v51, %v1792_v40 }
 0x642   :  { %v1421_v53 = vpop.f32.mrf.mxu0 }
 0x643   :  { %1540 = vtanh.f32 %v504_v52  ;;  %v1293_v58 = vmul.f32 -1.442695, %v504_v52 }
 0x644   :  { %v501_v54 = vpop.f32.mrf.mxu0 }
 0x645   :  { %1542 = vpow2.f32 %v1293_v58 }
 0x646   :  { %v1422_v55 = vpop.f32.mrf.mxu0 }
 0x650   :  { %v1541_v57 = vpop.eup %1540 }
 0x651   :  { %514 = vrot.lane.b32.xlu1 %v1541_v57, %s1602_s4 }
 0x652   :  { %v1543_v59 = vpop.eup %1542 }
 0x653   :  { %v508_v61 = vadd.f32 1.0, %v1543_v59 }
 0x655   :  { %1544 = vrcp.f32 %v508_v61 }
 0x662   :  { %v1545_v62 = vpop.eup %1544 }
 0x663   :  { %v512_v3 = vmul.f32 %v1545_v62, %v448_v44 }
 0x6c3   :  { %v515_v63 = vpop.permute.xlu1 %514 }
 0x6c4   :  { %v517_v0 = vmul.f32 %v1545_v62, %v515_v63 }
 0x6c6   :  { %519 = vrot.lane.b32.xlu0 %v517_v0, %s1602_s4 }
 0x738   :  { %v520_v4 = vpop.permute.xlu0 %519 }
 0x739   :  { %v522_v40 = vadd.f32 %v520_v4, %v512_v3 }
 0x73b   :  { %1546 = vtanh.f32 %v522_v40 }
 0x748   :  { %v1547_v6 = vpop.eup %1546 }
 0x749   :  { %525 = vrot.lane.b32.xlu1 %v1547_v6, %s1602_s4 }
 0x7bb   :  { %v526_v7 = vpop.permute.xlu1 %525 }
 0x7bc   :  { %v528_v8 = vmul.f32 %v1545_v62, %v526_v7 }
 0x7be   :  { %v531_v9 = vpack.c.bf16 %v528_v8, %v528_v8 }
 0x7c0   :  { %533 = vrot.lane.b32.xlu0 %v531_v9, %s1603_s5 }
 0x832   :  { %v534_v10 = vpop.permute.xlu0 %533 }
 0x833   :  { %1428 = vmatmul.mubr.msk.bf16.vlgmr.msra.gmra.mxu1 %vm52_vm0, %v534_v10 }
 0x834   :  { %1440 = vmatpush3.bf16.msra.mxu1 %v1724_v17  ;;  %1443 = vmatprep.mubr.msk.bf16.mxu1 %vm1601_vm1, %v1600_v1 }
 0x835   :  { %1441 = vmatprep.subr.bf16.mxu1 %v1600_v1 }
 0x838   :  { %1442 = vmatpush3.bf16.msra.mxu1 %v1753_v26 }
 0x839   :  { %1455 = vmatprep.subr.bf16.mxu1 %v1600_v1 }
 0x8f3   :  { %v572_v11 = vpop.f32.mrf.mxu1 }
 0x8f4   :  { %v578_v12 = vadd.f32 %v572_v11, %v1794_v47 }
 0x8f5   :  { %v1429_v13 = vpop.f32.mrf.mxu1 }
 0x8f6   :  { %1548 = vtanh.f32 %v578_v12  ;;  %v1295_v18 = vmul.f32 -1.442695, %v578_v12 }
 0x8f7   :  { %v575_v14 = vpop.f32.mrf.mxu1 }
 0x8f8   :  { %1550 = vpow2.f32 %v1295_v18 }
 0x8f9   :  { %v1430_v15 = vpop.f32.mrf.mxu1 }
 0x903   :  { %v1549_v16 = vpop.eup %1548 }
 0x904   :  { %588 = vrot.lane.b32.xlu1 %v1549_v16, %s1602_s4 }
 0x905   :  { %v1551_v19 = vpop.eup %1550 }
 0x906   :  { %v582_v20 = vadd.f32 1.0, %v1551_v19 }
 0x908   :  { %1552 = vrcp.f32 %v582_v20 }
 0x915   :  { %v1553_v21 = vpop.eup %1552 }
 0x916   :  { %v586_v24 = vmul.f32 %v1553_v21, %v522_v40 }
 0x976   :  { %v589_v22 = vpop.permute.xlu1 %588 }
 0x977   :  { %v591_v23 = vmul.f32 %v1553_v21, %v589_v22 }
 0x979   :  { %593 = vrot.lane.b32.xlu0 %v591_v23, %s1602_s4 }
 0x9eb   :  { %v594_v25 = vpop.permute.xlu0 %593 }
 0x9ec   :  { %v596_v47 = vadd.f32 %v594_v25, %v586_v24 }
 0x9ee   :  { %1554 = vtanh.f32 %v596_v47 }
 0x9fb   :  { %v1555_v27 = vpop.eup %1554 }
 0x9fc   :  { %599 = vrot.lane.b32.xlu1 %v1555_v27, %s1602_s4 }
 0xa6e   :  { %v600_v28 = vpop.permute.xlu1 %599 }
 0xa6f   :  { %v602_v31 = vmul.f32 %v1553_v21, %v600_v28  ;;  %v1514_v28 = vld [vmem:[%s1963_s7 + $0x8] sm:$0xff]  }
 0xa71   :  { %v605_v32 = vpack.c.bf16 %v602_v31, %v602_v31  ;;  %v1516_v31 = vld [vmem:[%s1963_s7] sm:$0xff]  }
 0xa73   :  { %607 = vrot.lane.b32.xlu0 %v605_v32, %s1603_s5  ;;  %v921_v32 = vrot.slane %v1765_v29, 4  ;;  %v1517_v29 = vld [vmem:[%s1964_s6] sm:$0xff]  }
 0xae5   :  { %v608_v33 = vpop.permute.xlu0 %607 }
 0xae6   :  { %1436 = vmatmul.mubr.msk.bf16.vlgmr.msra.gmra.mxu0 %vm52_vm0, %v608_v33 }
 0xae7   :  { %1448 = vmatpush3.bf16.msra.mxu0 %v1724_v17  ;;  %1451 = vmatprep.mubr.msk.bf16.mxu0 %vm1601_vm1, %v1600_v1 }
 0xae8   :  { %1449 = vmatprep.subr.bf16.mxu0 %v1600_v1 }
 0xaeb   :  { %1450 = vmatpush3.bf16.msra.mxu0 %v1753_v26 }
 0xaec   :  { %1463 = vmatprep.subr.bf16.mxu0 %v1600_v1 }
 0xba6   :  { %v646_v34 = vpop.f32.mrf.mxu0 }
 0xba7   :  { %v652_v35 = vadd.f32 %v646_v34, %v1798_v60 }
 0xba8   :  { %v1437_v36 = vpop.f32.mrf.mxu0 }
 0xba9   :  { %1556 = vtanh.f32 %v652_v35  ;;  %v1297_v41 = vmul.f32 -1.442695, %v652_v35  ;;  %v1515_v36 = vld [vmem:[%s1964_s6 + $0x8] sm:$0xff]  }
 0xbaa   :  { %v649_v37 = vpop.f32.mrf.mxu0 }
 0xbab   :  { %1558 = vpow2.f32 %v1297_v41 }
 0xbac   :  { %v1438_v38 = vpop.f32.mrf.mxu0 }
 0xbad   :  { %v978_v38 = vrot.slane %v1768_v30, 4 }
 0xbb6   :  { %v1557_v39 = vpop.eup %1556 }
 0xbb7   :  { %662 = vrot.lane.b32.xlu1 %v1557_v39, %s1602_s4 }
 0xbb8   :  { %v1559_v42 = vpop.eup %1558 }
 0xbb9   :  { %v656_v43 = vadd.f32 1.0, %v1559_v42 }
 0xbbb   :  { %1560 = vrcp.f32 %v656_v43 }
 0xbc8   :  { %v1561_v44 = vpop.eup %1560 }
 0xbc9   :  { %v660_v48 = vmul.f32 %v1561_v44, %v596_v47 }
 0xc29   :  { %v663_v45 = vpop.permute.xlu1 %662 }
 0xc2a   :  { %v665_v46 = vmul.f32 %v1561_v44, %v663_v45 }
 0xc2c   :  { %667 = vrot.lane.b32.xlu0 %v665_v46, %s1602_s4 }
 0xc9e   :  { %v668_v49 = vpop.permute.xlu0 %667 }
 0xc9f   :  { %v670_v60 = vadd.f32 %v668_v49, %v660_v48 }
 0xca1   :  { %1562 = vtanh.f32 %v670_v60 }
 0xcae   :  { %v1563_v50 = vpop.eup %1562 }
 0xcaf   :  { %673 = vrot.lane.b32.xlu1 %v1563_v50, %s1602_s4 }
 0xd21   :  { %v674_v51 = vpop.permute.xlu1 %673 }
 0xd22   :  { %v676_v52 = vmul.f32 %v1561_v44, %v674_v51 }
 0xd24   :  { %v679_v53 = vpack.c.bf16 %v676_v52, %v676_v52 }
 0xd26   :  { %681 = vrot.lane.b32.xlu0 %v679_v53, %s1603_s5 }
 0xd98   :  { %v682_v54 = vpop.permute.xlu0 %681 }
 0xd99   :  { %1444 = vmatmul.mubr.msk.bf16.vlgmr.msra.gmra.mxu1 %vm52_vm0, %v682_v54 }
 0xd9a   :  { %1456 = vmatpush3.bf16.msra.mxu1 %v1724_v17  ;;  %1459 = vmatprep.mubr.msk.bf16.mxu1 %vm1601_vm1, %v1600_v1 }
 0xd9b   :  { %1457 = vmatprep.subr.bf16.mxu1 %v1600_v1 }
 0xd9e   :  { %1458 = vmatpush3.bf16.msra.mxu1 %v1753_v26 }
 0xd9f   :  { %1471 = vmatprep.subr.bf16.mxu1 %v1600_v1 }
 0xe59   :  { %v720_v55 = vpop.f32.mrf.mxu1 }
 0xe5a   :  { %v726_v57 = vadd.f32 %v720_v55, %v1802_v5 }
 0xe5b   :  { %v1445_v58 = vpop.f32.mrf.mxu1 }
 0xe5c   :  { %1564 = vtanh.f32 %v726_v57  ;;  %v1299_v17 = vmul.f32 -1.442695, %v726_v57 }
 0xe5d   :  { %v723_v59 = vpop.f32.mrf.mxu1 }
 0xe5e   :  { %1566 = vpow2.f32 %v1299_v17 }
 0xe5f   :  { %v1446_v61 = vpop.f32.mrf.mxu1 }
 0xe69   :  { %v1565_v62 = vpop.eup %1564 }
 0xe6a   :  { %736 = vrot.lane.b32.xlu1 %v1565_v62, %s1602_s4 }
 0xe6b   :  { %v1567_v63 = vpop.eup %1566 }
 0xe6c   :  { %v730_v0 = vadd.f32 1.0, %v1567_v63 }
 0xe6e   :  { %1568 = vrcp.f32 %v730_v0 }
 0xe7b   :  { %v1569_v3 = vpop.eup %1568 }
 0xe7c   :  { %v734_v40 = vmul.f32 %v1569_v3, %v670_v60  ;;  %v1310_v60 = vld [vmem:[%s1965_s8] ss:$0 sm:$0xff] }
 0xedc   :  { %v737_v4 = vpop.permute.xlu1 %736 }
 0xedd   :  { %v739_v26 = vmul.f32 %v1569_v3, %v737_v4 }
 0xedf   :  { %741 = vrot.lane.b32.xlu0 %v739_v26, %s1602_s4 }
 0xf51   :  { %v742_v6 = vpop.permute.xlu0 %741 }
 0xf52   :  { %v744_v5 = vadd.f32 %v742_v6, %v734_v40 }
 0xf54   :  { %1570 = vtanh.f32 %v744_v5 }
 0xf61   :  { %v1571_v7 = vpop.eup %1570 }
 0xf62   :  { %747 = vrot.lane.b32.xlu1 %v1571_v7, %s1602_s4 }
 0xfd4   :  { %v748_v8 = vpop.permute.xlu1 %747 }
 0xfd5   :  { %v750_v9 = vmul.f32 %v1569_v3, %v748_v8 }
 0xfd7   :  { %v753_v10 = vpack.c.bf16 %v750_v9, %v750_v9  ;;  %v1518_v9 = vld [vmem:[%s1966_s10 + $0x8] sm:$0xff]  }
 0xfd9   :  { %755 = vrot.lane.b32.xlu0 %v753_v10, %s1603_s5  ;;  %v1519_v10 = vld [vmem:[%s1966_s10] sm:$0xff]   ;;  %s1604_s10 = smov 96  }
0x104b   :  { %v756_v11 = vpop.permute.xlu0 %755 }
0x104c   :  { %1452 = vmatmul.mubr.msk.bf16.vlgmr.msra.gmra.mxu0 %vm52_vm0, %v756_v11 }
0x104d   :  { %1467 = vmatprep.mubr.msk.bf16.mxu0 %vm1601_vm1, %v1600_v1  ;;  %1464 = vmatpush3.bf16.msra.mxu0 %v1514_v28 }
0x104e   :  { %1465 = vmatprep.subr.bf16.mxu0 %v1600_v1 }
0x1051   :  { %1466 = vmatpush3.bf16.msra.mxu0 %v1516_v31 }
0x1052   :  { %1479 = vmatprep.subr.bf16.mxu0 %v1600_v1 }
0x1054   :  { %1468 = vmatmul.mubr.msk.bf16.vlgmr.msra.gmra.mxu0 %vm52_vm0, %v921_v32 }
0x1055   :  { %1483 = vmatprep.mubr.msk.bf16.mxu0 %vm1601_vm1, %v1600_v1  ;;  %1480 = vmatpush3.bf16.msra.mxu0 %v1518_v9 }
0x1056   :  { %1481 = vmatprep.subr.bf16.mxu0 %v1600_v1 }
0x1059   :  { %1482 = vmatpush3.bf16.msra.mxu0 %v1519_v10 }
0x105a   :  { %1495 = vmatprep.subr.bf16.mxu0 %v1600_v1 }
0x110c   :  { %v794_v12 = vpop.f32.mrf.mxu0 }
0x110d   :  { %v800_v13 = vadd.f32 %v794_v12, %v1796_v56  ;;  %v1520_v12 = vld [vmem:[%s1967_s9 + $0x8] sm:$0xff]  }
0x110e   :  { %v1453_v14 = vpop.f32.mrf.mxu0 }
0x110f   :  { %1572 = vtanh.f32 %v800_v13  ;;  %v1301_v19 = vmul.f32 -1.442695, %v800_v13  ;;  %v1521_v13 = vld [vmem:[%s1967_s9] sm:$0xff]  }
0x1110   :  { %v797_v15 = vpop.f32.mrf.mxu0 }
0x1111   :  { %1574 = vpow2.f32 %v1301_v19 }
0x1112   :  { %v1454_v16 = vpop.f32.mrf.mxu0 }
0x1114   :  { %v971_v39 = vpop.f32.mrf.mxu0 }
0x1116   :  { %v1469_v41 = vpop.f32.mrf.mxu0 }
0x1118   :  { %v974_v42 = vpop.f32.mrf.mxu0 }
0x111a   :  { %v1470_v43 = vpop.f32.mrf.mxu0 }
0x111c   :  { %v1573_v18 = vpop.eup %1572 }
0x111d   :  { %810 = vrot.lane.b32.xlu1 %v1573_v18, %s1602_s4 }
0x111e   :  { %v1575_v20 = vpop.eup %1574 }
0x111f   :  { %v804_v21 = vadd.f32 1.0, %v1575_v20 }
0x1121   :  { %1576 = vrcp.f32 %v804_v21 }
0x112e   :  { %v1577_v22 = vpop.eup %1576 }
0x112f   :  { %v808_v25 = vmul.f32 %v1577_v22, %v744_v5 }
0x118f   :  { %v811_v23 = vpop.permute.xlu1 %810 }
0x1190   :  { %v813_v24 = vmul.f32 %v1577_v22, %v811_v23 }
0x1192   :  { %815 = vrot.lane.b32.xlu0 %v813_v24, %s1602_s4 }
0x1204   :  { %v816_v47 = vpop.permute.xlu0 %815 }
0x1205   :  { %v1874_v56 = vadd.f32 %v816_v47, %v808_v25  ;;  %v1522_v25 = vld [vmem:[%s1968_s12 + $0x8] sm:$0xff]   ;;  %v1523_v47 = vld [vmem:[%s1968_s12] sm:$0xff]  }
0x1207   :  { %1578 = vtanh.f32 %v1874_v56 }
0x1214   :  { %v1579_v27 = vpop.eup %1578 }
0x1215   :  { %821 = vrot.lane.b32.xlu1 %v1579_v27, %s1602_s4 }
0x1287   :  { %v822_v33 = vpop.permute.xlu1 %821 }
0x1288   :  { %v824_v34 = vmul.f32 %v1577_v22, %v822_v33  ;;  %v1318_v33 = vld [vmem:[%s1969_s11] ss:$0 sm:$0xff] }
0x128a   :  { %v827_v35 = vpack.c.bf16 %v824_v34, %v824_v34 }
0x128c   :  { %829 = vrot.lane.b32.xlu0 %v827_v35, %s1603_s5 }
0x12fe   :  { %v830_v37 = vpop.permute.xlu0 %829 }
0x12ff   :  { %1460 = vmatmul.mubr.msk.bf16.vlgmr.msra.gmra.mxu1 %vm52_vm0, %v830_v37 }
0x1300   :  { %1472 = vmatpush3.bf16.msra.mxu1 %v1515_v36  ;;  %1475 = vmatprep.mubr.msk.bf16.mxu1 %vm1601_vm1, %v1600_v1 }
0x1301   :  { %1473 = vmatprep.subr.bf16.mxu1 %v1600_v1 }
0x1304   :  { %1474 = vmatpush3.bf16.msra.mxu1 %v1517_v29 }
0x1305   :  { %1487 = vmatprep.subr.bf16.mxu1 %v1600_v1 }
0x1307   :  { %1476 = vmatmul.mubr.msk.bf16.vlgmr.msra.gmra.mxu1 %vm52_vm0, %v978_v38 }
0x1308   :  { %1491 = vmatprep.mubr.msk.bf16.mxu1 %vm1601_vm1, %v1600_v1  ;;  %1488 = vmatpush3.bf16.msra.mxu1 %v1520_v12 }
0x1309   :  { %1489 = vmatprep.subr.bf16.mxu1 %v1600_v1 }
0x130c   :  { %1490 = vmatpush3.bf16.msra.mxu1 %v1521_v13 }
0x13bf   :  { %v868_v44 = vpop.f32.mrf.mxu1 }
0x13c0   :  { %v874_v45 = vadd.f32 %v868_v44, %v1800_v2 }
0x13c1   :  { %v1461_v46 = vpop.f32.mrf.mxu1 }
0x13c2   :  { %1580 = vtanh.f32 %v874_v45  ;;  %v1303_v2 = vmul.f32 -1.442695, %v874_v45 }
0x13c3   :  { %v871_v48 = vpop.f32.mrf.mxu1 }
0x13c5   :  { %v1462_v49 = vpop.f32.mrf.mxu1 }
0x13c7   :  { %v1028_v30 = vpop.f32.mrf.mxu1 }
0x13c8   :  { %v1029_v50 = vadd.f32 %v1028_v30, %v971_v39  ;;  %v1319_v39 = vld [vmem:[%s1970_s13] ss:$0 sm:$0xff] }
0x13c9   :  { %v1477_v51 = vpop.f32.mrf.mxu1 }
0x13ca   :  { %v1041_v52 = vadd.f32 %v1310_v60, %v1029_v50 }
0x13cb   :  { %v1031_v53 = vpop.f32.mrf.mxu1 }
0x13cc   :  { %1582 = vtanh.f32 %v1041_v52  ;;  %v1311_v58 = vmul.f32 -1.442695, %v1041_v52 }
0x13cd   :  { %v1478_v54 = vpop.f32.mrf.mxu1  ;;  %1584 = vpow2.f32 %v1303_v2 }
0x13ce   :  { %1586 = vpow2.f32 %v1311_v58 }
0x13cf   :  { %v1581_v55 = vpop.eup %1580 }
0x13d0   :  { %884 = vrot.lane.b32.xlu1 %v1581_v55, %s1602_s4 }
0x13d9   :  { %v1583_v57 = vpop.eup %1582 }
0x13da   :  { %1050 = vrot.lane.b32.xlu1 %v1583_v57, %s1602_s4  ;;  %v1585_v59 = vpop.eup %1584 }
0x13db   :  { %v878_v61 = vadd.f32 1.0, %v1585_v59  ;;  %v1587_v62 = vpop.eup %1586 }
0x13dc   :  { %v1045_v17 = vadd.f32 1.0, %v1587_v62 }
0x13dd   :  { %1588 = vrcp.f32 %v878_v61 }
0x13de   :  { %1590 = vrcp.f32 %v1045_v17 }
0x13ea   :  { %v1589_v63 = vpop.eup %1588 }
0x13eb   :  { %v1591_v4 = vpop.eup %1590  ;;  %v882_v5 = vmul.f32 %v1589_v63, %v1874_v56 }
0x1442   :  { %v885_v0 = vpop.permute.xlu1 %884 }
0x1443   :  { %v887_v3 = vmul.f32 %v1589_v63, %v885_v0 }
0x1445   :  { %889 = vrot.lane.b32.xlu0 %v887_v3, %s1602_s4 }
0x144c   :  { %v1051_v26 = vpop.permute.xlu1 %1050 }
0x144d   :  { %v1053_v40 = vmul.f32 %v1591_v4, %v1051_v26 }
0x144f   :  { %1592 = vtanh.f32 %v1053_v40 }
0x145c   :  { %v1593_v6 = vpop.eup %1592 }
0x145d   :  { %1056 = vrot.lane.b32.xlu1 %v1593_v6, %s1603_s5 }
0x14b7   :  { %v890_v7 = vpop.permute.xlu0 %889 }
0x14b8   :  { %v892_v8 = vadd.f32 %v890_v7, %v882_v5 }
0x14ba   :  { %1594 = vtanh.f32 %v892_v8 }
0x14c7   :  { %v1595_v11 = vpop.eup %1594 }
0x14c8   :  { %895 = vrot.lane.b32.xlu0 %v1595_v11, %s1602_s4 }
0x14cf   :  { %v1057_v14 = vpop.permute.xlu1 %1056 }
0x14d0   :  { %v1059_v15 = vmul.f32 %v1591_v4, %v1057_v14 }
0x14d2   :  { %v1065_v16 = vpack.c.bf16 %v1059_v15, %v1059_v15 }
0x14d4   :  { %1071 = vrot.lane.b32.xlu0 %v1065_v16, %s1603_s5 }
0x153a   :  { %v896_v18 = vpop.permute.xlu0 %895 }
0x153b   :  { %v898_v19 = vmul.f32 %v1589_v63, %v896_v18 }
0x153d   :  { %v1060_v20 = vpack.c.bf16 %v898_v19, %v898_v19  ;;  %900 = vrot.lane.b32.xlu0 %v898_v19, %s1603_s5 }
0x153f   :  { %1129 = vrot.lane.b32.xlu1 %v1060_v20, %s1603_s5 }
0x1543   :  { %905 = vrot.lane.b32.xlu1 %v892_v8, %s1604_s10 }
0x1546   :  { %v1072_v21 = vpop.permute.xlu0 %1071 }
0x1547   :  { %1484 = vmatmul.mubr.msk.bf16.vlgmr.msra.gmra.mxu0 %vm52_vm0, %v1072_v21 }
0x1548   :  { %1499 = vmatprep.mubr.msk.bf16.mxu0 %vm1601_vm1, %v1600_v1  ;;  %1496 = vmatpush3.bf16.msra.mxu0 %v1522_v25 }
0x1549   :  { %1497 = vmatprep.subr.bf16.mxu0 %v1600_v1 }
0x154c   :  { %1498 = vmatpush3.bf16.msra.mxu0 %v1523_v47 }
0x15af   :  { %v901_v22 = vpop.permute.xlu0 %900 }
0x15b0   :  { %903 = vst.msk [vmem:[#allocation3] sm:$0xff] %vm52_vm0, %v901_v22 }
0x15b1   :  { %v1130_v23 = vpop.permute.xlu1 %1129 }
0x15b2   :  { %1492 = vmatmul.mubr.msk.bf16.vlgmr.msra.gmra.mxu1 %vm52_vm0, %v1130_v23 }
0x15b5   :  { %v906_v24 = vpop.permute.xlu1 %905 }
0x15b6   :  { %908 = vst.msk [vmem:[#allocation4] sm:$0xff] %vm52_vm0, %v906_v24 }
0x1607   :  { %v1122_v56 = vpop.f32.mrf.mxu0 }
0x1609   :  { %v1485_v27 = vpop.f32.mrf.mxu0 }
0x160b   :  { %v1125_v28 = vpop.f32.mrf.mxu0 }
0x160d   :  { %v1486_v31 = vpop.f32.mrf.mxu0 }
0x1672   :  { %v1180_v32 = vpop.f32.mrf.mxu1 }
0x1673   :  { %v1181_v34 = vadd.f32 %v1180_v32, %v1122_v56 }
0x1674   :  { %v1493_v35 = vpop.f32.mrf.mxu1 }
0x1675   :  { %v1193_v36 = vadd.f32 %v1318_v33, %v1181_v34 }
0x1676   :  { %v1183_v37 = vpop.f32.mrf.mxu1 }
0x1677   :  { %v1194_v29 = vmax.f32 %v1193_v36, 0.0 }
0x1678   :  { %v1494_v1 = vpop.f32.mrf.mxu1 }
0x1679   :  { %v1195_v38 = vpack.c.bf16 %v1194_v29, %v1194_v29 }
0x167b   :  { %1500 = vmatmul.mubr.msk.bf16.vlgmr.msra.gmra.mxu0 %vm52_vm0, %v1195_v38 }
0x173b   :  { %v1256_v41 = vpop.f32.mrf.mxu0 }
0x173c   :  { %v1257_v42 = vadd.f32 %v1319_v39, %v1256_v41 }
0x173d   :  { %v1501_v43 = vpop.f32.mrf.mxu0 }
0x173e   :  { %v1323_v44 = vmul.f32 -1.442695, %v1257_v42 }
0x173f   :  { %v1259_v45 = vpop.f32.mrf.mxu0 }
0x1740   :  { %1596 = vpow2.f32 %v1323_v44 }
0x1741   :  { %v1502_v46 = vpop.f32.mrf.mxu0 }
0x174d   :  { %v1597_v48 = vpop.eup %1596 }
0x174e   :  { %v1265_v49 = vadd.f32 1.0, %v1597_v48 }
0x1750   :  { %1598 = vrcp.f32 %v1265_v49 }
0x175d   :  { %v1599_v30 = vpop.eup %1598 }
0x175e   :  { %1268 = vst [vmem:[%s1971_s14] sm:$0xff] %v1599_v30 }

</bundles_post_ra>
